<compile_context>
chip_gen: v6e
topology: v6e:2x2x1
jax: 0.10.0
libtpu: 0.0.40
codegen_flags: <defaults>
</compile_context>

<pallas_src>
import math

import jax
import jax.numpy as jnp
import numpy as np
from jax.experimental import pallas as pl
from jax.experimental.pallas import tpu as pltpu

# ---------------------------------------------------------------------------
# Config (small, deterministic)
# ---------------------------------------------------------------------------
NUM_RESIDUE_TOKENS = 33
NUM_ELEMENT_TOKENS = 128
HIDDEN_DIM = 32          # hidden_dim (H)
DIM = 64                 # dim (output of TransitionBlock)
B, N = 2, 64             # batch, atoms per example
LN_EPS = 1e-5

H = HIDDEN_DIM
K_REAL = 9 * H           # 288 real feature columns
K_PAD = 384              # padded contraction dim (3 x 128)
NUM_FEAT_COLS = 16       # packed per-atom int32 columns (9 used, 7 pad)
BOOL_BASE_LANE = 34      # one-hot lanes 34..41 carry the four boolean lookups


def _round_up(x, m):
    return ((x + m - 1) // m) * m


# ---------------------------------------------------------------------------
# Pallas kernel
# ---------------------------------------------------------------------------
def atom_encoder_kernel(feat_ref, const_ref, tok_tab_ref, w_in_ref, w_out_ref,
                        o_ref, xbuf_ref):
    """One row-tile of the AtomEncoder forward.

    feat:    (TM, 16) i32   packed per-atom columns:
               0 residue_index, 1 residue_atom_index, 2 chain_id,
               3 residue_token lane, 4 element lane (idx+128),
               5..8 boolean target lanes (34+ion, 36+prot, 38+nuc, 40+bb), 9.. pad
    const:   (8, 128) f32   row0 packed Fourier w, row1 packed Fourier b,
                            row2 folded input-projection bias (beta @ w_in)
    tok_tab: (256, 256) f32 fused lookup table: residue tokens rows 0..32 /
                            cols 0..31, element tokens rows 128..255 / cols
                            32..63, bool embeddings rows 34..41 / cols 64..191,
                            cols 192..255 zero padding
    w_in:    (384, 128) f32 LN-affine-folded, row-permuted, zero-padded SwiGLU proj
    w_out:   (64, 64)  f32
    o:       (TM, 64)  f32
    xbuf:    (TM, 384) f32  scratch: [Fourier 96 | 0 x32 | matmul 192 | 0 x64]
    """
    tm = xbuf_ref.shape[0]
    two_pi = jnp.float32(2.0 * math.pi)
    feat = feat_ref[...]                                       # (TM, 16) i32

    # --- three Fourier embeddings as ONE lane-packed cos, one aligned store
    lane128 = jax.lax.broadcasted_iota(jnp.int32, (tm, 128), 1)
    xi = jnp.where(lane128 < 32, feat[:, 0:1],
                   jnp.where(lane128 < 64, feat[:, 1:2], feat[:, 2:3]))
    four = jnp.cos(two_pi * (xi.astype(jnp.float32) * const_ref[0:1, :]
                             + const_ref[1:2, :]))
    xbuf_ref[:, 0:128] = jnp.where(lane128 < 96, four, jnp.float32(0.0))

    # --- all six table lookups (residue/element tokens + 4 bool flags) as ONE
    #     one-hot matmul on the MXU; int iota + int compares, single i1->f32 cast.
    lane256 = jax.lax.broadcasted_iota(jnp.int32, (tm, 256), 1)
    hot = lane256 == feat[:, 3:4]
    for k in range(4, 9):
        hot = jnp.logical_or(hot, lane256 == feat[:, k:k + 1])
    xbuf_ref[:, 128:384] = jnp.dot(hot.astype(jnp.float32), tok_tab_ref[...],
                                   preferred_element_type=jnp.float32)

    # --- LayerNorm over the 288 real columns (pad columns are exact zeros, so
    #     the sums over the padded 384 width are exact; affine folded into w_in)
    x = xbuf_ref[...]
    inv_n = jnp.float32(1.0 / K_REAL)
    mu = jnp.sum(x, axis=-1, keepdims=True) * inv_n
    ex2 = jnp.sum(x * x, axis=-1, keepdims=True) * inv_n
    var = ex2 - mu * mu              # single-pass; fine for these O(1) features
    xn = (x - mu) * jax.lax.rsqrt(var + jnp.float32(LN_EPS))
    # pad columns of xn are nonzero, but the matching w_in rows are zero.

    # --- SwiGLU transition: one N=128 matmul, gate/value halves sliced from it
    h = jnp.dot(xn, w_in_ref[...],
                preferred_element_type=jnp.float32) + const_ref[2:3, :]
    g = jax.nn.silu(h[:, :DIM]) * h[:, DIM:]
    o_ref[...] = jnp.dot(g, w_out_ref[...], preferred_element_type=jnp.float32)


# ---------------------------------------------------------------------------
# Wrapper
# ---------------------------------------------------------------------------
def _choose_row_tile(M):
    """Generation-aware row tile: one grid step on single-TC chips (v5e/v6e);
    an even two-way split (TM <= 256) only where a second TensorCore exists."""
    kind = ""
    try:
        kind = jax.devices()[0].device_kind.lower()
    except Exception:
        pass
    if "v7" in kind and M > 16:
        tm = min(256, _round_up(-(-M // 2), 8))
    else:
        tm = min(512, _round_up(max(M, 8), 8))
    return tm, _round_up(M, tm)


def atom_encoder_pallas(batch_dict, params):
    """Pallas AtomEncoder forward. Returns (B, N, dim) float32."""
    Bb, Nn = batch_dict["residue_token"].shape
    M = Bb * Nn
    f32, i32 = jnp.float32, jnp.int32

    # --- pack all per-atom features into ONE small int32 array (one DMA stream)
    def col(name):
        return batch_dict[name].reshape(M).astype(i32)

    cols = jnp.stack(
        [col("residue_index"), col("residue_atom_index"), col("chain_id"),
         col("residue_token"),
         col("element_index") + NUM_ELEMENT_TOKENS,
         BOOL_BASE_LANE + 0 + col("is_ion"),
         BOOL_BASE_LANE + 2 + col("is_protein"),
         BOOL_BASE_LANE + 4 + col("is_nucleotide"),
         BOOL_BASE_LANE + 6 + col("is_backbone")],
        axis=-1)                                               # (M, 9)

    TM, M_pad = _choose_row_tile(M)
    feat = jnp.zeros((M_pad, NUM_FEAT_COLS), i32).at[:M, :9].set(cols)

    # --- small packed constants: lane-packed Fourier w|b + folded LN bias
    bias = jnp.dot(params["ln_beta"], params["w_in"],
                   precision=jax.lax.Precision.HIGHEST)        # (2*DIM,) = (128,)
    small_const = jnp.zeros((8, 128), f32)
    small_const = small_const.at[0, :3 * H].set(params["fourier_w"].reshape(-1))
    small_const = small_const.at[1, :3 * H].set(params["fourier_b"].reshape(-1))
    small_const = small_const.at[2, :].set(bias)

    # --- fused lookup table: tokens + booleans, (256, 256), pad cols zero
    tok_tab = jnp.zeros((2 * NUM_ELEMENT_TOKENS, 256), f32)
    tok_tab = tok_tab.at[:NUM_RESIDUE_TOKENS, 0:H].set(params["residue_token_emb"])
    tok_tab = tok_tab.at[NUM_ELEMENT_TOKENS:, H:2 * H].set(params["element_token_emb"])
    bool_embs = [params["is_ion_emb"], params["is_protein_emb"],
                 params["is_nucleotide_emb"], params["is_backbone_emb"]]
    for k, e in enumerate(bool_embs):
        r = BOOL_BASE_LANE + 2 * k
        c = (2 + k) * H
        tok_tab = tok_tab.at[r:r + 2, c:c + H].set(e)          # rows: flag=0, flag=1

    # --- LN affine folded into w_in; rows permuted to the kernel's padded layout
    w_in_folded = params["ln_gamma"][:, None] * params["w_in"]  # diag(gamma) @ w_in
    w_in_pad = jnp.zeros((K_PAD, 2 * DIM), f32)
    w_in_pad = w_in_pad.at[0:3 * H].set(w_in_folded[0:3 * H])          # Fourier slab
    w_in_pad = w_in_pad.at[128:128 + 6 * H].set(w_in_folded[3 * H:])   # token+bool slab
    w_out = params["w_out"]

    grid = (M_pad // TM,)
    row = lambda shape: pl.BlockSpec(shape, lambda i: (i, 0))
    const = lambda shape: pl.BlockSpec(shape, lambda i: (0, 0))

    out = pl.pallas_call(
        atom_encoder_kernel,
        out_shape=jax.ShapeDtypeStruct((M_pad, DIM), f32),
        grid=grid,
        in_specs=[
            row((TM, NUM_FEAT_COLS)),                 # packed per-atom indices
            const((8, 128)),                          # Fourier w|b + folded bias
            const((2 * NUM_ELEMENT_TOKENS, 256)),     # fused lookup table
            const((K_PAD, 2 * DIM)),                  # LN-folded input projection
            const((DIM, DIM)),                        # output projection
        ],
        out_specs=row((TM, DIM)),
        scratch_shapes=[pltpu.VMEM((TM, K_PAD), f32)],
        compiler_params=pltpu.CompilerParams(dimension_semantics=("parallel",)),
    )(feat, small_const, tok_tab, w_in_pad, w_out)

    return out[:M].reshape(Bb, Nn, DIM)


# ---------------------------------------------------------------------------
# Pure-JAX reference (same math) for the correctness check
# ---------------------------------------------------------------------------
def atom_encoder_reference(batch_dict, params):
    hp = jax.lax.Precision.HIGHEST

    def fourier(x, w, b):
        return jnp.cos(2.0 * math.pi * (x[..., None].astype(jnp.float32) * w + b))

    fw, fb = params["fourier_w"], params["fourier_b"]
    parts = [
        fourier(batch_dict["residue_index"], fw[0], fb[0]),
        fourier(batch_dict["residue_atom_index"], fw[1], fb[1]),
        fourier(batch_dict["chain_id"], fw[2], fb[2]),
        jnp.take(params["residue_token_emb"], batch_dict["residue_token"], axis=0),
        jnp.take(params["element_token_emb"], batch_dict["element_index"], axis=0),
        jnp.take(params["is_ion_emb"], batch_dict["is_ion"].astype(jnp.int32), axis=0),
        jnp.take(params["is_protein_emb"], batch_dict["is_protein"].astype(jnp.int32), axis=0),
        jnp.take(params["is_nucleotide_emb"], batch_dict["is_nucleotide"].astype(jnp.int32), axis=0),
        jnp.take(params["is_backbone_emb"], batch_dict["is_backbone"].astype(jnp.int32), axis=0),
    ]
    x = jnp.concatenate(parts, axis=-1)                       # (B, N, 9H)
    mu = jnp.mean(x, -1, keepdims=True)
    var = jnp.mean((x - mu) ** 2, -1, keepdims=True)
    xn = (x - mu) / jnp.sqrt(var + LN_EPS)
    xn = xn * params["ln_gamma"] + params["ln_beta"]
    h = jnp.dot(xn, params["w_in"], precision=hp)
    a, b = h[..., :DIM], h[..., DIM:]
    return jnp.dot(jax.nn.silu(a) * b, params["w_out"], precision=hp)


# ---------------------------------------------------------------------------
# Deterministic parameters & inputs
# ---------------------------------------------------------------------------
def make_params(key):
    ks = jax.random.split(key, 12)
    return {
        "fourier_w": jax.random.normal(ks[0], (3, H), jnp.float32),
        "fourier_b": jax.random.normal(ks[1], (3, H), jnp.float32),
        # TODO(synk): timestep_emb is declared in __init__ but unused in forward; omitted.
        "residue_token_emb": jax.random.normal(ks[2], (NUM_RESIDUE_TOKENS, H), jnp.float32),
        "element_token_emb": jax.random.normal(ks[3], (NUM_ELEMENT_TOKENS, H), jnp.float32),
        "is_ion_emb": jax.random.normal(ks[4], (2, H), jnp.float32),
        "is_protein_emb": jax.random.normal(ks[5], (2, H), jnp.float32),
        "is_nucleotide_emb": jax.random.normal(ks[6], (2, H), jnp.float32),
        "is_backbone_emb": jax.random.normal(ks[7], (2, H), jnp.float32),
        # non-trivial LN affine so the fold-into-w_in path is actually exercised
        "ln_gamma": 1.0 + 0.1 * jax.random.normal(ks[10], (K_REAL,), jnp.float32),
        "ln_beta": 0.1 * jax.random.normal(ks[11], (K_REAL,), jnp.float32),
        "w_in": jax.random.normal(ks[8], (K_REAL, 2 * DIM), jnp.float32) * (1.0 / math.sqrt(K_REAL)),
        "w_out": jax.random.normal(ks[9], (DIM, DIM), jnp.float32) * (1.0 / math.sqrt(DIM)),
    }


def make_batch(key):
    ks = jax.random.split(key, 10)
    return {
        "residue_token": jax.random.randint(ks[0], (B, N), 0, NUM_RESIDUE_TOKENS, jnp.int32),
        "residue_index": jax.random.randint(ks[1], (B, N), 0, 256, jnp.int32),
        "residue_atom_index": jax.random.randint(ks[2], (B, N), 0, 32, jnp.int32),
        "chain_id": jax.random.randint(ks[3], (B, N), 0, 8, jnp.int32),
        "element_index": jax.random.randint(ks[4], (B, N), 0, NUM_ELEMENT_TOKENS, jnp.int32),
        "is_ion": jax.random.bernoulli(ks[5], 0.1, (B, N)),
        "is_protein": jax.random.bernoulli(ks[6], 0.7, (B, N)),
        "is_nucleotide": jax.random.bernoulli(ks[7], 0.2, (B, N)),
        "is_backbone": jax.random.bernoulli(ks[8], 0.4, (B, N)),
    }


if __name__ == "__main__":
    key = jax.random.PRNGKey(0)
    kp, kb = jax.random.split(key)
    params = make_params(kp)
    batch = make_batch(kb)

    out = atom_encoder_pallas(batch, params)
    out = jax.block_until_ready(out)

    ref = atom_encoder_reference(batch, params)
    np.testing.assert_allclose(np.asarray(out), np.asarray(ref), rtol=2e-3, atol=2e-3)
    assert out.shape == (B, N, DIM) and out.dtype == jnp.float32

    print("KERNEL_OK")
</pallas_src>

<mosaic_0001>
module attributes {stable_mosaic.version = 11 : i64} {
  func.func @atom_encoder_kernel(%arg0: i32, %arg1: memref<128x16xi32, #tpu.memory_space<vmem>>, %arg2: memref<8x128xf32, #tpu.memory_space<vmem>>, %arg3: memref<256x256xf32, #tpu.memory_space<vmem>>, %arg4: memref<384x128xf32, #tpu.memory_space<vmem>>, %arg5: memref<64x64xf32, #tpu.memory_space<vmem>>, %arg6: memref<128x64xf32, #tpu.memory_space<vmem>>, %arg7: memref<128x384xf32, #tpu.memory_space<vmem>>) attributes {dimension_semantics = [#tpu.dimension_semantics<parallel>], iteration_bounds = array<i64: 1>, scalar_prefetch = 0 : i64, scratch_operands = 1 : i64, tpu.core_type = #tpu.core_type<tc>, window_params = [{transform_indices = @transform_0, window_bounds = array<i64: 128, 16>}, {pipeline_mode = #tpu.pipeline_mode<synchronous>, transform_indices = @transform_1, window_bounds = array<i64: 8, 128>}, {pipeline_mode = #tpu.pipeline_mode<synchronous>, transform_indices = @transform_2, window_bounds = array<i64: 256, 256>}, {pipeline_mode = #tpu.pipeline_mode<synchronous>, transform_indices = @transform_3, window_bounds = array<i64: 384, 128>}, {pipeline_mode = #tpu.pipeline_mode<synchronous>, transform_indices = @transform_4, window_bounds = array<i64: 64, 64>}, {transform_indices = @transform_5, window_bounds = array<i64: 128, 64>}]} {
    %c0 = arith.constant 0 : index
    %c0_0 = arith.constant 0 : index
    %0 = vector.load %arg1[%c0, %c0_0] : memref<128x16xi32, #tpu.memory_space<vmem>>, vector<128x16xi32>
    %1 = tpu.iota {dimensions = array<i32: 1>} : vector<128x128xi32>
    %c32_i32 = arith.constant 32 : i32
    %2 = vector.broadcast %c32_i32 : i32 to vector<128x128xi32>
    %3 = arith.cmpi slt, %1, %2 : vector<128x128xi32>
    %4 = vector.extract_strided_slice %0 {offsets = [0, 0], sizes = [128, 1], strides = [1, 1]} : vector<128x16xi32> to vector<128x1xi32>
    %c64_i32 = arith.constant 64 : i32
    %5 = vector.broadcast %c64_i32 : i32 to vector<128x128xi32>
    %6 = arith.cmpi slt, %1, %5 : vector<128x128xi32>
    %7 = vector.extract_strided_slice %0 {offsets = [0, 1], sizes = [128, 1], strides = [1, 1]} : vector<128x16xi32> to vector<128x1xi32>
    %8 = vector.extract_strided_slice %0 {offsets = [0, 2], sizes = [128, 1], strides = [1, 1]} : vector<128x16xi32> to vector<128x1xi32>
    %9 = vector.shape_cast %7 : vector<128x1xi32> to vector<128x1xi32>
    %10 = vector.broadcast %9 : vector<128x1xi32> to vector<128x128xi32>
    %11 = vector.shape_cast %8 : vector<128x1xi32> to vector<128x1xi32>
    %12 = vector.broadcast %11 : vector<128x1xi32> to vector<128x128xi32>
    %13 = arith.select %6, %10, %12 : vector<128x128xi1>, vector<128x128xi32>
    %14 = vector.shape_cast %4 : vector<128x1xi32> to vector<128x1xi32>
    %15 = vector.broadcast %14 : vector<128x1xi32> to vector<128x128xi32>
    %16 = arith.select %3, %15, %13 : vector<128x128xi1>, vector<128x128xi32>
    %17 = arith.sitofp %16 : vector<128x128xi32> to vector<128x128xf32>
    %c0_1 = arith.constant 0 : index
    %c0_2 = arith.constant 0 : index
    %18 = vector.load %arg2[%c0_1, %c0_2] : memref<8x128xf32, #tpu.memory_space<vmem>>, vector<1x128xf32>
    %19 = vector.broadcast %18 : vector<1x128xf32> to vector<128x128xf32>
    %20 = arith.mulf %17, %19 : vector<128x128xf32>
    %c1 = arith.constant 1 : index
    %c0_3 = arith.constant 0 : index
    %21 = vector.load %arg2[%c1, %c0_3] : memref<8x128xf32, #tpu.memory_space<vmem>>, vector<1x128xf32>
    %22 = vector.broadcast %21 : vector<1x128xf32> to vector<128x128xf32>
    %23 = arith.addf %20, %22 : vector<128x128xf32>
    %cst = arith.constant 6.28318548 : f32
    %24 = vector.broadcast %cst : f32 to vector<128x128xf32>
    %25 = arith.mulf %24, %23 : vector<128x128xf32>
    %26 = math.cos %25 : vector<128x128xf32>
    %c96_i32 = arith.constant 96 : i32
    %27 = vector.broadcast %c96_i32 : i32 to vector<128x128xi32>
    %28 = arith.cmpi slt, %1, %27 : vector<128x128xi32>
    %cst_4 = arith.constant 0.000000e+00 : f32
    %29 = vector.broadcast %cst_4 : f32 to vector<128x128xf32>
    %30 = arith.select %28, %26, %29 : vector<128x128xi1>, vector<128x128xf32>
    %c0_5 = arith.constant 0 : index
    %c0_6 = arith.constant 0 : index
    %31 = vector.load %arg7[%c0_5, %c0_6] : memref<128x384xf32, #tpu.memory_space<vmem>>, vector<128x128xf32>
    tpu.vector_store %arg7[%c0_5, %c0_6], %30 {strides = array<i32>} : memref<128x384xf32, #tpu.memory_space<vmem>>, vector<128x128xf32>,
    %32 = tpu.iota {dimensions = array<i32: 1>} : vector<128x256xi32>
    %33 = vector.extract_strided_slice %0 {offsets = [0, 3], sizes = [128, 1], strides = [1, 1]} : vector<128x16xi32> to vector<128x1xi32>
    %34 = vector.broadcast %33 : vector<128x1xi32> to vector<128x256xi32>
    %35 = arith.cmpi eq, %32, %34 : vector<128x256xi32>
    %36 = vector.extract_strided_slice %0 {offsets = [0, 4], sizes = [128, 1], strides = [1, 1]} : vector<128x16xi32> to vector<128x1xi32>
    %37 = vector.broadcast %36 : vector<128x1xi32> to vector<128x256xi32>
    %38 = arith.cmpi eq, %32, %37 : vector<128x256xi32>
    %39 = arith.ori %35, %38 : vector<128x256xi1>
    %40 = vector.extract_strided_slice %0 {offsets = [0, 5], sizes = [128, 1], strides = [1, 1]} : vector<128x16xi32> to vector<128x1xi32>
    %41 = vector.broadcast %40 : vector<128x1xi32> to vector<128x256xi32>
    %42 = arith.cmpi eq, %32, %41 : vector<128x256xi32>
    %43 = arith.ori %39, %42 : vector<128x256xi1>
    %44 = vector.extract_strided_slice %0 {offsets = [0, 6], sizes = [128, 1], strides = [1, 1]} : vector<128x16xi32> to vector<128x1xi32>
    %45 = vector.broadcast %44 : vector<128x1xi32> to vector<128x256xi32>
    %46 = arith.cmpi eq, %32, %45 : vector<128x256xi32>
    %47 = arith.ori %43, %46 : vector<128x256xi1>
    %48 = vector.extract_strided_slice %0 {offsets = [0, 7], sizes = [128, 1], strides = [1, 1]} : vector<128x16xi32> to vector<128x1xi32>
    %49 = vector.broadcast %48 : vector<128x1xi32> to vector<128x256xi32>
    %50 = arith.cmpi eq, %32, %49 : vector<128x256xi32>
    %51 = arith.ori %47, %50 : vector<128x256xi1>
    %52 = vector.extract_strided_slice %0 {offsets = [0, 8], sizes = [128, 1], strides = [1, 1]} : vector<128x16xi32> to vector<128x1xi32>
    %53 = vector.broadcast %52 : vector<128x1xi32> to vector<128x256xi32>
    %54 = arith.cmpi eq, %32, %53 : vector<128x256xi32>
    %55 = arith.ori %51, %54 : vector<128x256xi1>
    %56 = arith.extui %55 : vector<128x256xi1> to vector<128x256xi32>
    %57 = arith.sitofp %56 : vector<128x256xi32> to vector<128x256xf32>
    %c0_7 = arith.constant 0 : index
    %c0_8 = arith.constant 0 : index
    %58 = vector.load %arg3[%c0_7, %c0_8] : memref<256x256xf32, #tpu.memory_space<vmem>>, vector<256x256xf32>
    %cst_9 = arith.constant dense<0.000000e+00> : vector<128x256xf32>
    %59 = tpu.matmul %57, %58, %cst_9 {dimension_numbers = #tpu.dot_dimension_numbers<[1], [0], [0], [1], [0, 0, 1, 1], [], []>} : vector<128x256xf32>, vector<256x256xf32>, vector<128x256xf32> -> vector<128x256xf32>
    %c0_10 = arith.constant 0 : index
    %c128 = arith.constant 128 : index
    %60 = vector.load %arg7[%c0_10, %c128] : memref<128x384xf32, #tpu.memory_space<vmem>>, vector<128x256xf32>
    tpu.vector_store %arg7[%c0_10, %c128], %59 {strides = array<i32>} : memref<128x384xf32, #tpu.memory_space<vmem>>, vector<128x256xf32>,
    %c0_11 = arith.constant 0 : index
    %c0_12 = arith.constant 0 : index
    %61 = vector.load %arg7[%c0_11, %c0_12] : memref<128x384xf32, #tpu.memory_space<vmem>>, vector<128x384xf32>
    %cst_13 = arith.constant dense<0.000000e+00> : vector<128xf32>
    %62 = vector.multi_reduction <add>, %61, %cst_13 [1] : vector<128x384xf32> to vector<128xf32>
    %63 = vector.shape_cast %62 : vector<128xf32> to vector<128x1xf32>
    %cst_14 = arith.constant 0.00347222225 : f32
    %64 = vector.broadcast %cst_14 : f32 to vector<128x1xf32>
    %65 = arith.mulf %63, %64 : vector<128x1xf32>
    %66 = arith.mulf %61, %61 : vector<128x384xf32>
    %cst_15 = arith.constant dense<0.000000e+00> : vector<128xf32>
    %67 = vector.multi_reduction <add>, %66, %cst_15 [1] : vector<128x384xf32> to vector<128xf32>
    %68 = vector.shape_cast %67 : vector<128xf32> to vector<128x1xf32>
    %cst_16 = arith.constant 0.00347222225 : f32
    %69 = vector.broadcast %cst_16 : f32 to vector<128x1xf32>
    %70 = arith.mulf %68, %69 : vector<128x1xf32>
    %71 = arith.mulf %65, %65 : vector<128x1xf32>
    %72 = arith.subf %70, %71 : vector<128x1xf32>
    %73 = vector.broadcast %65 : vector<128x1xf32> to vector<128x384xf32>
    %74 = arith.subf %61, %73 : vector<128x384xf32>
    %cst_17 = arith.constant 9.99999974E-6 : f32
    %75 = vector.broadcast %cst_17 : f32 to vector<128x1xf32>
    %76 = arith.addf %72, %75 : vector<128x1xf32>
    %77 = math.rsqrt %76 : vector<128x1xf32>
    %78 = vector.broadcast %77 : vector<128x1xf32> to vector<128x384xf32>
    %79 = arith.mulf %74, %78 : vector<128x384xf32>
    %c0_18 = arith.constant 0 : index
    %c0_19 = arith.constant 0 : index
    %80 = vector.load %arg4[%c0_18, %c0_19] : memref<384x128xf32, #tpu.memory_space<vmem>>, vector<384x128xf32>
    %cst_20 = arith.constant dense<0.000000e+00> : vector<128x128xf32>
    %81 = tpu.matmul %79, %80, %cst_20 {dimension_numbers = #tpu.dot_dimension_numbers<[1], [0], [0], [1], [0, 0, 1, 1], [], []>} : vector<128x384xf32>, vector<384x128xf32>, vector<128x128xf32> -> vector<128x128xf32>
    %c2 = arith.constant 2 : index
    %c0_21 = arith.constant 0 : index
    %82 = vector.load %arg2[%c2, %c0_21] : memref<8x128xf32, #tpu.memory_space<vmem>>, vector<1x128xf32>
    %83 = vector.broadcast %82 : vector<1x128xf32> to vector<128x128xf32>
    %84 = arith.addf %81, %83 : vector<128x128xf32>
    %85 = vector.extract_strided_slice %84 {offsets = [0, 0], sizes = [128, 64], strides = [1, 1]} : vector<128x128xf32> to vector<128x64xf32>
    %86 = arith.negf %85 : vector<128x64xf32>
    %87 = math.exp %86 : vector<128x64xf32>
    %cst_22 = arith.constant 1.000000e+00 : f32
    %88 = vector.broadcast %cst_22 : f32 to vector<128x64xf32>
    %89 = arith.addf %88, %87 : vector<128x64xf32>
    %90 = arith.divf %88, %89 : vector<128x64xf32>
    %91 = arith.mulf %85, %90 : vector<128x64xf32>
    %92 = vector.extract_strided_slice %84 {offsets = [0, 64], sizes = [128, 64], strides = [1, 1]} : vector<128x128xf32> to vector<128x64xf32>
    %93 = arith.mulf %91, %92 : vector<128x64xf32>
    %c0_23 = arith.constant 0 : index
    %c0_24 = arith.constant 0 : index
    %94 = vector.load %arg5[%c0_23, %c0_24] : memref<64x64xf32, #tpu.memory_space<vmem>>, vector<64x64xf32>
    %cst_25 = arith.constant dense<0.000000e+00> : vector<128x64xf32>
    %95 = tpu.matmul %93, %94, %cst_25 {dimension_numbers = #tpu.dot_dimension_numbers<[1], [0], [0], [1], [0, 0, 1, 1], [], []>} : vector<128x64xf32>, vector<64x64xf32>, vector<128x64xf32> -> vector<128x64xf32>
    %c0_26 = arith.constant 0 : index
    %c0_27 = arith.constant 0 : index
    %96 = vector.load %arg6[%c0_26, %c0_27] : memref<128x64xf32, #tpu.memory_space<vmem>>, vector<128x64xf32>
    tpu.vector_store %arg6[%c0_26, %c0_27], %95 {strides = array<i32>} : memref<128x64xf32, #tpu.memory_space<vmem>>, vector<128x64xf32>,
    return
  }
  func.func @transform_0(%arg0: i32) -> (i32, i32) {
    %c0_i32 = arith.constant 0 : i32
    %c0_i32_0 = arith.constant 0 : i32
    return %arg0, %c0_i32 : i32, i32
  }
  func.func @transform_1(%arg0: i32) -> (i32, i32) {
    %c0_i32 = arith.constant 0 : i32
    %c0_i32_0 = arith.constant 0 : i32
    %c0_i32_1 = arith.constant 0 : i32
    return %c0_i32, %c0_i32_0 : i32, i32
  }
  func.func @transform_2(%arg0: i32) -> (i32, i32) {
    %c0_i32 = arith.constant 0 : i32
    %c0_i32_0 = arith.constant 0 : i32
    %c0_i32_1 = arith.constant 0 : i32
    return %c0_i32, %c0_i32_0 : i32, i32
  }
  func.func @transform_3(%arg0: i32) -> (i32, i32) {
    %c0_i32 = arith.constant 0 : i32
    %c0_i32_0 = arith.constant 0 : i32
    %c0_i32_1 = arith.constant 0 : i32
    return %c0_i32, %c0_i32_0 : i32, i32
  }
  func.func @transform_4(%arg0: i32) -> (i32, i32) {
    %c0_i32 = arith.constant 0 : i32
    %c0_i32_0 = arith.constant 0 : i32
    %c0_i32_1 = arith.constant 0 : i32
    return %c0_i32, %c0_i32_0 : i32, i32
  }
  func.func @transform_5(%arg0: i32) -> (i32, i32) {
    %c0_i32 = arith.constant 0 : i32
    %c0_i32_0 = arith.constant 0 : i32
    return %arg0, %c0_i32 : i32, i32
  }
}

</mosaic_0001>

<bundles_post_ra>
// kernel: tpu_custom_call.1
= control target key start
LH: loop header
LB: loop body
LE: loop exit
PB: predicated region body
PF: predicated region fallthrough
CT: control target
= control target key end

     0   :  { %10 = vsyncpa [#allocation4], 0  ;;  %s8269_s0 = inlined_call_operand.vmem [shape: s32[128,16], index: 0, kind: input, shape index: {}]   ;;  %s8270_s1 = inlined_call_operand.vmem [shape: f32[8,128], index: 1, kind: input, shape index: {}]   ;;  %s8271_s2 = inlined_call_operand.hbm [shape: f32[256,256], index: 2, kind: input, shape index: {}]   ;;  %s8272_s3 = inlined_call_operand.hbm [shape: f32[384,128], index: 3, kind: input, shape index: {}]   ;;  %s8273_s4 = inlined_call_operand.vmem [shape: f32[64,64], index: 4, kind: input, shape index: {}]   ;;  %s8274_s5 = inlined_call_operand.vmem [shape: f32[128,64], index: 5, kind: output, shape index: {}]  }
   0x1   :  { %11 = vsyncpa [#allocation6], 0  ;;  %s4931_s18 = smov [#allocation3]  }
   0x2   :  { %s21_s19 = sshll.u32 %s4931_s18, 4  ;;  %s22_s19 = int_to_ptr.vmem [resolvable:$true] %s21_s19 }
   0x3   :  { %s4895_s20 = scalar_lea.vmem %s22_s19, 8192  ;;  %p4900_p1 = scmp.lt.s32.totalorder %s22_s19, %s22_s19 }
   0x4   :  { %p4896_p0 = scmp.ne.s32.totalorder %s22_s19, %s4895_s20  ;;  %p4901_p2 = scmp.lt.s32.totalorder %s4895_s20, %s4895_s20 }
   0x6   :  { %p4902_p3 = por %p4901_p2, %p4900_p1 }
   0x8   :  { %p4903_p4 = pnand %p4902_p3, %p4896_p0 }
   0xa   :  { %4906 = shalt.err (!%p4903_p4)
}
   0xb   :  { %s4932_s21 = smov 256   ;;  %s4933_s22 = smov 16  }
   0xc   :  { %27 = dma.hbm_to_vmem [thread:$0]  %s8271_s2, 8192, %s22_s19, [#allocation4], %s4932_s21, %s4932_s21, %s4933_s22  }
   0xd   :  { %s4934_s25 = smov [#allocation5]  }
   0xe   :  { %s33_s26 = sshll.u32 %s4934_s25, 4  ;;  %s34_s26 = int_to_ptr.vmem [resolvable:$true] %s33_s26 }
   0xf   :  { %s4915_s27 = scalar_lea.vmem %s34_s26, 6144  ;;  %p4920_p6 = scmp.lt.s32.totalorder %s34_s26, %s34_s26 }
  0x10   :  { %p4916_p5 = scmp.ne.s32.totalorder %s34_s26, %s4915_s27  ;;  %p4921_p7 = scmp.lt.s32.totalorder %s4915_s27, %s4915_s27 }
  0x12   :  { %p4922_p8 = por %p4921_p7, %p4920_p6 }
  0x14   :  { %p4923_p9 = pnand %p4922_p8, %p4916_p5 }
  0x16   :  { %4926 = shalt.err (!%p4923_p9)
}
  0x17   :  { %s4935_s28 = smov 128   ;;  %s4936_s29 = smov 8  }
  0x18   :  { %39 = dma.hbm_to_vmem [thread:$0]  %s8272_s3, 6144, %s34_s26, [#allocation6], %s4935_s28, %s4935_s28, %s4936_s29  }
  0x19   :  { %4927 = dma.done.wait [#allocation4], 8192  }
  0x1a   :  { %4928 = vsyncadd [#allocation4], 4294959104 }
  0x1b   :  { %4929 = dma.done.wait [#allocation6], 6144  }
  0x1c   :  { %4930 = vsyncadd [#allocation6], 4294961152  ;;  %v4937_v0 = vmov 5   ;;  %v4938_v1 = vmov 3   ;;  %v4994_v2 = vld [vmem:[%s8269_s0] sm:$0xff]  ;;  %v4939_v3 = vmov 6  }
  0x1d   :  { %4604 = vset.pattern.permute.xlu1 %v4937_v0  ;;  %4602 = vset.pattern.permute.xlu0 %v4938_v1  ;;  %v4940_v4 = vmov 4   ;;  %v2735_v5 = vld [vmem:[#allocation3 + $0xf8] sm:$0xff]  ;;  %v2734_v6 = vld [vmem:[#allocation3 + $0xf0] sm:$0xff]  ;;  %v2733_v7 = vld [vmem:[#allocation3 + $0xe8] sm:$0xff]  ;;  %v4941_v10 = vmov 7   ;;  %v4942_v22 = vmov 8  }
  0x1e   :  { %2193 = vperm.xlu1 %4604, %v4994_v2   ;;  %2001 = vperm.xlu0 %4602, %v4994_v2   ;;  %v5005_v8 = vld [vmem:[%s8269_s0 + $0x8] sm:$0xff]  ;;  %v2732_v9 = vld [vmem:[#allocation3 + $0xe0] sm:$0xff]  ;;  %v2731_v11 = vld [vmem:[#allocation3 + $0xd8] sm:$0xff] }
  0x1f   :  { %2768 = vmatprep.subr.mxu0 %v2735_v5  ;;  %v2730_v12 = vld [vmem:[#allocation3 + $0xd0] sm:$0xff]  ;;  %v2729_v14 = vld [vmem:[#allocation3 + $0xc8] sm:$0xff]  ;;  %v2728_v15 = vld [vmem:[#allocation3 + $0xc0] sm:$0xff] }
  0x20   :  { %2769 = vmatpush1.msra.mxu0 %v2734_v6  ;;  %v5013_v13 = vld [vmem:[%s8269_s0 + $0x10] sm:$0xff]  ;;  %v2727_v16 = vld [vmem:[#allocation3 + $0xb8] sm:$0xff]  ;;  %v2725_v19 = vld [vmem:[#allocation3 + $0xa8] sm:$0xff] }
  0x21   :  { %2770 = vmatprep.subr.mxu0 %v2733_v7  ;;  %v5021_v17 = vld [vmem:[%s8269_s0 + $0x18] sm:$0xff]  ;;  %v2726_v18 = vld [vmem:[#allocation3 + $0xb0] sm:$0xff]  ;;  %v2724_v20 = vld [vmem:[#allocation3 + $0xa0] sm:$0xff] }
  0x22   :  { %4605 = vset.pattern.permute.xlu1 %v4939_v3  ;;  %4603 = vset.pattern.permute.xlu0 %v4940_v4  ;;  %v2723_v21 = vld [vmem:[#allocation3 + $0x98] sm:$0xff]  ;;  %v5028_v23 = vld [vmem:[%s8269_s0 + $0x20] sm:$0xff]  ;;  %v2722_v24 = vld [vmem:[#allocation3 + $0x90] sm:$0xff] }
  0x23   :  { %2305 = vperm.xlu1 %4605, %v4994_v2   ;;  %2081 = vperm.xlu0 %4603, %v4994_v2   ;;  %v2721_v25 = vld [vmem:[#allocation3 + $0x88] sm:$0xff]  ;;  %v2720_v26 = vld [vmem:[#allocation3 + $0x80] sm:$0xff]  ;;  %v2719_v27 = vld [vmem:[#allocation3 + $0x78] sm:$0xff] }
  0x24   :  { %2771 = vmatpush1.msra.mxu0 %v2732_v9  ;;  %v5035_v28 = vld [vmem:[%s8269_s0 + $0x28] sm:$0xff]  ;;  %v2718_v29 = vld [vmem:[#allocation3 + $0x70] sm:$0xff]  ;;  %v2716_v31 = vld [vmem:[#allocation3 + $0x60] sm:$0xff] }
  0x25   :  { %2772 = vmatprep.subr.mxu0 %v2731_v11  ;;  %v2717_v30 = vld [vmem:[#allocation3 + $0x68] sm:$0xff]  ;;  %v2715_v32 = vld [vmem:[#allocation3 + $0x58] sm:$0xff]  ;;  %v5043_v33 = vld [vmem:[%s8269_s0 + $0x30] sm:$0xff] }
  0x26   :  { %2773 = vmatpush1.msra.mxu0 %v2730_v12  ;;  %v2714_v34 = vld [vmem:[#allocation3 + $0x50] sm:$0xff]  ;;  %v2713_v35 = vld [vmem:[#allocation3 + $0x48] sm:$0xff]  ;;  %v2712_v36 = vld [vmem:[#allocation3 + $0x40] sm:$0xff] }
  0x27   :  { %4606 = vset.pattern.permute.xlu1 %v4941_v10  ;;  %4607 = vset.pattern.permute.xlu0 %v4938_v1  ;;  %v5051_v37 = vld [vmem:[%s8269_s0 + $0x38] sm:$0xff]  ;;  %v2710_v39 = vld [vmem:[#allocation3 + $0x30] sm:$0xff]  ;;  %v2709_v40 = vld [vmem:[#allocation3 + $0x28] sm:$0xff] }
  0x28   :  { %2417 = vperm.xlu1 %4606, %v4994_v2   ;;  %2004 = vperm.xlu0 %4607, %v5005_v8   ;;  %v2711_v38 = vld [vmem:[#allocation3 + $0x38] sm:$0xff]  ;;  %v5059_v41 = vld [vmem:[%s8269_s0 + $0x40] sm:$0xff]  ;;  %v2706_v44 = vld [vmem:[#allocation3 + $0x10] sm:$0xff] }
  0x29   :  { %2774 = vmatprep.subr.mxu0 %v2729_v14  ;;  %v2708_v42 = vld [vmem:[#allocation3 + $0x20] sm:$0xff]  ;;  %v2707_v43 = vld [vmem:[#allocation3 + $0x18] sm:$0xff]  ;;  %v2705_v45 = vld [vmem:[#allocation3 + $0x8] sm:$0xff] }
  0x2a   :  { %2775 = vmatpush1.msra.mxu0 %v2728_v15  ;;  %v5066_v46 = vld [vmem:[%s8269_s0 + $0x48] sm:$0xff]  ;;  %v2704_v47 = vld [vmem:[#allocation3] sm:$0xff]  ;;  %v2767_v48 = vld [vmem:[#allocation3 + $0x1f8] sm:$0xff] }
  0x2b   :  { %2776 = vmatprep.subr.mxu0 %v2727_v16  ;;  %v2766_v49 = vld [vmem:[#allocation3 + $0x1f0] sm:$0xff]  ;;  %v2765_v50 = vld [vmem:[#allocation3 + $0x1e8] sm:$0xff]  ;;  %v2764_v52 = vld [vmem:[#allocation3 + $0x1e0] sm:$0xff] }
  0x2c   :  { %4608 = vset.pattern.permute.xlu1 %v4940_v4  ;;  %2007 = vperm.xlu0 %4607, %v5013_v13   ;;  %v5073_v51 = vld [vmem:[%s8269_s0 + $0x50] sm:$0xff]  ;;  %v2763_v53 = vld [vmem:[#allocation3 + $0x1d8] sm:$0xff]  ;;  %v2761_v55 = vld [vmem:[#allocation3 + $0x1c8] sm:$0xff] }
  0x2d   :  { %2084 = vperm.xlu1 %4608, %v5005_v8   ;;  %2777 = vmatpush1.msra.mxu0 %v2726_v18  ;;  %v2762_v54 = vld [vmem:[#allocation3 + $0x1d0] sm:$0xff]  ;;  %v5081_v56 = vld [vmem:[%s8269_s0 + $0x58] sm:$0xff]  ;;  %v2760_v57 = vld [vmem:[#allocation3 + $0x1c0] sm:$0xff] }
  0x2e   :  { %2778 = vmatprep.subr.mxu0 %v2725_v19  ;;  %v2759_v58 = vld [vmem:[#allocation3 + $0x1b8] sm:$0xff]  ;;  %v2758_v59 = vld [vmem:[#allocation3 + $0x1b0] sm:$0xff]  ;;  %v5089_v60 = vld [vmem:[%s8269_s0 + $0x60] sm:$0xff] }
  0x2f   :  { %2779 = vmatpush1.msra.mxu0 %v2724_v20  ;;  %v2757_v61 = vld [vmem:[#allocation3 + $0x1a8] sm:$0xff]  ;;  %v2756_v62 = vld [vmem:[#allocation3 + $0x1a0] sm:$0xff]  ;;  %v2755_v63 = vld [vmem:[#allocation3 + $0x198] sm:$0xff] }
  0x30   :  { %2010 = vperm.xlu0 %4607, %v5021_v17   ;;  %2780 = vmatprep.subr.mxu0 %v2723_v21  ;;  %v5097_v1 = vld [vmem:[%s8269_s0 + $0x68] sm:$0xff]  ;;  %v2754_v5 = vld [vmem:[#allocation3 + $0x190] sm:$0xff]  ;;  %v2752_v7 = vld [vmem:[#allocation3 + $0x180] sm:$0xff] }
  0x31   :  { %4609 = vset.pattern.permute.xlu1 %v4942_v22  ;;  %2781 = vmatpush1.msra.mxu0 %v2722_v24  ;;  %v2753_v6 = vld [vmem:[#allocation3 + $0x188] sm:$0xff]  ;;  %v2751_v9 = vld [vmem:[#allocation3 + $0x178] sm:$0xff]  ;;  %v5104_v11 = vld [vmem:[%s8269_s0 + $0x70] sm:$0xff] }
  0x32   :  { %2529 = vperm.xlu1 %4609, %v4994_v2   ;;  %2782 = vmatprep.subr.mxu0 %v2721_v25  ;;  %v2750_v12 = vld [vmem:[#allocation3 + $0x170] sm:$0xff]  ;;  %v2749_v14 = vld [vmem:[#allocation3 + $0x168] sm:$0xff]  ;;  %v2748_v15 = vld [vmem:[#allocation3 + $0x160] sm:$0xff] }
  0x33   :  { %2783 = vmatpush1.msra.mxu0 %v2720_v26  ;;  %v2747_v16 = vld [vmem:[#allocation3 + $0x158] sm:$0xff]  ;;  %v2746_v19 = vld [vmem:[#allocation3 + $0x150] sm:$0xff]  ;;  %v2745_v20 = vld [vmem:[#allocation3 + $0x148] sm:$0xff] }
  0x34   :  { %2013 = vperm.xlu0 %4607, %v5028_v23   ;;  %2784 = vmatprep.subr.mxu0 %v2719_v27  ;;  %v5111_v18 = vld [vmem:[%s8269_s0 + $0x78] sm:$0xff]  ;;  %v2744_v21 = vld [vmem:[#allocation3 + $0x140] sm:$0xff]  ;;  %v2742_v25 = vld [vmem:[#allocation3 + $0x130] sm:$0xff] }
  0x35   :  { %2785 = vmatpush1.msra.mxu0 %v2718_v29  ;;  %v2743_v24 = vld [vmem:[#allocation3 + $0x138] sm:$0xff]  ;;  %v2741_v26 = vld [vmem:[#allocation3 + $0x128] sm:$0xff]  ;;  %v2740_v27 = vld [vmem:[#allocation3 + $0x120] sm:$0xff] }
  0x36   :  { %4610 = vset.pattern.permute.xlu1 %v4939_v3  ;;  %2786 = vmatprep.subr.mxu0 %v2717_v30  ;;  %v2739_v29 = vld [vmem:[#allocation3 + $0x118] sm:$0xff]  ;;  %v2738_v30 = vld [vmem:[#allocation3 + $0x110] sm:$0xff] }
  0x37   :  { %2308 = vperm.xlu1 %4610, %v5005_v8   ;;  %2787 = vmatpush1.msra.mxu0 %v2716_v31  ;;  %v2737_v31 = vld [vmem:[#allocation3 + $0x108] sm:$0xff] }
  0x38   :  { %2016 = vperm.xlu0 %4607, %v5035_v28   ;;  %2788 = vmatprep.subr.mxu0 %v2715_v32  ;;  %v2736_v32 = vld [vmem:[#allocation3 + $0x100] sm:$0xff] }
  0x39   :  { %2789 = vmatpush1.msra.mxu0 %v2714_v34 }
  0x3a   :  { %2790 = vmatprep.subr.mxu0 %v2713_v35 }
  0x3b   :  { %4611 = vset.pattern.permute.xlu1 %v4941_v10  ;;  %2791 = vmatpush1.msra.mxu0 %v2712_v36 }
  0x3c   :  { %2420 = vperm.xlu1 %4611, %v5005_v8   ;;  %2019 = vperm.xlu0 %4607, %v5043_v33  }
  0x3d   :  { %2792 = vmatprep.subr.mxu0 %v2711_v38 }
  0x3e   :  { %2793 = vmatpush1.msra.mxu0 %v2710_v39 }
  0x3f   :  { %2794 = vmatprep.subr.mxu0 %v2709_v40 }
  0x40   :  { %4612 = vset.pattern.permute.xlu1 %v4940_v4  ;;  %2022 = vperm.xlu0 %4607, %v5051_v37  }
  0x41   :  { %2087 = vperm.xlu1 %4612, %v5013_v13   ;;  %2795 = vmatpush1.msra.mxu0 %v2708_v42 }
  0x42   :  { %2796 = vmatprep.subr.mxu0 %v2707_v43 }
  0x43   :  { %2797 = vmatpush1.msra.mxu0 %v2706_v44 }
  0x44   :  { %2025 = vperm.xlu0 %4607, %v5059_v41   ;;  %2798 = vmatprep.subr.mxu0 %v2705_v45 }
  0x45   :  { %4613 = vset.pattern.permute.xlu1 %v4942_v22  ;;  %2799 = vmatpush1.msra.mxu0 %v2704_v47 }
  0x46   :  { %2532 = vperm.xlu1 %4613, %v5005_v8   ;;  %2800 = vmatprep.subr.mxu0 %v2767_v48 }
  0x47   :  { %2801 = vmatpush2.msra.mxu0 %v2766_v49 }
  0x48   :  { %2028 = vperm.xlu0 %4607, %v5066_v46   ;;  %2802 = vmatprep.subr.mxu0 %v2765_v50  ;;  %v4943_v50 = vmov 0.0  }
  0x49   :  { %2803 = vmatpush2.msra.mxu0 %v2764_v52 }
  0x4a   :  { %4614 = vset.pattern.permute.xlu1 %v4939_v3  ;;  %2804 = vmatprep.subr.mxu0 %v2763_v53 }
  0x4b   :  { %2311 = vperm.xlu1 %4614, %v5013_v13   ;;  %2805 = vmatpush2.msra.mxu0 %v2762_v54 }
  0x4c   :  { %2031 = vperm.xlu0 %4607, %v5073_v51   ;;  %2806 = vmatprep.subr.mxu0 %v2761_v55 }
  0x4d   :  { %2807 = vmatpush2.msra.mxu0 %v2760_v57 }
  0x4e   :  { %2808 = vmatprep.subr.mxu0 %v2759_v58 }
  0x4f   :  { %4615 = vset.pattern.permute.xlu1 %v4941_v10  ;;  %2809 = vmatpush2.msra.mxu0 %v2758_v59 }
  0x50   :  { %2423 = vperm.xlu1 %4615, %v5013_v13   ;;  %2034 = vperm.xlu0 %4607, %v5081_v56  }
  0x51   :  { %2810 = vmatprep.subr.mxu0 %v2757_v61 }
  0x52   :  { %2811 = vmatpush2.msra.mxu0 %v2756_v62 }
  0x53   :  { %2812 = vmatprep.subr.mxu0 %v2755_v63 }
  0x54   :  { %4616 = vset.pattern.permute.xlu1 %v4940_v4  ;;  %2037 = vperm.xlu0 %4607, %v5089_v60  }
  0x55   :  { %2090 = vperm.xlu1 %4616, %v5021_v17   ;;  %2813 = vmatpush2.msra.mxu0 %v2754_v5 }
  0x56   :  { %2814 = vmatprep.subr.mxu0 %v2753_v6 }
  0x57   :  { %2815 = vmatpush2.msra.mxu0 %v2752_v7 }
  0x58   :  { %2040 = vperm.xlu0 %4607, %v5097_v1   ;;  %2816 = vmatprep.subr.mxu0 %v2751_v9 }
  0x59   :  { %4617 = vset.pattern.permute.xlu1 %v4942_v22  ;;  %2817 = vmatpush2.msra.mxu0 %v2750_v12 }
  0x5a   :  { %2535 = vperm.xlu1 %4617, %v5013_v13   ;;  %2818 = vmatprep.subr.mxu0 %v2749_v14 }
  0x5b   :  { %2819 = vmatpush2.msra.mxu0 %v2748_v15 }
  0x5c   :  { %2043 = vperm.xlu0 %4607, %v5104_v11   ;;  %2820 = vmatprep.subr.mxu0 %v2747_v16 }
  0x5d   :  { %2821 = vmatpush2.msra.mxu0 %v2746_v19 }
  0x5e   :  { %4618 = vset.pattern.permute.xlu1 %v4939_v3  ;;  %2822 = vmatprep.subr.mxu0 %v2745_v20 }
  0x5f   :  { %2314 = vperm.xlu1 %4618, %v5021_v17   ;;  %2823 = vmatpush2.msra.mxu0 %v2744_v21 }
  0x60   :  { %2046 = vperm.xlu0 %4607, %v5111_v18   ;;  %2824 = vmatprep.subr.mxu0 %v2743_v24 }
  0x61   :  { %2825 = vmatpush2.msra.mxu0 %v2742_v25 }
  0x62   :  { %2826 = vmatprep.subr.mxu0 %v2741_v26 }
  0x63   :  { %4619 = vset.pattern.permute.xlu1 %v4941_v10  ;;  %2827 = vmatpush2.msra.mxu0 %v2740_v27  ;;  %v4944_v27 = vmov 0  }
  0x64   :  { %2426 = vperm.xlu1 %4619, %v5021_v17   ;;  %4664 = vset.pattern.permute.xlu0 %v4937_v0  ;;  %v64_v0 = vlaneseq }
  0x65   :  { %2196 = vperm.xlu0 %4664, %v5005_v8   ;;  %2828 = vmatprep.subr.mxu0 %v2739_v29 }
  0x66   :  { %2829 = vmatpush2.msra.mxu0 %v2738_v30  ;;  %v5155_v36 = vand.u32 127, %v64_v0 }
  0x67   :  { %2830 = vmatprep.subr.mxu0 %v2737_v31 }
  0x68   :  { %4620 = vset.pattern.permute.xlu1 %v4940_v4  ;;  %2831 = vmatpush2.msra.mxu0 %v2736_v32  ;;  %v5160_v40 = vadd.s32 128, %v5155_v36  ;;  %v4945_v32 = vmov 2  }
  0x69   :  { %2093 = vperm.xlu1 %4620, %v5028_v23   ;;  %2199 = vperm.xlu0 %4664, %v5013_v13  }
  0x6d   :  { %4621 = vset.pattern.permute.xlu1 %v4942_v22  ;;  %2202 = vperm.xlu0 %4664, %v5021_v17  }
  0x6e   :  { %2538 = vperm.xlu1 %4621, %v5021_v17  }
  0x71   :  { %2205 = vperm.xlu0 %4664, %v5028_v23  }
  0x72   :  { %4622 = vset.pattern.permute.xlu1 %v4939_v3 }
  0x73   :  { %2317 = vperm.xlu1 %4622, %v5028_v23  }
  0x75   :  { %2208 = vperm.xlu0 %4664, %v5035_v28  }
  0x77   :  { %4623 = vset.pattern.permute.xlu1 %v4941_v10 }
  0x78   :  { %2429 = vperm.xlu1 %4623, %v5028_v23  }
  0x79   :  { %2211 = vperm.xlu0 %4664, %v5043_v33  }
  0x7c   :  { %4624 = vset.pattern.permute.xlu1 %v4940_v4 }
  0x7d   :  { %2096 = vperm.xlu1 %4624, %v5035_v28   ;;  %2214 = vperm.xlu0 %4664, %v5051_v37  }
  0x81   :  { %4625 = vset.pattern.permute.xlu1 %v4942_v22  ;;  %2217 = vperm.xlu0 %4664, %v5059_v41  }
  0x82   :  { %2541 = vperm.xlu1 %4625, %v5028_v23  }
  0x85   :  { %2220 = vperm.xlu0 %4664, %v5066_v46  }
  0x86   :  { %4626 = vset.pattern.permute.xlu1 %v4939_v3 }
  0x87   :  { %2320 = vperm.xlu1 %4626, %v5035_v28  }
  0x89   :  { %2223 = vperm.xlu0 %4664, %v5073_v51  }
  0x8b   :  { %4627 = vset.pattern.permute.xlu1 %v4941_v10 }
  0x8c   :  { %2432 = vperm.xlu1 %4627, %v5035_v28  }
  0x8d   :  { %2226 = vperm.xlu0 %4664, %v5081_v56  }
  0x90   :  { %4628 = vset.pattern.permute.xlu1 %v4940_v4 }
  0x91   :  { %2099 = vperm.xlu1 %4628, %v5043_v33   ;;  %2229 = vperm.xlu0 %4664, %v5089_v60  }
  0x95   :  { %4629 = vset.pattern.permute.xlu1 %v4942_v22  ;;  %2232 = vperm.xlu0 %4664, %v5097_v1  }
  0x96   :  { %2544 = vperm.xlu1 %4629, %v5035_v28  }
  0x99   :  { %v2194_v34 = vpop.permute.xlu1 %2193  ;;  %v2002_v35 = vpop.permute.xlu0 %2001  ;;  %2235 = vperm.xlu0 %4664, %v5104_v11  }
  0x9a   :  { %4630 = vset.pattern.permute.xlu1 %v4939_v3  ;;  %vm2049_vm0 = vcmp.eq.s32.totalorder %v5160_v40, %v2002_v35  ;;  %vm2048_vm2 = vcmp.eq.s32.totalorder %v5155_v36, %v2002_v35  ;;  %vm2241_vm5 = vcmp.eq.s32.totalorder %v5160_v40, %v2194_v34  ;;  %vm2240_vm8 = vcmp.eq.s32.totalorder %v5155_v36, %v2194_v34 }
  0x9b   :  { %2323 = vperm.xlu1 %4630, %v5043_v33  }
  0x9d   :  { %2238 = vperm.xlu0 %4664, %v5111_v18  }
  0x9e   :  { %v2306_v38 = vpop.permute.xlu1 %2305  ;;  %v2082_v39 = vpop.permute.xlu0 %2081 }
  0x9f   :  { %4631 = vset.pattern.permute.xlu1 %v4941_v10  ;;  %vm2129_vm1 = vcmp.eq.s32.totalorder %v5160_v40, %v2082_v39  ;;  %vm2128_vm3 = vcmp.eq.s32.totalorder %v5155_v36, %v2082_v39  ;;  %vm2353_vm10 = vcmp.eq.s32.totalorder %v5160_v40, %v2306_v38  ;;  %vm2352_vm14 = vcmp.eq.s32.totalorder %v5155_v36, %v2306_v38 }
  0xa0   :  { %2435 = vperm.xlu1 %4631, %v5043_v33   ;;  %vm2161_vm4 = vmor %vm2049_vm0, %vm2129_vm1 }
  0xa1   :  { %4669 = vset.pattern.permute.xlu0 %v4942_v22  ;;  %vm2160_vm6 = vmor %vm2048_vm2, %vm2128_vm3 }
  0xa2   :  { %2574 = vperm.xlu0 %4669, %v5111_v18   ;;  %vm2273_vm7 = vmor %vm2161_vm4, %vm2241_vm5 }
  0xa3   :  { %v2418_v42 = vpop.permute.xlu1 %2417  ;;  %v5167_v43 = vpop.permute.xlu0 %2004  ;;  %vm2272_vm11 = vmor %vm2160_vm6, %vm2240_vm8 }
  0xa4   :  { %4632 = vset.pattern.permute.xlu1 %v4940_v4  ;;  %vm2465_vm9 = vcmp.eq.s32.totalorder %v5160_v40, %v2418_v42  ;;  %vm2464_vm12 = vcmp.eq.s32.totalorder %v5155_v36, %v2418_v42  ;;  %vm2385_vm13 = vmor %vm2273_vm7, %vm2353_vm10  ;;  %vm2051_vm6 = vcmp.eq.s32.totalorder %v5160_v40, %v5167_v43 }
  0xa5   :  { %2102 = vperm.xlu1 %4632, %v5051_v37   ;;  %vm2497_vm15 = vmor %vm2385_vm13, %vm2465_vm9  ;;  %vm2050_vm9 = vcmp.eq.s32.totalorder %v5155_v36, %v5167_v43 }
  0xa6   :  { %vm2384_vm0 = vmor %vm2272_vm11, %vm2352_vm14  ;;  %4672 = vset.pattern.permute.xlu0 %v4944_v27 }
  0xa7   :  { %v5174_v44 = vpop.permute.xlu0 %2007  ;;  %vm2496_vm3 = vmor %vm2384_vm0, %vm2464_vm12  ;;  %181 = vperm.xlu0 %4672, %v4994_v2  }
  0xa8   :  { %v5176_v45 = vpop.permute.xlu1 %2084  ;;  %vm2053_vm12 = vcmp.eq.s32.totalorder %v5160_v40, %v5174_v44 }
  0xa9   :  { %4633 = vset.pattern.permute.xlu1 %v4942_v22  ;;  %vm2131_vm7 = vcmp.eq.s32.totalorder %v5160_v40, %v5176_v45  ;;  %vm2130_vm10 = vcmp.eq.s32.totalorder %v5155_v36, %v5176_v45 }
  0xaa   :  { %2547 = vperm.xlu1 %4633, %v5043_v33   ;;  %vm2163_vm11 = vmor %vm2051_vm6, %vm2131_vm7 }
  0xab   :  { %v5184_v47 = vpop.permute.xlu0 %2010  ;;  %184 = vperm.xlu0 %4672, %v5005_v8  }
  0xad   :  { %v2530_v48 = vpop.permute.xlu1 %2529 }
  0xae   :  { %vm2576_vm1 = vcmp.eq.s32.totalorder %v5155_v36, %v2530_v48  ;;  %4634 = vset.pattern.permute.xlu1 %v4939_v3  ;;  %vm2577_vm2 = vcmp.eq.s32.totalorder %v5160_v40, %v2530_v48 }
  0xaf   :  { %2326 = vperm.xlu1 %4634, %v5051_v37   ;;  %v5191_v49 = vpop.permute.xlu0 %2013  ;;  %vm2609_vm4 = vmor %vm2497_vm15, %vm2577_vm2  ;;  %4676 = vset.pattern.permute.xlu0 %v4945_v32 }
  0xb0   :  { %v4203_v52 = vsel %vm2609_vm4, 1.0, %v4943_v50  ;;  %vm2608_vm5 = vmor %vm2496_vm3, %vm2576_vm1  ;;  %123 = vperm.xlu0 %4676, %v5013_v13  }
  0xb1   :  { %2832 = vmatprep.mubr.f32.mxu0 %v4203_v52  ;;  %v4202_v53 = vsel %vm2608_vm5, 1.0, %v4943_v50  ;;  %vm2162_vm1 = vmor %vm2050_vm9, %vm2130_vm10 }
  0xb2   :  { %v5195_v54 = vpop.permute.xlu1 %2308  ;;  %2833 = vmatmul.mubr.f32.vlgmr.msra.gmra.mxu0 %v4202_v53 }
  0xb3   :  { %4635 = vset.pattern.permute.xlu1 %v4941_v10  ;;  %v5198_v55 = vpop.permute.xlu0 %2016  ;;  %vm2355_vm13 = vcmp.eq.s32.totalorder %v5160_v40, %v5195_v54  ;;  %vm2354_vm10 = vcmp.eq.s32.totalorder %v5155_v36, %v5195_v54 }
  0xb4   :  { %2438 = vperm.xlu1 %4635, %v5051_v37   ;;  %126 = vperm.xlu0 %4676, %v5021_v17  }
  0xb7   :  { %v5201_v57 = vpop.permute.xlu1 %2420  ;;  %v5203_v58 = vpop.permute.xlu0 %2019 }
  0xb8   :  { %4636 = vset.pattern.permute.xlu1 %v4940_v4  ;;  %vm2467_vm3 = vcmp.eq.s32.totalorder %v5160_v40, %v5201_v57  ;;  %138 = vperm.xlu0 %4676, %v5051_v37  }
  0xb9   :  { %2105 = vperm.xlu1 %4636, %v5059_v41  }
  0xbb   :  { %v5207_v59 = vpop.permute.xlu0 %2022 }
  0xbc   :  { %v5209_v61 = vpop.permute.xlu1 %2087  ;;  %141 = vperm.xlu0 %4676, %v5059_v41  }
  0xbd   :  { %4637 = vset.pattern.permute.xlu1 %v4942_v22  ;;  %vm2133_vm14 = vcmp.eq.s32.totalorder %v5160_v40, %v5209_v61 }
  0xbe   :  { %2550 = vperm.xlu1 %4637, %v5051_v37   ;;  %vm2165_vm4 = vmor %vm2053_vm12, %vm2133_vm14  ;;  %vm2052_vm12 = vcmp.eq.s32.totalorder %v5155_v36, %v5174_v44  ;;  %vm2132_vm14 = vcmp.eq.s32.totalorder %v5155_v36, %v5209_v61 }
  0xbf   :  { %v5213_v62 = vpop.permute.xlu0 %2025 }
  0xc1   :  { %v5215_v63 = vpop.permute.xlu1 %2532 }
  0xc2   :  { %4638 = vset.pattern.permute.xlu1 %v4939_v3 }
  0xc3   :  { %2329 = vperm.xlu1 %4638, %v5059_v41   ;;  %v5219_v5 = vpop.permute.xlu0 %2028 }
  0xc6   :  { %v5221_v6 = vpop.permute.xlu1 %2311 }
  0xc7   :  { %4639 = vset.pattern.permute.xlu1 %v4941_v10  ;;  %v5224_v7 = vpop.permute.xlu0 %2031 }
  0xc8   :  { %2441 = vperm.xlu1 %4639, %v5059_v41  }
  0xcb   :  { %v5227_v9 = vpop.permute.xlu1 %2423  ;;  %v5229_v12 = vpop.permute.xlu0 %2034 }
  0xcc   :  { %4640 = vset.pattern.permute.xlu1 %v4940_v4 }
  0xcd   :  { %2108 = vperm.xlu1 %4640, %v5066_v46  }
  0xcf   :  { %v5233_v14 = vpop.permute.xlu0 %2037 }
  0xd0   :  { %v5235_v15 = vpop.permute.xlu1 %2090 }
  0xd1   :  { %4641 = vset.pattern.permute.xlu1 %v4942_v22 }
  0xd2   :  { %2553 = vperm.xlu1 %4641, %v5059_v41   ;;  %v4946_v41 = vmov 1  }
  0xd3   :  { %v5239_v16 = vpop.permute.xlu0 %2040  ;;  %4688 = vset.pattern.permute.xlu0 %v4946_v41 }
  0xd4   :  { %81 = vperm.xlu0 %4688, %v5028_v23  }
  0xd5   :  { %v5241_v19 = vpop.permute.xlu1 %2535 }
  0xd6   :  { %4642 = vset.pattern.permute.xlu1 %v4939_v3 }
  0xd7   :  { %2332 = vperm.xlu1 %4642, %v5066_v46   ;;  %v5245_v20 = vpop.permute.xlu0 %2043 }
  0xd8   :  { %84 = vperm.xlu0 %4688, %v5035_v28  }
  0xda   :  { %v5247_v21 = vpop.permute.xlu1 %2314 }
  0xdb   :  { %4643 = vset.pattern.permute.xlu1 %v4941_v10  ;;  %v5250_v24 = vpop.permute.xlu0 %2046 }
  0xdc   :  { %2444 = vperm.xlu1 %4643, %v5066_v46   ;;  %96 = vperm.xlu0 %4688, %v5066_v46  }
  0xdf   :  { %v5257_v25 = vpop.permute.xlu1 %2426 }
  0xe0   :  { %4644 = vset.pattern.permute.xlu1 %v4940_v4  ;;  %v2197_v26 = vpop.permute.xlu0 %2196  ;;  %99 = vperm.xlu0 %4688, %v5073_v51  }
  0xe1   :  { %vm2243_vm8 = vcmp.eq.s32.totalorder %v5160_v40, %v2197_v26  ;;  %2111 = vperm.xlu1 %4644, %v5073_v51   ;;  %vm2242_vm2 = vcmp.eq.s32.totalorder %v5155_v36, %v2197_v26 }
  0xe2   :  { %vm2275_vm15 = vmor %vm2163_vm11, %vm2243_vm8  ;;  %vm2579_vm8 = vcmp.eq.s32.totalorder %v5160_v40, %v5215_v63 }
  0xe3   :  { %vm2387_vm0 = vmor %vm2275_vm15, %vm2355_vm13  ;;  %vm2466_vm13 = vcmp.eq.s32.totalorder %v5155_v36, %v5201_v57 }
  0xe4   :  { %v5274_v29 = vpop.permute.xlu1 %2093  ;;  %v2200_v30 = vpop.permute.xlu0 %2199  ;;  %vm2499_vm6 = vmor %vm2387_vm0, %vm2467_vm3  ;;  %vm2578_vm0 = vcmp.eq.s32.totalorder %v5155_v36, %v5215_v63  ;;  %vm2054_vm3 = vcmp.eq.s32.totalorder %v5155_v36, %v5184_v47  ;;  %4692 = vset.pattern.permute.xlu0 %v4944_v27 }
  0xe5   :  { %4645 = vset.pattern.permute.xlu1 %v4942_v22  ;;  %vm2245_vm5 = vcmp.eq.s32.totalorder %v5160_v40, %v2200_v30  ;;  %vm2274_vm7 = vmor %vm2162_vm1, %vm2242_vm2  ;;  %vm2244_vm1 = vcmp.eq.s32.totalorder %v5155_v36, %v2200_v30  ;;  %196 = vperm.xlu0 %4692, %v5035_v28  }
  0xe6   :  { %2556 = vperm.xlu1 %4645, %v5066_v46   ;;  %vm5285_vm9 = vmor %vm2165_vm4, %vm2245_vm5  ;;  %vm2134_vm4 = vcmp.eq.s32.totalorder %v5155_v36, %v5235_v15 }
  0xe7   :  { %vm2611_vm11 = vmor %vm2499_vm6, %vm2579_vm8 }
  0xe8   :  { %v4205_v8 = vsel %vm2611_vm11, 1.0, %v4943_v50  ;;  %vm2386_vm15 = vmor %vm2274_vm7, %vm2354_vm10  ;;  %vm2357_vm7 = vcmp.eq.s32.totalorder %v5160_v40, %v5221_v6  ;;  %vm2469_vm10 = vcmp.eq.s32.totalorder %v5160_v40, %v5227_v9  ;;  %v2203_v38 = vpop.permute.xlu0 %2202 }
  0xe9   :  { %v5289_v31 = vpop.permute.xlu1 %2538  ;;  %2838 = vmatprep.mubr.f32.mxu0 %v4205_v8  ;;  %vm2498_vm2 = vmor %vm2386_vm15, %vm2466_vm13  ;;  %vm2581_vm13 = vcmp.eq.s32.totalorder %v5160_v40, %v5241_v19  ;;  %vm2356_vm15 = vcmp.eq.s32.totalorder %v5155_v36, %v5221_v6  ;;  %199 = vperm.xlu0 %4692, %v5043_v33  }
  0xea   :  { %4646 = vset.pattern.permute.xlu1 %v4939_v3  ;;  %vm2610_vm5 = vmor %vm2498_vm2, %vm2578_vm0  ;;  %vm2468_vm2 = vcmp.eq.s32.totalorder %v5155_v36, %v5227_v9 }
  0xeb   :  { %2335 = vperm.xlu1 %4646, %v5073_v51   ;;  %vm2164_vm6 = vmor %vm2052_vm12, %vm2132_vm14  ;;  %v4204_v0 = vsel %vm2610_vm5, 1.0, %v4943_v50  ;;  %vm2247_vm5 = vcmp.eq.s32.totalorder %v5160_v40, %v2203_v38 }
  0xec   :  { %vm5319_vm8 = vmor %vm2164_vm6, %vm2244_vm1  ;;  %2839 = vmatmul.mubr.f32.gmra.mxu0 %v4204_v0  ;;  %vm2055_vm1 = vcmp.eq.s32.totalorder %v5160_v40, %v5184_v47  ;;  %v2206_v37 = vpop.permute.xlu0 %2205 }
  0xed   :  { %vm5326_vm11 = vmor %vm2054_vm3, %vm2134_vm4  ;;  %vm2580_vm4 = vcmp.eq.s32.totalorder %v5155_v36, %v5241_v19  ;;  %211 = vperm.xlu0 %4692, %v5073_v51  }
  0xee   :  { %v5315_v34 = vpop.permute.xlu1 %2317  ;;  %vm2389_vm12 = vmor %vm5285_vm9, %vm2357_vm7  ;;  %vm2135_vm9 = vcmp.eq.s32.totalorder %v5160_v40, %v5235_v15  ;;  %vm2057_vm7 = vcmp.eq.s32.totalorder %v5160_v40, %v5191_v49 }
  0xef   :  { %4647 = vset.pattern.permute.xlu1 %v4941_v10  ;;  %vm2501_vm14 = vmor %vm2389_vm12, %vm2469_vm10  ;;  %vm2137_vm10 = vcmp.eq.s32.totalorder %v5160_v40, %v5274_v29 }
  0xf0   :  { %2447 = vperm.xlu1 %4647, %v5073_v51   ;;  %vm2613_vm0 = vmor %vm2501_vm14, %vm2581_vm13  ;;  %vm2246_vm13 = vcmp.eq.s32.totalorder %v5155_v36, %v2203_v38  ;;  %v4869_v38 = vld [vmem:[%s8269_s0 + $0x10] sm:$0xff] }
  0xf1   :  { %v4207_v17 = vsel %vm2613_vm0, 1.0, %v4943_v50  ;;  %vm2388_vm3 = vmor %vm5319_vm8, %vm2356_vm15  ;;  %vm2359_vm0 = vcmp.eq.s32.totalorder %v5160_v40, %v5247_v21  ;;  %214 = vperm.xlu0 %4692, %v5081_v56  }
  0xf2   :  { %2844 = vmatprep.mubr.f32.mxu0 %v4207_v17  ;;  %vm2500_vm6 = vmor %vm2388_vm3, %vm2468_vm2  ;;  %vm2583_vm3 = vcmp.eq.s32.totalorder %v5160_v40, %v5289_v31 }
  0xf3   :  { %v5347_v39 = vpop.permute.xlu1 %2429  ;;  %vm2612_vm12 = vmor %vm2500_vm6, %vm2580_vm4 }
  0xf4   :  { %4648 = vset.pattern.permute.xlu1 %v4940_v4  ;;  %vm2167_vm8 = vmor %vm2055_vm1, %vm2135_vm9  ;;  %v4206_v42 = vsel %vm2612_vm12, 1.0, %v4943_v50  ;;  %vm2471_vm1 = vcmp.eq.s32.totalorder %v5160_v40, %v5257_v25  ;;  %vm2056_vm12 = vcmp.eq.s32.totalorder %v5155_v36, %v5191_v49  ;;  %v2209_v49 = vpop.permute.xlu0 %2208 }
  0xf5   :  { %2114 = vperm.xlu1 %4648, %v5081_v56   ;;  %vm2279_vm14 = vmor %vm2167_vm8, %vm2247_vm5  ;;  %2845 = vmatmul.mubr.f32.gmra.mxu0 %v4206_v42  ;;  %vm2358_vm5 = vcmp.eq.s32.totalorder %v5155_v36, %v5247_v21  ;;  %vm2136_vm8 = vcmp.eq.s32.totalorder %v5155_v36, %v5274_v29 }
  0xf6   :  { %vm5364_vm15 = vmor %vm2057_vm7, %vm2137_vm10  ;;  %vm2249_vm7 = vcmp.eq.s32.totalorder %v5160_v40, %v2206_v37  ;;  %4697 = vset.pattern.permute.xlu0 %v4945_v32 }
  0xf7   :  { %vm2278_vm2 = vmor %vm5326_vm11, %vm2246_vm13  ;;  %vm2470_vm11 = vcmp.eq.s32.totalorder %v5155_v36, %v5257_v25  ;;  %vm2582_vm13 = vcmp.eq.s32.totalorder %v5155_v36, %v5289_v31  ;;  %153 = vperm.xlu0 %4697, %v5089_v60   ;;  %v4868_v31 = vld [vmem:[%s8269_s0 + $0x8] sm:$0xff] }
  0xf8   :  { %v5368_v44 = vpop.permute.xlu1 %2096  ;;  %vm2391_vm9 = vmor %vm2279_vm14, %vm2359_vm0  ;;  %vm2248_vm0 = vcmp.eq.s32.totalorder %v5155_v36, %v2206_v37  ;;  %v2212_v28 = vpop.permute.xlu0 %2211 }
  0xf9   :  { %4649 = vset.pattern.permute.xlu1 %v4942_v22  ;;  %vm2503_vm4 = vmor %vm2391_vm9, %vm2471_vm1  ;;  %vm2361_vm9 = vcmp.eq.s32.totalorder %v5160_v40, %v5315_v34 }
  0xfa   :  { %2559 = vperm.xlu1 %4649, %v5073_v51   ;;  %vm2615_vm6 = vmor %vm2503_vm4, %vm2583_vm3  ;;  %vm2473_vm4 = vcmp.eq.s32.totalorder %v5160_v40, %v5347_v39 }
  0xfb   :  { %v4209_v45 = vsel %vm2615_vm6, 1.0, %v4943_v50  ;;  %vm2390_vm10 = vmor %vm2278_vm2, %vm2358_vm5  ;;  %156 = vperm.xlu0 %4697, %v5097_v1  }
  0xfc   :  { %2850 = vmatprep.mubr.f32.mxu0 %v4209_v45  ;;  %vm2502_vm14 = vmor %vm2390_vm10, %vm2470_vm11  ;;  %vm2360_vm11 = vcmp.eq.s32.totalorder %v5155_v36, %v5315_v34  ;;  %vm2472_vm10 = vcmp.eq.s32.totalorder %v5155_v36, %v5347_v39  ;;  %v2215_v9 = vpop.permute.xlu0 %2214  ;;  %v4870_v39 = vld [vmem:[%s8269_s0 + $0x18] sm:$0xff] }
  0xfd   :  { %v2542_v47 = vpop.permute.xlu1 %2541  ;;  %vm2614_vm1 = vmor %vm2502_vm14, %vm2582_vm13  ;;  %vm2058_vm13 = vcmp.eq.s32.totalorder %v5155_v36, %v5198_v55 }
  0xfe   :  { %4650 = vset.pattern.permute.xlu1 %v4939_v3  ;;  %vm2281_vm2 = vmor %vm5364_vm15, %vm2249_vm7  ;;  %v4208_v48 = vsel %vm2614_vm1, 1.0, %v4943_v50  ;;  %vm2585_vm6 = vcmp.eq.s32.totalorder %v5160_v40, %v2542_v47  ;;  %vm2059_vm1 = vcmp.eq.s32.totalorder %v5160_v40, %v5198_v55 }
  0xff   :  { %2338 = vperm.xlu1 %4650, %v5081_v56   ;;  %vm2168_vm3 = vmor %vm2056_vm12, %vm2136_vm8  ;;  %2851 = vmatmul.mubr.f32.gmra.mxu0 %v4208_v48  ;;  %vm2584_vm8 = vcmp.eq.s32.totalorder %v5155_v36, %v2542_v47  ;;  %v4871_v47 = vld [vmem:[%s8269_s0 + $0x20] sm:$0xff] }
 0x100   :  { %vm2280_vm5 = vmor %vm2168_vm3, %vm2248_vm0  ;;  %vm2138_vm0 = vcmp.eq.s32.totalorder %v5155_v36, %v5368_v44  ;;  %4701 = vset.pattern.permute.xlu0 %v4946_v41  ;;  %v2218_v26 = vpop.permute.xlu0 %2217 }
 0x101   :  { %vm2393_vm15 = vmor %vm2281_vm2, %vm2361_vm9  ;;  %vm2139_vm2 = vcmp.eq.s32.totalorder %v5160_v40, %v5368_v44  ;;  %111 = vperm.xlu0 %4701, %v5104_v11  }
 0x102   :  { %v2321_v52 = vpop.permute.xlu1 %2320  ;;  %vm2505_vm7 = vmor %vm2393_vm15, %vm2473_vm4  ;;  %vm2251_vm15 = vcmp.eq.s32.totalorder %v5160_v40, %v2209_v49 }
 0x103   :  { %4651 = vset.pattern.permute.xlu1 %v4941_v10  ;;  %vm2617_vm12 = vmor %vm2505_vm7, %vm2585_vm6 }
 0x104   :  { %2450 = vperm.xlu1 %4651, %v5081_v56   ;;  %v4211_v23 = vsel %vm2617_vm12, 1.0, %v4943_v50  ;;  %vm2392_vm14 = vmor %vm2280_vm5, %vm2360_vm11  ;;  %vm2250_vm5 = vcmp.eq.s32.totalorder %v5155_v36, %v2209_v49  ;;  %vm2362_vm11 = vcmp.eq.s32.totalorder %v5155_v36, %v2321_v52 }
 0x105   :  { %2856 = vmatprep.mubr.f32.mxu0 %v4211_v23  ;;  %vm2504_vm9 = vmor %vm2392_vm14, %vm2472_vm10  ;;  %vm2363_vm10 = vcmp.eq.s32.totalorder %v5160_v40, %v2321_v52  ;;  %114 = vperm.xlu0 %4701, %v5111_v18   ;;  %v4872_v52 = vld [vmem:[%s8269_s0 + $0x28] sm:$0xff] }
 0x106   :  { %vm2616_vm3 = vmor %vm2504_vm9, %vm2584_vm8 }
 0x107   :  { %v2433_v53 = vpop.permute.xlu1 %2432  ;;  %vm2170_vm4 = vmor %vm2058_vm13, %vm2138_vm0  ;;  %v4210_v54 = vsel %vm2616_vm3, 1.0, %v4943_v50 }
 0x108   :  { %4652 = vset.pattern.permute.xlu1 %v4940_v4  ;;  %vm2171_vm6 = vmor %vm2059_vm1, %vm2139_vm2  ;;  %2857 = vmatmul.mubr.f32.gmra.mxu0 %v4210_v54  ;;  %vm2475_vm8 = vcmp.eq.s32.totalorder %v5160_v40, %v2433_v53  ;;  %vm2474_vm14 = vcmp.eq.s32.totalorder %v5155_v36, %v2433_v53  ;;  %v4873_v54 = vld [vmem:[%s8269_s0 + $0x30] sm:$0xff] }
 0x109   :  { %2117 = vperm.xlu1 %4652, %v5089_v60   ;;  %vm2282_vm7 = vmor %vm2170_vm4, %vm2250_vm5  ;;  %4705 = vset.pattern.permute.xlu0 %v4944_v27 }
 0x10a   :  { %vm2283_vm12 = vmor %vm2171_vm6, %vm2251_vm15  ;;  %vm2060_vm6 = vcmp.eq.s32.totalorder %v5155_v36, %v5203_v58  ;;  %226 = vperm.xlu0 %4705, %v5111_v18  }
 0x10b   :  { %vm2394_vm13 = vmor %vm2282_vm7, %vm2362_vm11  ;;  %vm2061_vm11 = vcmp.eq.s32.totalorder %v5160_v40, %v5203_v58 }
 0x10c   :  { %v2100_v55 = vpop.permute.xlu1 %2099  ;;  %vm2395_vm0 = vmor %vm2283_vm12, %vm2363_vm10  ;;  %vm2252_vm12 = vcmp.eq.s32.totalorder %v5155_v36, %v2212_v28 }
 0x10d   :  { %4653 = vset.pattern.permute.xlu1 %v4942_v22  ;;  %vm2507_vm1 = vmor %vm2395_vm0, %vm2475_vm8  ;;  %vm2140_vm15 = vcmp.eq.s32.totalorder %v5155_v36, %v2100_v55  ;;  %vm2141_vm7 = vcmp.eq.s32.totalorder %v5160_v40, %v2100_v55 }
 0x10e   :  { %2562 = vperm.xlu1 %4653, %v5081_v56   ;;  %vm2506_vm3 = vmor %vm2394_vm13, %vm2474_vm14  ;;  %vm2253_vm13 = vcmp.eq.s32.totalorder %v5160_v40, %v2212_v28  ;;  %4706 = vset.pattern.permute.xlu0 %v4942_v22 }
 0x10f   :  { %vm2172_vm10 = vmor %vm2060_vm6, %vm2140_vm15 }
 0x110   :  { %vm2173_vm8 = vmor %vm2061_vm11, %vm2141_vm7 }
 0x111   :  { %v2545_v46 = vpop.permute.xlu1 %2544  ;;  %vm2284_vm0 = vmor %vm2172_vm10, %vm2252_vm12 }
 0x112   :  { %vm2586_vm2 = vcmp.eq.s32.totalorder %v5155_v36, %v2545_v46  ;;  %vm2587_vm9 = vcmp.eq.s32.totalorder %v5160_v40, %v2545_v46  ;;  %4654 = vset.pattern.permute.xlu1 %v4939_v3 }
 0x113   :  { %2341 = vperm.xlu1 %4654, %v5089_v60   ;;  %vm2619_vm4 = vmor %vm2507_vm1, %vm2587_vm9 }
 0x114   :  { %v4213_v57 = vsel %vm2619_vm4, 1.0, %v4943_v50  ;;  %vm2618_vm5 = vmor %vm2506_vm3, %vm2586_vm2 }
 0x115   :  { %2862 = vmatprep.mubr.f32.mxu0 %v4213_v57  ;;  %v4212_v61 = vsel %vm2618_vm5, 1.0, %v4943_v50  ;;  %vm2285_vm2 = vmor %vm2173_vm8, %vm2253_vm13  ;;  %vm2062_vm8 = vcmp.eq.s32.totalorder %v5155_v36, %v5207_v59 }
 0x116   :  { %v2324_v63 = vpop.permute.xlu1 %2323  ;;  %2863 = vmatmul.mubr.f32.gmra.mxu0 %v4212_v61 }
 0x117   :  { %4655 = vset.pattern.permute.xlu1 %v4941_v10  ;;  %vm2364_vm14 = vcmp.eq.s32.totalorder %v5155_v36, %v2324_v63  ;;  %vm2365_vm1 = vcmp.eq.s32.totalorder %v5160_v40, %v2324_v63 }
 0x118   :  { %2453 = vperm.xlu1 %4655, %v5089_v60   ;;  %vm2396_vm3 = vmor %vm2284_vm0, %vm2364_vm14  ;;  %vm2063_vm14 = vcmp.eq.s32.totalorder %v5160_v40, %v5207_v59 }
 0x119   :  { %vm2397_vm5 = vmor %vm2285_vm2, %vm2365_vm1  ;;  %vm2254_vm2 = vcmp.eq.s32.totalorder %v5155_v36, %v2215_v9 }
 0x11b   :  { %v2436_v6 = vpop.permute.xlu1 %2435 }
 0x11c   :  { %4656 = vset.pattern.permute.xlu1 %v4940_v4  ;;  %vm2477_vm9 = vcmp.eq.s32.totalorder %v5160_v40, %v2436_v6  ;;  %vm2476_vm4 = vcmp.eq.s32.totalorder %v5155_v36, %v2436_v6 }
 0x11d   :  { %2120 = vperm.xlu1 %4656, %v5097_v1   ;;  %vm2509_vm6 = vmor %vm2397_vm5, %vm2477_vm9 }
 0x11e   :  { %vm2508_vm7 = vmor %vm2396_vm3, %vm2476_vm4  ;;  %vm2255_vm3 = vcmp.eq.s32.totalorder %v5160_v40, %v2215_v9 }
 0x120   :  { %v2103_v33 = vpop.permute.xlu1 %2102 }
 0x121   :  { %4657 = vset.pattern.permute.xlu1 %v4942_v22  ;;  %vm2142_vm13 = vcmp.eq.s32.totalorder %v5155_v36, %v2103_v33  ;;  %vm2143_vm0 = vcmp.eq.s32.totalorder %v5160_v40, %v2103_v33  ;;  %v4875_v33 = vld [vmem:[%s8269_s0 + $0x40] sm:$0xff] }
 0x122   :  { %2565 = vperm.xlu1 %4657, %v5089_v60   ;;  %vm2174_vm1 = vmor %vm2062_vm8, %vm2142_vm13 }
 0x123   :  { %vm2175_vm9 = vmor %vm2063_vm14, %vm2143_vm0 }
 0x124   :  { %vm2286_vm5 = vmor %vm2174_vm1, %vm2254_vm2 }
 0x125   :  { %v2548_v51 = vpop.permute.xlu1 %2547 }
 0x126   :  { %vm2588_vm15 = vcmp.eq.s32.totalorder %v5155_v36, %v2548_v51  ;;  %vm2589_vm11 = vcmp.eq.s32.totalorder %v5160_v40, %v2548_v51  ;;  %4658 = vset.pattern.permute.xlu1 %v4939_v3 }
 0x127   :  { %2344 = vperm.xlu1 %4658, %v5097_v1   ;;  %vm2621_vm10 = vmor %vm2509_vm6, %vm2589_vm11 }
 0x128   :  { %v4215_v56 = vsel %vm2621_vm10, 1.0, %v4943_v50  ;;  %vm2620_vm12 = vmor %vm2508_vm7, %vm2588_vm15 }
 0x129   :  { %2868 = vmatprep.mubr.f32.mxu0 %v4215_v56  ;;  %v4214_v60 = vsel %vm2620_vm12, 1.0, %v4943_v50  ;;  %vm2287_vm15 = vmor %vm2175_vm9, %vm2255_vm3  ;;  %vm2064_vm9 = vcmp.eq.s32.totalorder %v5155_v36, %v5213_v62 }
 0x12a   :  { %v2327_v58 = vpop.permute.xlu1 %2326  ;;  %2869 = vmatmul.mubr.f32.gmra.mxu0 %v4214_v60 }
 0x12b   :  { %4659 = vset.pattern.permute.xlu1 %v4941_v10  ;;  %vm2366_vm4 = vcmp.eq.s32.totalorder %v5155_v36, %v2327_v58  ;;  %vm2367_vm6 = vcmp.eq.s32.totalorder %v5160_v40, %v2327_v58 }
 0x12c   :  { %2456 = vperm.xlu1 %4659, %v5097_v1   ;;  %vm2398_vm7 = vmor %vm2286_vm5, %vm2366_vm4  ;;  %vm2065_vm4 = vcmp.eq.s32.totalorder %v5160_v40, %v5213_v62 }
 0x12d   :  { %vm2399_vm12 = vmor %vm2287_vm15, %vm2367_vm6  ;;  %vm2256_vm15 = vcmp.eq.s32.totalorder %v5155_v36, %v2218_v26 }
 0x12f   :  { %v2439_v15 = vpop.permute.xlu1 %2438 }
 0x130   :  { %4660 = vset.pattern.permute.xlu1 %v4940_v4  ;;  %vm2479_vm11 = vcmp.eq.s32.totalorder %v5160_v40, %v2439_v15  ;;  %vm2478_vm10 = vcmp.eq.s32.totalorder %v5155_v36, %v2439_v15 }
 0x131   :  { %2123 = vperm.xlu1 %4660, %v5104_v11   ;;  %vm2511_vm8 = vmor %vm2399_vm12, %vm2479_vm11 }
 0x132   :  { %vm2510_vm0 = vmor %vm2398_vm7, %vm2478_vm10  ;;  %vm2257_vm7 = vcmp.eq.s32.totalorder %v5160_v40, %v2218_v26 }
 0x134   :  { %v2106_v19 = vpop.permute.xlu1 %2105 }
 0x135   :  { %4661 = vset.pattern.permute.xlu1 %v4942_v22  ;;  %vm2144_vm3 = vcmp.eq.s32.totalorder %v5155_v36, %v2106_v19  ;;  %vm2145_vm5 = vcmp.eq.s32.totalorder %v5160_v40, %v2106_v19 }
 0x136   :  { %2568 = vperm.xlu1 %4661, %v5097_v1   ;;  %vm2176_vm6 = vmor %vm2064_vm9, %vm2144_vm3 }
 0x137   :  { %vm2177_vm11 = vmor %vm2065_vm4, %vm2145_vm5 }
 0x138   :  { %vm2288_vm12 = vmor %vm2176_vm6, %vm2256_vm15 }
 0x139   :  { %v2551_v59 = vpop.permute.xlu1 %2550 }
 0x13a   :  { %vm2590_vm13 = vcmp.eq.s32.totalorder %v5155_v36, %v2551_v59  ;;  %vm2591_vm14 = vcmp.eq.s32.totalorder %v5160_v40, %v2551_v59  ;;  %4662 = vset.pattern.permute.xlu1 %v4939_v3  ;;  %v4877_v59 = vld [vmem:[%s8269_s0 + $0x50] sm:$0xff] }
 0x13b   :  { %2347 = vperm.xlu1 %4662, %v5104_v11   ;;  %vm2623_vm1 = vmor %vm2511_vm8, %vm2591_vm14 }
 0x13c   :  { %v4217_v1 = vsel %vm2623_vm1, 1.0, %v4943_v50  ;;  %vm2622_vm2 = vmor %vm2510_vm0, %vm2590_vm13 }
 0x13d   :  { %2874 = vmatprep.mubr.f32.mxu0 %v4217_v1  ;;  %v4216_v21 = vsel %vm2622_vm2, 1.0, %v4943_v50  ;;  %vm2289_vm13 = vmor %vm2177_vm11, %vm2257_vm7  ;;  %vm2066_vm11 = vcmp.eq.s32.totalorder %v5155_v36, %v5219_v5 }
 0x13e   :  { %v2330_v25 = vpop.permute.xlu1 %2329  ;;  %2875 = vmatmul.mubr.f32.gmra.mxu0 %v4216_v21 }
 0x13f   :  { %4663 = vset.pattern.permute.xlu1 %v4941_v10  ;;  %vm2368_vm10 = vcmp.eq.s32.totalorder %v5155_v36, %v2330_v25  ;;  %vm2369_vm8 = vcmp.eq.s32.totalorder %v5160_v40, %v2330_v25  ;;  %v4878_v25 = vld [vmem:[%s8269_s0 + $0x58] sm:$0xff] }
 0x140   :  { %2459 = vperm.xlu1 %4663, %v5104_v11   ;;  %vm2400_vm0 = vmor %vm2288_vm12, %vm2368_vm10  ;;  %vm2067_vm10 = vcmp.eq.s32.totalorder %v5160_v40, %v5219_v5 }
 0x141   :  { %vm2401_vm2 = vmor %vm2289_vm13, %vm2369_vm8 }
 0x143   :  { %v2442_v29 = vpop.permute.xlu1 %2441 }
 0x144   :  { %4665 = vset.pattern.permute.xlu1 %v4940_v4  ;;  %vm2481_vm14 = vcmp.eq.s32.totalorder %v5160_v40, %v2442_v29  ;;  %vm2480_vm1 = vcmp.eq.s32.totalorder %v5155_v36, %v2442_v29  ;;  %v4879_v29 = vld [vmem:[%s8269_s0 + $0x60] sm:$0xff] }
 0x145   :  { %2126 = vperm.xlu1 %4665, %v5111_v18   ;;  %vm2513_vm9 = vmor %vm2401_vm2, %vm2481_vm14 }
 0x146   :  { %vm2512_vm5 = vmor %vm2400_vm0, %vm2480_vm1 }
 0x148   :  { %v2109_v30 = vpop.permute.xlu1 %2108 }
 0x149   :  { %4666 = vset.pattern.permute.xlu1 %v4942_v22  ;;  %vm2146_vm7 = vcmp.eq.s32.totalorder %v5155_v36, %v2109_v30  ;;  %vm2147_vm12 = vcmp.eq.s32.totalorder %v5160_v40, %v2109_v30 }
 0x14a   :  { %2571 = vperm.xlu1 %4666, %v5104_v11   ;;  %vm2178_vm8 = vmor %vm2066_vm11, %vm2146_vm7 }
 0x14b   :  { %vm2179_vm14 = vmor %vm2067_vm10, %vm2147_vm12 }
 0x14d   :  { %v2554_v4 = vpop.permute.xlu1 %2553 }
 0x14e   :  { %vm2592_vm3 = vcmp.eq.s32.totalorder %v5155_v36, %v2554_v4  ;;  %vm2593_vm4 = vcmp.eq.s32.totalorder %v5160_v40, %v2554_v4  ;;  %4667 = vset.pattern.permute.xlu1 %v4939_v3  ;;  %v2221_v3 = vpop.permute.xlu0 %2220 }
 0x14f   :  { %2350 = vperm.xlu1 %4667, %v5111_v18   ;;  %vm2625_vm6 = vmor %vm2513_vm9, %vm2593_vm4  ;;  %vm2258_vm13 = vcmp.eq.s32.totalorder %v5155_v36, %v2221_v3  ;;  %vm2259_vm0 = vcmp.eq.s32.totalorder %v5160_v40, %v2221_v3  ;;  %v4880_v3 = vld [vmem:[%s8269_s0 + $0x68] sm:$0xff] }
 0x150   :  { %v4219_v22 = vsel %vm2625_vm6, 1.0, %v4943_v50  ;;  %vm2624_vm15 = vmor %vm2512_vm5, %vm2592_vm3 }
 0x151   :  { %2880 = vmatprep.mubr.f32.mxu0 %v4219_v22  ;;  %v4218_v11 = vsel %vm2624_vm15, 1.0, %v4943_v50  ;;  %vm2290_vm2 = vmor %vm2178_vm8, %vm2258_vm13 }
 0x152   :  { %v2333_v62 = vpop.permute.xlu1 %2332  ;;  %2881 = vmatmul.mubr.f32.gmra.mxu0 %v4218_v11  ;;  %vm2291_vm3 = vmor %vm2179_vm14, %vm2259_vm0  ;;  %vm2068_vm14 = vcmp.eq.s32.totalorder %v5155_v36, %v5224_v7  ;;  %v2224_v13 = vpop.permute.xlu0 %2223 }
 0x153   :  { %4668 = vset.pattern.permute.xlu1 %v4941_v10  ;;  %v4867_v10 = vld [vmem:[%s8269_s0] sm:$0xff]  ;;  %vm2370_vm1 = vcmp.eq.s32.totalorder %v5155_v36, %v2333_v62  ;;  %vm2371_vm9 = vcmp.eq.s32.totalorder %v5160_v40, %v2333_v62 }
 0x154   :  { %2462 = vperm.xlu1 %4668, %v5111_v18   ;;  %vm2402_vm5 = vmor %vm2290_vm2, %vm2370_vm1  ;;  %vm2069_vm1 = vcmp.eq.s32.totalorder %v5160_v40, %v5224_v7 }
 0x155   :  { %vm2403_vm15 = vmor %vm2291_vm3, %vm2371_vm9  ;;  %vm2260_vm3 = vcmp.eq.s32.totalorder %v5155_v36, %v2224_v13 }
 0x156   :  { %v2227_v37 = vpop.permute.xlu0 %2226 }
 0x157   :  { %v2445_v2 = vpop.permute.xlu1 %2444 }
 0x158   :  { %4670 = vset.pattern.permute.xlu1 %v4946_v41  ;;  %vm2483_vm4 = vcmp.eq.s32.totalorder %v5160_v40, %v2445_v2  ;;  %vm2482_vm6 = vcmp.eq.s32.totalorder %v5155_v36, %v2445_v2 }
 0x159   :  { %69 = vperm.xlu1 %4670, %v4867_v10   ;;  %vm2515_vm11 = vmor %vm2403_vm15, %vm2483_vm4 }
 0x15a   :  { %vm2514_vm12 = vmor %vm2402_vm5, %vm2482_vm6  ;;  %vm2261_vm5 = vcmp.eq.s32.totalorder %v5160_v40, %v2224_v13  ;;  %v2230_v55 = vpop.permute.xlu0 %2229 }
 0x15c   :  { %v2112_v18 = vpop.permute.xlu1 %2111 }
 0x15d   :  { %4671 = vset.pattern.permute.xlu1 %v4945_v32  ;;  %vm2148_vm0 = vcmp.eq.s32.totalorder %v5155_v36, %v2112_v18  ;;  %vm2149_vm2 = vcmp.eq.s32.totalorder %v5160_v40, %v2112_v18 }
 0x15e   :  { %117 = vperm.xlu1 %4671, %v4867_v10   ;;  %vm2180_vm9 = vmor %vm2068_vm14, %vm2148_vm0  ;;  %v2233_v51 = vpop.permute.xlu0 %2232 }
 0x15f   :  { %vm2181_vm4 = vmor %vm2069_vm1, %vm2149_vm2 }
 0x160   :  { %vm2292_vm15 = vmor %vm2180_vm9, %vm2260_vm3 }
 0x161   :  { %v2557_v5 = vpop.permute.xlu1 %2556 }
 0x162   :  { %vm2594_vm7 = vcmp.eq.s32.totalorder %v5155_v36, %v2557_v5  ;;  %vm2595_vm10 = vcmp.eq.s32.totalorder %v5160_v40, %v2557_v5  ;;  %4673 = vset.pattern.permute.xlu1 %v4946_v41  ;;  %v2236_v1 = vpop.permute.xlu0 %2235 }
 0x163   :  { %72 = vperm.xlu1 %4673, %v4868_v31   ;;  %vm2627_vm8 = vmor %vm2515_vm11, %vm2595_vm10 }
 0x164   :  { %v4221_v8 = vsel %vm2627_vm8, 1.0, %v4943_v50  ;;  %vm2626_vm13 = vmor %vm2514_vm12, %vm2594_vm7 }
 0x165   :  { %2886 = vmatprep.mubr.f32.mxu0 %v4221_v8  ;;  %v4220_v0 = vsel %vm2626_vm13, 1.0, %v4943_v50  ;;  %vm2293_vm7 = vmor %vm2181_vm4, %vm2261_vm5  ;;  %vm2070_vm4 = vcmp.eq.s32.totalorder %v5155_v36, %v5229_v12  ;;  %v4881_v8 = vld [vmem:[%s8269_s0 + $0x70] sm:$0xff] }
 0x166   :  { %v2336_v34 = vpop.permute.xlu1 %2335  ;;  %2887 = vmatmul.mubr.f32.gmra.mxu0 %v4220_v0  ;;  %v2239_v30 = vpop.permute.xlu0 %2238 }
 0x167   :  { %4674 = vset.pattern.permute.xlu1 %v4945_v32  ;;  %vm2372_vm6 = vcmp.eq.s32.totalorder %v5155_v36, %v2336_v34  ;;  %vm2373_vm11 = vcmp.eq.s32.totalorder %v5160_v40, %v2336_v34  ;;  %v5733_v34 = vld [vmem:[%s8270_s1 + $0x1] ss:$0 sm:$0xff] }
 0x168   :  { %120 = vperm.xlu1 %4674, %v4868_v31   ;;  %vm2404_vm12 = vmor %vm2292_vm15, %vm2372_vm6  ;;  %vm2071_vm6 = vcmp.eq.s32.totalorder %v5160_v40, %v5229_v12  ;;  %v5723_v31 = vld [vmem:[%s8270_s1] ss:$0 sm:$0xff] }
 0x169   :  { %vm2405_vm13 = vmor %vm2293_vm7, %vm2373_vm11  ;;  %vm2262_vm7 = vcmp.eq.s32.totalorder %v5155_v36, %v2227_v37 }
 0x16a   :  { %v2575_v62 = vpop.permute.xlu0 %2574 }
 0x16b   :  { %v2448_v35 = vpop.permute.xlu1 %2447 }
 0x16c   :  { %4675 = vset.pattern.permute.xlu1 %v4946_v41  ;;  %vm2485_vm10 = vcmp.eq.s32.totalorder %v5160_v40, %v2448_v35  ;;  %vm2484_vm8 = vcmp.eq.s32.totalorder %v5155_v36, %v2448_v35 }
 0x16d   :  { %75 = vperm.xlu1 %4675, %v4869_v38   ;;  %vm2517_vm14 = vmor %vm2405_vm13, %vm2485_vm10 }
 0x16e   :  { %vm2516_vm2 = vmor %vm2404_vm12, %vm2484_vm8  ;;  %vm2263_vm12 = vcmp.eq.s32.totalorder %v5160_v40, %v2227_v37 }
 0x170   :  { %v2115_v17 = vpop.permute.xlu1 %2114 }
 0x171   :  { %4677 = vset.pattern.permute.xlu1 %v4944_v27  ;;  %vm2150_vm5 = vcmp.eq.s32.totalorder %v5155_v36, %v2115_v17  ;;  %vm2151_vm15 = vcmp.eq.s32.totalorder %v5160_v40, %v2115_v17 }
 0x172   :  { %187 = vperm.xlu1 %4677, %v4869_v38   ;;  %vm2182_vm11 = vmor %vm2070_vm4, %vm2150_vm5 }
 0x173   :  { %vm2183_vm10 = vmor %vm2071_vm6, %vm2151_vm15 }
 0x174   :  { %vm2294_vm13 = vmor %vm2182_vm11, %vm2262_vm7 }
 0x175   :  { %v2560_v7 = vpop.permute.xlu1 %2559 }
 0x176   :  { %vm2596_vm0 = vcmp.eq.s32.totalorder %v5155_v36, %v2560_v7  ;;  %vm2597_vm1 = vcmp.eq.s32.totalorder %v5160_v40, %v2560_v7  ;;  %4678 = vset.pattern.permute.xlu1 %v4946_v41 }
 0x177   :  { %78 = vperm.xlu1 %4678, %v4870_v39   ;;  %vm2629_vm9 = vmor %vm2517_vm14, %vm2597_vm1 }
 0x178   :  { %v4223_v42 = vsel %vm2629_vm9, 1.0, %v4943_v50  ;;  %vm2628_vm3 = vmor %vm2516_vm2, %vm2596_vm0 }
 0x179   :  { %2892 = vmatprep.mubr.f32.mxu0 %v4223_v42  ;;  %v4222_v43 = vsel %vm2628_vm3, 1.0, %v4943_v50  ;;  %vm2295_vm0 = vmor %vm2183_vm10, %vm2263_vm12 }
 0x17a   :  { %v2339_v44 = vpop.permute.xlu1 %2338  ;;  %2893 = vmatmul.mubr.f32.gmra.mxu0 %v4222_v43 }
 0x17b   :  { %4679 = vset.pattern.permute.xlu1 %v4944_v27  ;;  %vm2374_vm8 = vcmp.eq.s32.totalorder %v5155_v36, %v2339_v44  ;;  %vm2375_vm14 = vcmp.eq.s32.totalorder %v5160_v40, %v2339_v44 }
 0x17c   :  { %190 = vperm.xlu1 %4679, %v4870_v39   ;;  %vm2406_vm2 = vmor %vm2294_vm13, %vm2374_vm8  ;;  %vm2072_vm8 = vcmp.eq.s32.totalorder %v5155_v36, %v5233_v14  ;;  %vm2073_vm13 = vcmp.eq.s32.totalorder %v5160_v40, %v5233_v14  ;;  %v4874_v14 = vld [vmem:[%s8269_s0 + $0x38] sm:$0xff] }
 0x17d   :  { %vm2407_vm3 = vmor %vm2295_vm0, %vm2375_vm14  ;;  %vm2264_vm0 = vcmp.eq.s32.totalorder %v5155_v36, %v2230_v55 }
 0x17f   :  { %v2451_v45 = vpop.permute.xlu1 %2450 }
 0x180   :  { %4680 = vset.pattern.permute.xlu1 %v4945_v32  ;;  %vm2487_vm1 = vcmp.eq.s32.totalorder %v5160_v40, %v2451_v45  ;;  %vm2486_vm9 = vcmp.eq.s32.totalorder %v5155_v36, %v2451_v45 }
 0x181   :  { %129 = vperm.xlu1 %4680, %v4871_v47   ;;  %vm2519_vm4 = vmor %vm2407_vm3, %vm2487_vm1 }
 0x182   :  { %vm2518_vm15 = vmor %vm2406_vm2, %vm2486_vm9  ;;  %vm2265_vm2 = vcmp.eq.s32.totalorder %v5160_v40, %v2230_v55 }
 0x184   :  { %v2118_v48 = vpop.permute.xlu1 %2117 }
 0x185   :  { %4681 = vset.pattern.permute.xlu1 %v4944_v27  ;;  %vm2152_vm10 = vcmp.eq.s32.totalorder %v5155_v36, %v2118_v48  ;;  %vm2153_vm12 = vcmp.eq.s32.totalorder %v5160_v40, %v2118_v48 }
 0x186   :  { %193 = vperm.xlu1 %4681, %v4871_v47   ;;  %vm2184_vm14 = vmor %vm2072_vm8, %vm2152_vm10 }
 0x187   :  { %vm2185_vm1 = vmor %vm2073_vm13, %vm2153_vm12 }
 0x188   :  { %vm2296_vm3 = vmor %vm2184_vm14, %vm2264_vm0 }
 0x189   :  { %v2563_v12 = vpop.permute.xlu1 %2562 }
 0x18a   :  { %vm2598_vm5 = vcmp.eq.s32.totalorder %v5155_v36, %v2563_v12  ;;  %vm2599_vm6 = vcmp.eq.s32.totalorder %v5160_v40, %v2563_v12  ;;  %4682 = vset.pattern.permute.xlu1 %v4945_v32 }
 0x18b   :  { %132 = vperm.xlu1 %4682, %v4872_v52   ;;  %vm2631_vm11 = vmor %vm2519_vm4, %vm2599_vm6 }
 0x18c   :  { %v4225_v23 = vsel %vm2631_vm11, 1.0, %v4943_v50  ;;  %vm2630_vm7 = vmor %vm2518_vm15, %vm2598_vm5 }
 0x18d   :  { %2898 = vmatprep.mubr.f32.mxu0 %v4225_v23  ;;  %v4224_v49 = vsel %vm2630_vm7, 1.0, %v4943_v50  ;;  %vm2297_vm5 = vmor %vm2185_vm1, %vm2265_vm2 }
 0x18e   :  { %v2342_v53 = vpop.permute.xlu1 %2341  ;;  %2899 = vmatmul.mubr.f32.gmra.mxu0 %v4224_v49 }
 0x18f   :  { %4683 = vset.pattern.permute.xlu1 %v4946_v41  ;;  %vm2376_vm9 = vcmp.eq.s32.totalorder %v5155_v36, %v2342_v53  ;;  %vm2377_vm4 = vcmp.eq.s32.totalorder %v5160_v40, %v2342_v53 }
 0x190   :  { %87 = vperm.xlu1 %4683, %v4873_v54   ;;  %vm2408_vm15 = vmor %vm2296_vm3, %vm2376_vm9  ;;  %vm2074_vm9 = vcmp.eq.s32.totalorder %v5155_v36, %v5239_v16  ;;  %vm2075_vm3 = vcmp.eq.s32.totalorder %v5160_v40, %v5239_v16  ;;  %v4876_v16 = vld [vmem:[%s8269_s0 + $0x48] sm:$0xff] }
 0x191   :  { %vm2409_vm7 = vmor %vm2297_vm5, %vm2377_vm4  ;;  %vm2266_vm5 = vcmp.eq.s32.totalorder %v5155_v36, %v2233_v51 }
 0x193   :  { %v2454_v46 = vpop.permute.xlu1 %2453 }
 0x194   :  { %4684 = vset.pattern.permute.xlu1 %v4945_v32  ;;  %vm2489_vm6 = vcmp.eq.s32.totalorder %v5160_v40, %v2454_v46  ;;  %vm2488_vm11 = vcmp.eq.s32.totalorder %v5155_v36, %v2454_v46 }
 0x195   :  { %135 = vperm.xlu1 %4684, %v4873_v54   ;;  %vm2521_vm10 = vmor %vm2409_vm7, %vm2489_vm6 }
 0x196   :  { %vm2520_vm13 = vmor %vm2408_vm15, %vm2488_vm11  ;;  %vm2267_vm15 = vcmp.eq.s32.totalorder %v5160_v40, %v2233_v51 }
 0x198   :  { %v2121_v57 = vpop.permute.xlu1 %2120 }
 0x199   :  { %4685 = vset.pattern.permute.xlu1 %v4946_v41  ;;  %vm2154_vm1 = vcmp.eq.s32.totalorder %v5155_v36, %v2121_v57  ;;  %vm2155_vm2 = vcmp.eq.s32.totalorder %v5160_v40, %v2121_v57 }
 0x19a   :  { %90 = vperm.xlu1 %4685, %v4874_v14   ;;  %vm2186_vm4 = vmor %vm2074_vm9, %vm2154_vm1 }
 0x19b   :  { %vm2187_vm6 = vmor %vm2075_vm3, %vm2155_vm2 }
 0x19c   :  { %vm2298_vm7 = vmor %vm2186_vm4, %vm2266_vm5 }
 0x19d   :  { %v2566_v61 = vpop.permute.xlu1 %2565 }
 0x19e   :  { %vm2600_vm12 = vcmp.eq.s32.totalorder %v5155_v36, %v2566_v61  ;;  %vm2601_vm8 = vcmp.eq.s32.totalorder %v5160_v40, %v2566_v61  ;;  %4686 = vset.pattern.permute.xlu1 %v4944_v27 }
 0x19f   :  { %202 = vperm.xlu1 %4686, %v4874_v14   ;;  %vm2633_vm14 = vmor %vm2521_vm10, %vm2601_vm8 }
 0x1a0   :  { %v4227_v63 = vsel %vm2633_vm14, 1.0, %v4943_v50  ;;  %vm2632_vm0 = vmor %vm2520_vm13, %vm2600_vm12 }
 0x1a1   :  { %2904 = vmatprep.mubr.f32.mxu0 %v4227_v63  ;;  %v4226_v28 = vsel %vm2632_vm0, 1.0, %v4943_v50  ;;  %vm2299_vm12 = vmor %vm2187_vm6, %vm2267_vm15 }
 0x1a2   :  { %v2345_v6 = vpop.permute.xlu1 %2344  ;;  %2905 = vmatmul.mubr.f32.gmra.mxu0 %v4226_v28 }
 0x1a3   :  { %4687 = vset.pattern.permute.xlu1 %v4946_v41  ;;  %vm2378_vm11 = vcmp.eq.s32.totalorder %v5155_v36, %v2345_v6  ;;  %vm2379_vm10 = vcmp.eq.s32.totalorder %v5160_v40, %v2345_v6 }
 0x1a4   :  { %93 = vperm.xlu1 %4687, %v4875_v33   ;;  %vm2410_vm13 = vmor %vm2298_vm7, %vm2378_vm11  ;;  %vm2076_vm11 = vcmp.eq.s32.totalorder %v5155_v36, %v5245_v20  ;;  %vm2077_vm7 = vcmp.eq.s32.totalorder %v5160_v40, %v5245_v20 }
 0x1a5   :  { %vm2411_vm0 = vmor %vm2299_vm12, %vm2379_vm10  ;;  %vm2268_vm12 = vcmp.eq.s32.totalorder %v5155_v36, %v2236_v1 }
 0x1a7   :  { %v2457_v56 = vpop.permute.xlu1 %2456 }
 0x1a8   :  { %4689 = vset.pattern.permute.xlu1 %v4944_v27  ;;  %vm2491_vm8 = vcmp.eq.s32.totalorder %v5160_v40, %v2457_v56  ;;  %vm2490_vm14 = vcmp.eq.s32.totalorder %v5155_v36, %v2457_v56 }
 0x1a9   :  { %205 = vperm.xlu1 %4689, %v4875_v33   ;;  %vm2523_vm1 = vmor %vm2411_vm0, %vm2491_vm8 }
 0x1aa   :  { %vm2522_vm3 = vmor %vm2410_vm13, %vm2490_vm14  ;;  %vm2269_vm13 = vcmp.eq.s32.totalorder %v5160_v40, %v2236_v1 }
 0x1ac   :  { %v2124_v60 = vpop.permute.xlu1 %2123 }
 0x1ad   :  { %4690 = vset.pattern.permute.xlu1 %v4945_v32  ;;  %vm2156_vm6 = vcmp.eq.s32.totalorder %v5155_v36, %v2124_v60  ;;  %vm2157_vm15 = vcmp.eq.s32.totalorder %v5160_v40, %v2124_v60  ;;  %v8289_v60 = vmov 683565275  }
 0x1ae   :  { %144 = vperm.xlu1 %4690, %v4876_v16   ;;  %vm2188_vm10 = vmor %vm2076_vm11, %vm2156_vm6 }
 0x1af   :  { %vm2189_vm8 = vmor %vm2077_vm7, %vm2157_vm15 }
 0x1b0   :  { %vm2300_vm0 = vmor %vm2188_vm10, %vm2268_vm12 }
 0x1b1   :  { %v2569_v58 = vpop.permute.xlu1 %2568 }
 0x1b2   :  { %vm2602_vm2 = vcmp.eq.s32.totalorder %v5155_v36, %v2569_v58  ;;  %vm2603_vm9 = vcmp.eq.s32.totalorder %v5160_v40, %v2569_v58  ;;  %4691 = vset.pattern.permute.xlu1 %v4944_v27  ;;  %v8287_v58 = vmov 2475754826  }
 0x1b3   :  { %208 = vperm.xlu1 %4691, %v4876_v16   ;;  %vm2635_vm4 = vmor %vm2523_vm1, %vm2603_vm9 }
 0x1b4   :  { %v4229_v9 = vsel %vm2635_vm4, 1.0, %v4943_v50  ;;  %vm2634_vm5 = vmor %vm2522_vm3, %vm2602_vm2 }
 0x1b5   :  { %2910 = vmatprep.mubr.f32.mxu0 %v4229_v9  ;;  %v4228_v15 = vsel %vm2634_vm5, 1.0, %v4943_v50  ;;  %vm2301_vm2 = vmor %vm2189_vm8, %vm2269_vm13 }
 0x1b6   :  { %v2348_v19 = vpop.permute.xlu1 %2347  ;;  %2911 = vmatmul.mubr.f32.gmra.mxu0 %v4228_v15  ;;  %v8281_v15 = vmov 2131351028  }
 0x1b7   :  { %4693 = vset.pattern.permute.xlu1 %v4945_v32  ;;  %vm2380_vm14 = vcmp.eq.s32.totalorder %v5155_v36, %v2348_v19  ;;  %vm2381_vm1 = vcmp.eq.s32.totalorder %v5160_v40, %v2348_v19 }
 0x1b8   :  { %147 = vperm.xlu1 %4693, %v4877_v59   ;;  %vm2412_vm3 = vmor %vm2300_vm0, %vm2380_vm14  ;;  %vm2078_vm14 = vcmp.eq.s32.totalorder %v5155_v36, %v5250_v24  ;;  %vm2079_vm0 = vcmp.eq.s32.totalorder %v5160_v40, %v5250_v24  ;;  %v8279_v59 = vmov 2102212464  }
 0x1b9   :  { %vm2413_vm5 = vmor %vm2301_vm2, %vm2381_vm1 }
 0x1bb   :  { %v2460_v21 = vpop.permute.xlu1 %2459 }
 0x1bc   :  { %4694 = vset.pattern.permute.xlu1 %v4946_v41  ;;  %vm2493_vm9 = vcmp.eq.s32.totalorder %v5160_v40, %v2460_v21  ;;  %vm2492_vm4 = vcmp.eq.s32.totalorder %v5155_v36, %v2460_v21 }
 0x1bd   :  { %102 = vperm.xlu1 %4694, %v4878_v25   ;;  %vm2525_vm6 = vmor %vm2413_vm5, %vm2493_vm9  ;;  %vm2270_vm9 = vcmp.eq.s32.totalorder %v5155_v36, %v2239_v30 }
 0x1be   :  { %vm2524_vm7 = vmor %vm2412_vm3, %vm2492_vm4  ;;  %vm2271_vm4 = vcmp.eq.s32.totalorder %v5160_v40, %v2239_v30 }
 0x1c0   :  { %v2127_v26 = vpop.permute.xlu1 %2126 }
 0x1c1   :  { %4695 = vset.pattern.permute.xlu1 %v4945_v32  ;;  %vm2158_vm10 = vcmp.eq.s32.totalorder %v5155_v36, %v2127_v26  ;;  %vm2159_vm8 = vcmp.eq.s32.totalorder %v5160_v40, %v2127_v26 }
 0x1c2   :  { %150 = vperm.xlu1 %4695, %v4878_v25   ;;  %vm2190_vm1 = vmor %vm2078_vm14, %vm2158_vm10 }
 0x1c3   :  { %vm2191_vm2 = vmor %vm2079_vm0, %vm2159_vm8 }
 0x1c4   :  { %vm2302_vm5 = vmor %vm2190_vm1, %vm2270_vm9  ;;  %vm67_vm9 = vcmp.lt.s32.totalorder %v5155_v36, 64 }
 0x1c5   :  { %v2572_v20 = vpop.permute.xlu1 %2571 }
 0x1c6   :  { %vm2604_vm15 = vcmp.eq.s32.totalorder %v5155_v36, %v2572_v20  ;;  %vm2605_vm11 = vcmp.eq.s32.totalorder %v5160_v40, %v2572_v20  ;;  %4696 = vset.pattern.permute.xlu1 %v4946_v41  ;;  %v8283_v20 = vmov 920167782  }
 0x1c7   :  { %105 = vperm.xlu1 %4696, %v4879_v29   ;;  %vm2637_vm12 = vmor %vm2525_vm6, %vm2605_vm11 }
 0x1c8   :  { %v4231_v4 = vsel %vm2637_vm12, 1.0, %v4943_v50  ;;  %vm2636_vm13 = vmor %vm2524_vm7, %vm2604_vm15  ;;  %vm2607_vm7 = vcmp.eq.s32.totalorder %v5160_v40, %v2575_v62 }
 0x1c9   :  { %2916 = vmatprep.mubr.f32.mxu0 %v4231_v4  ;;  %v4230_v22 = vsel %vm2636_vm13, 1.0, %v4943_v50  ;;  %vm2303_vm15 = vmor %vm2191_vm2, %vm2271_vm4  ;;  %vm2606_vm13 = vcmp.eq.s32.totalorder %v5155_v36, %v2575_v62  ;;  %v8285_v4 = vmov 1326507024  }
 0x1ca   :  { %v2351_v11 = vpop.permute.xlu1 %2350  ;;  %2917 = vmatmul.mubr.f32.gmra.mxu0 %v4230_v22 }
 0x1cb   :  { %4698 = vset.pattern.permute.xlu1 %v4944_v27  ;;  %vm2382_vm3 = vcmp.eq.s32.totalorder %v5155_v36, %v2351_v11  ;;  %vm2383_vm6 = vcmp.eq.s32.totalorder %v5160_v40, %v2351_v11 }
 0x1cc   :  { %217 = vperm.xlu1 %4698, %v4879_v29   ;;  %vm2414_vm11 = vmor %vm2302_vm5, %vm2382_vm3  ;;  %vm66_vm3 = vcmp.lt.s32.totalorder %v5155_v36, 32 }
 0x1cd   :  { %vm2415_vm10 = vmor %vm2303_vm15, %vm2383_vm6 }
 0x1cf   :  { %v2463_v24 = vpop.permute.xlu1 %2462 }
 0x1d0   :  { %vm2494_vm12 = vcmp.eq.s32.totalorder %v5155_v36, %v2463_v24  ;;  %vm2495_vm8 = vcmp.eq.s32.totalorder %v5160_v40, %v2463_v24  ;;  %4699 = vset.pattern.permute.xlu1 %v4946_v41  ;;  %v182_v41 = vpop.permute.xlu0 %181 }
 0x1d1   :  { %108 = vperm.xlu1 %4699, %v4880_v3   ;;  %vm2527_vm14 = vmor %vm2415_vm10, %vm2495_vm8 }
 0x1d2   :  { %vm2639_vm0 = vmor %vm2527_vm14, %vm2607_vm7 }
 0x1d3   :  { %v4233_v2 = vsel %vm2639_vm0, 1.0, %v4943_v50  ;;  %vm2526_vm1 = vmor %vm2414_vm11, %vm2494_vm12 }
 0x1d4   :  { %v70_v10 = vpop.permute.xlu1 %69  ;;  %2922 = vmatprep.mubr.f32.mxu0 %v4233_v2  ;;  %vm2638_vm2 = vmor %vm2526_vm1, %vm2606_vm13  ;;  %v185_v7 = vpop.permute.xlu0 %184 }
 0x1d5   :  { %4700 = vset.pattern.permute.xlu1 %v4944_v27  ;;  %v4232_v40 = vsel %vm2638_vm2, 1.0, %v4943_v50 }
 0x1d6   :  { %2923 = vmatmul.mubr.f32.gmra.mxu0 %v4232_v40  ;;  %220 = vperm.xlu1 %4700, %v4880_v3  }
 0x1d8   :  { %v124_v55 = vpop.permute.xlu0 %123 }
 0x1d9   :  { %v118_v18 = vpop.permute.xlu1 %117 }
 0x1da   :  { %v164_v5 = vsel %vm67_vm9, %v70_v10, %v118_v18  ;;  %4702 = vset.pattern.permute.xlu1 %v4945_v32 }
 0x1db   :  { %v228_v50 = vsel %vm66_vm3, %v182_v41, %v164_v5  ;;  %159 = vperm.xlu1 %4702, %v4881_v8  }
 0x1dc   :  { %v244_v0 = vcvt.s32.f32 %v228_v50 }
 0x1de   :  { %v265_v13 = vmul.f32 %v5723_v31, %v244_v0  ;;  %v73_v35 = vpop.permute.xlu1 %72 }
 0x1df   :  { %4703 = vset.pattern.permute.xlu1 %v4944_v27  ;;  %v4882_v27 = vld [vmem:[%s8269_s0 + $0x78] sm:$0xff] }
 0x1e0   :  { %v286_v38 = vadd.f32 %v5733_v34, %v265_v13  ;;  %223 = vperm.xlu1 %4703, %v4881_v8  }
 0x1e2   :  { %v5738_v17 = vmul.f32 6.2831855, %v286_v38 }
 0x1e3   :  { %v121_v39 = vpop.permute.xlu1 %120 }
 0x1e4   :  { %v8278_v42 = vand.u32 2147483647, %v5738_v17  ;;  %v321_v43 = vand.u32 2139095040, %v5738_v17  ;;  %v165_v44 = vsel %vm67_vm9, %v73_v35, %v121_v39  ;;  %4704 = vset.pattern.permute.xlu1 %v4945_v32 }
 0x1e5   :  { %v229_v37 = vsel %vm66_vm3, %v185_v7, %v165_v44  ;;  %162 = vperm.xlu1 %4704, %v4882_v27  }
 0x1e6   :  { %v322_v45 = vshrl.u32 %v321_v43, 23  ;;  %v245_v47 = vcvt.s32.f32 %v229_v37  ;;  %v325_v48 = vand.u32 8388607, %v8278_v42 }
 0x1e8   :  { %v4138_v12 = vadd.s32 4294967169, %v322_v45  ;;  %v266_v52 = vmul.f32 %v5723_v31, %v245_v47  ;;  %v76_v23 = vpop.permute.xlu1 %75  ;;  %v326_v53 = vor.u32 8388608, %v325_v48 }
 0x1e9   :  { %v166_v28 = vsel %vm67_vm9, %v76_v23, %v124_v55 }
 0x1ea   :  { %v328_v49 = vadd.s32 1, %v4138_v12  ;;  %v287_v32 = vadd.f32 %v5733_v34, %v266_v52  ;;  %v5756_v63 = vshll.u32 %v326_v53, 8  ;;  %v127_v52 = vpop.permute.xlu0 %126 }
 0x1ec   :  { %vm329_vm4 = vcmp.gt.s32.totalorder %v328_v49, 0  ;;  %v5754_v54 = vmul.f32 6.2831855, %v287_v32 }
 0x1ed   :  { %v330_v46 = vsel %vm329_vm4, %v328_v49, 0  ;;  %v188_v57 = vpop.permute.xlu1 %187 }
 0x1ee   :  { %v332_v14 = vand.u32 31, %v330_v46  ;;  %v331_v61 = vshrl.u32 %v330_v46, 5  ;;  %v8277_v33 = vand.u32 2147483647, %v5754_v54  ;;  %v424_v51 = vand.u32 2139095040, %v5754_v54 }
 0x1ef   :  { %v230_v56 = vsel %vm66_vm3, %v188_v57, %v166_v28 }
 0x1f0   :  { %v333_v6 = vsub.s32 32, %v332_v14  ;;  %v335_v16 = vshll.u32 %v8289_v60, %v332_v14  ;;  %v338_v9 = vshll.u32 %v8287_v58, %v332_v14  ;;  %v341_v19 = vshll.u32 %v8281_v15, %v332_v14 }
 0x1f1   :  { %v344_v1 = vshll.u32 %v8279_v59, %v332_v14  ;;  %v347_v29 = vshll.u32 %v8283_v20, %v332_v14  ;;  %vm350_vm5 = vcmp.lt.s32.totalorder %v331_v61, 1  ;;  %vm351_vm6 = vcmp.lt.s32.totalorder %v331_v61, 2 }
 0x1f2   :  { %v336_v21 = vshrl.u32 %v8287_v58, %v333_v6  ;;  %v339_v25 = vshrl.u32 %v8281_v15, %v333_v6  ;;  %v342_v26 = vshrl.u32 %v8279_v59, %v333_v6  ;;  %v345_v30 = vshrl.u32 %v8283_v20, %v333_v6  ;;  %v79_v23 = vpop.permute.xlu1 %78 }
 0x1f3   :  { %v348_v22 = vshrl.u32 %v8285_v4, %v333_v6  ;;  %v425_v3 = vshrl.u32 %v424_v51, 23  ;;  %v334_v2 = vshrl.u32 %v8289_v60, %v333_v6  ;;  %vm353_vm15 = vcmp.lt.s32.totalorder %v331_v61, 4 }
 0x1f4   :  { %v337_v11 = vor.u32 %v336_v21, %v335_v16  ;;  %v340_v62 = vor.u32 %v339_v25, %v338_v9  ;;  %v343_v24 = vor.u32 %v342_v26, %v341_v19  ;;  %v346_v10 = vor.u32 %v345_v30, %v344_v1  ;;  %v5804_v19 = vpop.permute.xlu0 %138 }
 0x1f5   :  { %v349_v40 = vor.u32 %v348_v22, %v347_v29  ;;  %vm352_vm11 = vcmp.lt.s32.totalorder %v331_v61, 3  ;;  %v4142_v0 = vadd.s32 4294967169, %v425_v3  ;;  %v246_v13 = vcvt.s32.f32 %v230_v56 }
 0x1f6   :  { %v355_v41 = vsel %vm353_vm15, %v343_v24, 2102212464  ;;  %v358_v18 = vsel %vm350_vm5, %v337_v11, %v340_v62  ;;  %v362_v5 = vsel %vm350_vm5, %v340_v62, %v343_v24  ;;  %v359_v50 = vsel %vm353_vm15, %v346_v10, 920167782 }
 0x1f7   :  { %v363_v8 = vsel %vm353_vm15, %v349_v40, 1326507024  ;;  %v354_v35 = vsel %vm350_vm5, %v334_v2, %v337_v11  ;;  %v356_v38 = vsel %vm352_vm11, %v340_v62, %v355_v41  ;;  %v360_v7 = vsel %vm352_vm11, %v343_v24, %v359_v50  ;;  %v191_v1 = vpop.permute.xlu1 %190 }
 0x1f8   :  { %v364_v39 = vsel %vm352_vm11, %v346_v10, %v363_v8  ;;  %v361_v43 = vsel %vm351_vm6, %v358_v18, %v360_v7  ;;  %v428_v37 = vand.u32 8388607, %v8277_v33  ;;  %v431_v27 = vadd.s32 1, %v4142_v0 }
 0x1f9   :  { %v365_v44 = vsel %vm351_vm6, %v362_v5, %v364_v39  ;;  %v5787_v48 = vmul.u32.u64.low %v5756_v63, %v361_v43  ;;  %v5788_v12 = vmul.u32.u64.high %v5756_v63, %v361_v43, %v5787_v48  ;;  %v357_v49 = vsel %vm351_vm6, %v354_v35, %v356_v38  ;;  %v5819_v38 = vpop.permute.xlu0 %141 }
 0x1fa   :  { %v5783_v45 = vmul.u32.u64.low %v5756_v63, %v365_v44  ;;  %v5784_v47 = vmul.u32.u64.high %v5756_v63, %v365_v44, %v5783_v45  ;;  %vm432_vm7 = vcmp.gt.s32.totalorder %v431_v27, 0  ;;  %v267_v32 = vmul.f32 %v5723_v31, %v246_v13 }
 0x1fb   :  { %v433_v53 = vsel %vm432_vm7, %v431_v27, 0  ;;  %v373_v46 = vmul.u32 %v5756_v63, %v357_v49  ;;  %v376_v57 = vadd.s32 1, %v5788_v12  ;;  %v429_v14 = vor.u32 8388608, %v428_v37 }
 0x1fc   :  { %v435_v55 = vand.u32 31, %v433_v53  ;;  %vm375_vm10 = vc.u32 %v5784_v47, %v5787_v48  ;;  %v434_v28 = vshrl.u32 %v433_v53, 5  ;;  %v288_v51 = vadd.f32 %v5733_v34, %v267_v32 }
 0x1fd   :  { %v167_v61 = vsel %vm67_vm9, %v79_v23, %v127_v52  ;;  %v377_v56 = vsel %vm375_vm10, %v376_v57, %v5788_v12  ;;  %v469_v2 = vshll.u32 %v429_v14, 8 }
 0x1fe   :  { %v436_v6 = vsub.s32 32, %v435_v55  ;;  %v438_v16 = vshll.u32 %v8289_v60, %v435_v55  ;;  %v441_v9 = vshll.u32 %v8287_v58, %v435_v55  ;;  %v444_v63 = vshll.u32 %v8281_v15, %v435_v55 }
 0x1ff   :  { %v378_v21 = vadd.s32 %v377_v56, %v373_v46  ;;  %v447_v29 = vshll.u32 %v8279_v59, %v435_v55  ;;  %v450_v11 = vshll.u32 %v8283_v20, %v435_v55  ;;  %v231_v10 = vsel %vm66_vm3, %v191_v1, %v167_v61 }
 0x200   :  { %v439_v25 = vshrl.u32 %v8287_v58, %v436_v6  ;;  %v442_v26 = vshrl.u32 %v8281_v15, %v436_v6  ;;  %v445_v30 = vshrl.u32 %v8279_v59, %v436_v6  ;;  %v448_v22 = vshrl.u32 %v8283_v20, %v436_v6 }
 0x201   :  { %v451_v62 = vshrl.u32 %v8285_v4, %v436_v6  ;;  %vm453_vm12 = vcmp.lt.s32.totalorder %v434_v28, 1  ;;  %v379_v5 = vadd.s32 536870912, %v378_v21  ;;  %vm455_vm8 = vcmp.lt.s32.totalorder %v434_v28, 3 }
 0x202   :  { %v440_v24 = vor.u32 %v439_v25, %v438_v16  ;;  %v443_v3 = vor.u32 %v442_v26, %v441_v9  ;;  %v446_v40 = vor.u32 %v445_v30, %v444_v63  ;;  %v449_v41 = vor.u32 %v448_v22, %v447_v29  ;;  %v5846_v25 = vpop.f32.mrf.mxu0  ;;  %v130_v29 = vpop.permute.xlu1 %129 }
 0x203   :  { %v452_v18 = vor.u32 %v451_v62, %v450_v11  ;;  %vm456_vm13 = vcmp.lt.s32.totalorder %v434_v28, 4  ;;  %v5817_v35 = vmul.f32 6.2831855, %v288_v51  ;;  %vm454_vm14 = vcmp.lt.s32.totalorder %v434_v28, 2  ;;  %v82_v51 = vpop.permute.xlu0 %81  ;;  %8396 = vst [vmem:[#allocation9_spill] sm:$0xff] %v5846_v25 }
 0x204   :  { %v461_v50 = vsel %vm453_vm12, %v440_v24, %v443_v3  ;;  %v462_v8 = vsel %vm456_vm13, %v449_v41, 920167782  ;;  %v465_v0 = vsel %vm453_vm12, %v443_v3, %v446_v40  ;;  %v247_v43 = vcvt.s32.f32 %v231_v10  ;;  %v5857_v10 = vpop.f32.mrf.mxu0 }
 0x205   :  { %v466_v13 = vsel %vm456_vm13, %v452_v18, 1326507024  ;;  %v463_v7 = vsel %vm455_vm8, %v446_v40, %v462_v8  ;;  %v458_v44 = vsel %vm456_vm13, %v446_v40, 2102212464  ;;  %v437_v45 = vshrl.u32 %v8289_v60, %v436_v6  ;;  %8397 = vst [vmem:[#allocation10_spill] sm:$0xff] %v5857_v10 }
 0x206   :  { %v467_v39 = vsel %vm455_vm8, %v449_v41, %v466_v13  ;;  %v464_v37 = vsel %vm454_vm14, %v461_v50, %v463_v7  ;;  %v5829_v23 = vshrl.u32 %v379_v5, 30  ;;  %v527_v53 = vand.u32 2139095040, %v5817_v35 }
 0x207   :  { %v468_v27 = vsel %vm454_vm14, %v465_v0, %v467_v39  ;;  %v5831_v49 = vmul.u32.u64.low %v469_v2, %v464_v37  ;;  %v5832_v32 = vmul.u32.u64.high %v469_v2, %v464_v37, %v5831_v49  ;;  %v457_v55 = vsel %vm453_vm12, %v437_v45, %v440_v24  ;;  %v5850_v22 = vpop.permute.xlu0 %84  ;;  %v194_v0 = vpop.permute.xlu1 %193 }
 0x208   :  { %v5826_v12 = vmul.u32.u64.low %v469_v2, %v468_v27  ;;  %v5827_v52 = vmul.u32.u64.high %v469_v2, %v468_v27, %v5826_v12  ;;  %v459_v46 = vsel %vm455_vm8, %v443_v3, %v458_v44  ;;  %v268_v57 = vmul.f32 %v5723_v31, %v247_v43 }
 0x209   :  { %v528_v14 = vshrl.u32 %v527_v53, 23  ;;  %v381_v6 = vshll.u32 %v5829_v23, 30  ;;  %v460_v61 = vsel %vm454_vm14, %v457_v55, %v459_v46  ;;  %v479_v56 = vadd.s32 1, %v5832_v32 }
 0x20a   :  { %vm478_vm0 = vc.u32 %v5827_v52, %v5831_v49  ;;  %v289_v9 = vadd.f32 %v5733_v34, %v268_v57  ;;  %v476_v26 = vmul.u32 %v469_v2, %v460_v61  ;;  %v8276_v28 = vand.u32 2147483647, %v5817_v35  ;;  %v5862_v2 = vpop.f32.mrf.mxu0 }
 0x20b   :  { %v4146_v16 = vadd.s32 4294967169, %v528_v14  ;;  %v480_v63 = vsel %vm478_vm0, %v479_v56, %v5832_v32  ;;  %v5848_v30 = vsub.s32 %v378_v21, %v381_v6  ;;  %v168_v21 = vsel %vm67_vm9, %v82_v51, %v130_v29  ;;  %8398 = vst [vmem:[#allocation11_spill] sm:$0xff] %v5862_v2  ;;  %v5873_v44 = vpop.permute.xlu0 %96 }
 0x20c   :  { %v5852_v11 = vadd.s32 %v480_v63, %v476_v26  ;;  %v5855_v24 = vmul.f32 6.2831855, %v289_v9  ;;  %v531_v5 = vand.u32 8388607, %v8276_v28  ;;  %v232_v55 = vsel %vm66_vm3, %v194_v0, %v168_v21  ;;  %v5882_v46 = vpop.f32.mrf.mxu0 }
 0x20d   :  { %v534_v1 = vadd.s32 1, %v4146_v16  ;;  %v384_v40 = vsub.s32 0, %v5848_v30  ;;  %8399 = vst [vmem:[#allocation12_spill] sm:$0xff] %v5882_v46  ;;  %v248_v63 = vcvt.s32.f32 %v232_v55 }
 0x20e   :  { %v482_v18 = vadd.s32 536870912, %v5852_v11  ;;  %v630_v8 = vand.u32 2139095040, %v5855_v24  ;;  %v532_v14 = vor.u32 8388608, %v531_v5 }
 0x20f   :  { %vm535_vm1 = vcmp.gt.s32.totalorder %v534_v1, 0  ;;  %v4139_v57 = vmin.u32 %v384_v40, %v5848_v30 }
 0x210   :  { %v536_v62 = vsel %vm535_vm1, %v534_v1, 0  ;;  %v5885_v61 = vshrl.u32 %v482_v18, 30  ;;  %v631_v9 = vshrl.u32 %v630_v8, 23  ;;  %v572_v18 = vshll.u32 %v532_v14, 8 }
 0x211   :  { %v538_v3 = vand.u32 31, %v536_v62  ;;  %v5875_v37 = vshrl.u32 %v536_v62, 5  ;;  %v5896_v62 = vpop.permute.xlu0 %99  ;;  %v386_v40 = vclz %v4139_v57 }
 0x212   :  { %8400 = vst [vmem:[#allocation13_spill] sm:$0xff] %v5885_v61  ;;  %v484_v5 = vshll.u32 %v5885_v61, 30  ;;  %v4150_v55 = vadd.s32 4294967169, %v631_v9 }
 0x213   :  { %v539_v41 = vsub.s32 32, %v538_v3  ;;  %v541_v50 = vshll.u32 %v8289_v60, %v538_v3  ;;  %v544_v7 = vshll.u32 %v8287_v58, %v538_v3  ;;  %v547_v27 = vshll.u32 %v8281_v15, %v538_v3 }
 0x214   :  { %v550_v45 = vshll.u32 %v8279_v59, %v538_v3  ;;  %v553_v56 = vshll.u32 %v8283_v20, %v538_v3  ;;  %vm556_vm2 = vcmp.lt.s32.totalorder %v5875_v37, 1  ;;  %vm559_vm4 = vcmp.lt.s32.totalorder %v5875_v37, 4  ;;  %v5898_v3 = vpop.f32.mrf.mxu0 }
 0x215   :  { %v542_v13 = vshrl.u32 %v8287_v58, %v539_v41  ;;  %v545_v39 = vshrl.u32 %v8281_v15, %v539_v41  ;;  %v548_v43 = vshrl.u32 %v8279_v59, %v539_v41  ;;  %v551_v12 = vshrl.u32 %v8283_v20, %v539_v41  ;;  %8401 = vst [vmem:[#allocation14_spill] sm:$0xff] %v5898_v3 }
 0x216   :  { %v554_v16 = vshrl.u32 %v8285_v4, %v539_v41  ;;  %vm558_vm5 = vcmp.lt.s32.totalorder %v5875_v37, 3  ;;  %vm557_vm6 = vcmp.lt.s32.totalorder %v5875_v37, 2  ;;  %v5921_v57 = vpop.f32.mrf.mxu0  ;;  %v4140_v14 = vadd.s32 4294967294, %v386_v40 }
 0x217   :  { %v543_v32 = vor.u32 %v542_v13, %v541_v50  ;;  %v546_v53 = vor.u32 %v545_v39, %v544_v7  ;;  %v549_v51 = vor.u32 %v548_v43, %v547_v27  ;;  %v552_v6 = vor.u32 %v551_v12, %v550_v45  ;;  %v133_v43 = vpop.permute.xlu1 %132  ;;  %8402 = vst [vmem:[#allocation15_spill] sm:$0xff] %v5921_v57 }
 0x218   :  { %v555_v1 = vor.u32 %v554_v16, %v553_v56  ;;  %v269_v39 = vmul.f32 %v5723_v31, %v248_v63  ;;  %v540_v56 = vshrl.u32 %v8289_v60, %v539_v41  ;;  %v8275_v63 = vand.u32 2147483647, %v5855_v24 }
 0x219   :  { %v564_v26 = vsel %vm556_vm2, %v543_v32, %v546_v53  ;;  %v565_v29 = vsel %vm559_vm4, %v552_v6, 920167782  ;;  %v568_v8 = vsel %vm556_vm2, %v546_v53, %v549_v51  ;;  %v561_v13 = vsel %vm559_vm4, %v549_v51, 2102212464 }
 0x21a   :  { %v566_v21 = vsel %vm558_vm5, %v549_v51, %v565_v29  ;;  %v569_v0 = vsel %vm559_vm4, %v555_v1, 1326507024  ;;  %v637_v1 = vadd.s32 1, %v4150_v55  ;;  %v197_v29 = vpop.permute.xlu0 %196  ;;  %v560_v9 = vsel %vm556_vm2, %v540_v56, %v543_v32 }
 0x21b   :  { %v567_v50 = vsel %vm557_vm6, %v564_v26, %v566_v21  ;;  %v570_v7 = vsel %vm558_vm5, %v552_v6, %v569_v0  ;;  %v5928_v6 = vsub.s32 %v5852_v11, %v484_v5  ;;  %v169_v26 = vsel %vm67_vm9, %v5850_v22, %v133_v43  ;;  %v5939_v21 = vpop.f32.mrf.mxu0 }
 0x21c   :  { %v571_v27 = vsel %vm557_vm6, %v568_v8, %v570_v7  ;;  %v5917_v45 = vmul.u32.u64.low %v572_v18, %v567_v50  ;;  %v5918_v12 = vmul.u32.u64.high %v572_v18, %v567_v50, %v5917_v45  ;;  %v562_v41 = vsel %vm558_vm5, %v546_v53, %v561_v13  ;;  %8403 = vst [vmem:[#allocation16_spill] sm:$0xff] %v5939_v21 }
 0x21d   :  { %v5924_v51 = vmul.u32.u64.low %v572_v18, %v571_v27  ;;  %v5925_v16 = vmul.u32.u64.high %v572_v18, %v571_v27, %v5924_v51  ;;  %vm638_vm15 = vcmp.gt.s32.totalorder %v637_v1, 0  ;;  %vm4141_vm11 = vcmp.lt.s32.totalorder %v4140_v14, 0  ;;  %v5956_v7 = vpop.f32.mrf.mxu0 }
 0x21e   :  { %v582_v40 = vadd.s32 1, %v5918_v12  ;;  %v290_v11 = vadd.f32 %v5733_v34, %v269_v39  ;;  %v233_v22 = vsel %vm66_vm3, %v197_v29, %v169_v26  ;;  %v487_v5 = vsub.s32 0, %v5928_v6  ;;  %8405 = vst [vmem:[#allocation18_spill] sm:$0xff] %v5956_v7 }
 0x21f   :  { %vm581_vm7 = vc.u32 %v5925_v16, %v5917_v45  ;;  %v563_v32 = vsel %vm557_vm6, %v560_v9, %v562_v41  ;;  %v634_v53 = vand.u32 8388607, %v8275_v63  ;;  %v639_v50 = vsel %vm638_vm15, %v637_v1, 0  ;;  %v5965_v1 = vpop.f32.mrf.mxu0 }
 0x220   :  { %v583_v8 = vsel %vm581_vm7, %v582_v40, %v5918_v12  ;;  %v641_v0 = vand.u32 31, %v639_v50  ;;  %v5954_v13 = vmul.f32 %v5846_v25, %v5846_v25  ;;  %v5958_v39 = vsel %vm4141_vm11, 0, %v4140_v14  ;;  %8407 = vst [vmem:[#allocation20_spill] sm:$0xff] %v5965_v1 }
 0x221   :  { %v579_v43 = vmul.u32 %v572_v18, %v563_v32  ;;  %v249_v27 = vcvt.s32.f32 %v233_v22  ;;  %v5961_v37 = vmin.u32 %v487_v5, %v5928_v6  ;;  %v635_v55 = vor.u32 8388608, %v634_v53  ;;  %v5980_v63 = vpop.f32.mrf.mxu0 }
 0x222   :  { %8404 = vst [vmem:[#allocation17_spill] sm:$0xff] %v5954_v13  ;;  %v642_v56 = vsub.s32 32, %v641_v0  ;;  %v5963_v51 = vmul.f32 6.2831855, %v290_v11  ;;  %v640_v26 = vshrl.u32 %v639_v50, 5  ;;  %v644_v29 = vshll.u32 %v8289_v60, %v641_v0  ;;  %8408 = vst [vmem:[#allocation21_spill] sm:$0xff] %v5980_v63 }
 0x223   :  { %v5967_v12 = vadd.s32 %v583_v8, %v579_v43  ;;  %v647_v9 = vshll.u32 %v8287_v58, %v641_v0  ;;  %v650_v41 = vshll.u32 %v8281_v15, %v641_v0  ;;  %v653_v11 = vshll.u32 %v8279_v59, %v641_v0 }
 0x224   :  { %8406 = vst [vmem:[#allocation19_spill] sm:$0xff] %v5963_v51  ;;  %v645_v14 = vshrl.u32 %v8287_v58, %v642_v56  ;;  %v648_v18 = vshrl.u32 %v8281_v15, %v642_v56  ;;  %v651_v40 = vshrl.u32 %v8279_v59, %v642_v56  ;;  %v654_v22 = vshrl.u32 %v8283_v20, %v642_v56 }
 0x225   :  { %v656_v5 = vshll.u32 %v8283_v20, %v641_v0  ;;  %v657_v32 = vshrl.u32 %v8285_v4, %v642_v56  ;;  %v270_v43 = vmul.f32 %v5723_v31, %v249_v27  ;;  %v585_v28 = vadd.s32 536870912, %v5967_v12  ;;  %v5985_v20 = vpop.f32.mrf.mxu0 }
 0x226   :  { %v646_v53 = vor.u32 %v645_v14, %v644_v29  ;;  %v649_v50 = vor.u32 %v648_v18, %v647_v9  ;;  %v652_v8 = vor.u32 %v651_v40, %v650_v41  ;;  %v655_v33 = vor.u32 %v654_v22, %v653_v11  ;;  %8409 = vst [vmem:[#allocation22_spill] sm:$0xff] %v5985_v20 }
 0x227   :  { %v658_v42 = vor.u32 %v657_v32, %v656_v5  ;;  %vm659_vm10 = vcmp.lt.s32.totalorder %v640_v26, 1  ;;  %vm662_vm12 = vcmp.lt.s32.totalorder %v640_v26, 4  ;;  %v675_v15 = vshll.u32 %v635_v55, 8  ;;  %v5999_v58 = vpop.f32.mrf.mxu0 }
 0x228   :  { %v667_v59 = vsel %vm659_vm10, %v646_v53, %v649_v50  ;;  %v733_v0 = vand.u32 2139095040, %v5963_v51  ;;  %v643_v29 = vshrl.u32 %v8289_v60, %v642_v56  ;;  %vm660_vm8 = vcmp.lt.s32.totalorder %v640_v26, 2  ;;  %8411 = vst [vmem:[#allocation24_spill] sm:$0xff] %v5999_v58 }
 0x229   :  { %vm661_vm13 = vcmp.lt.s32.totalorder %v640_v26, 3  ;;  %v668_v27 = vsel %vm662_vm12, %v655_v33, 920167782  ;;  %v664_v9 = vsel %vm662_vm12, %v652_v8, 2102212464  ;;  %v671_v18 = vsel %vm659_vm10, %v649_v50, %v652_v8 }
 0x22a   :  { %v669_v14 = vsel %vm661_vm13, %v652_v8, %v668_v27  ;;  %v672_v41 = vsel %vm662_vm12, %v658_v42, 1326507024  ;;  %v5989_v40 = vshrl.u32 %v585_v28, 30  ;;  %v291_v55 = vadd.f32 %v5733_v34, %v270_v43 }
 0x22b   :  { %v670_v11 = vsel %vm660_vm8, %v667_v59, %v669_v14  ;;  %v673_v22 = vsel %vm661_vm13, %v655_v33, %v672_v41  ;;  %v663_v5 = vsel %vm659_vm10, %v643_v29, %v646_v53  ;;  %v665_v27 = vsel %vm661_vm13, %v649_v50, %v664_v9  ;;  %v88_v50 = vpop.permute.xlu1 %87  ;;  %v6026_v14 = vpop.f32.mrf.mxu0 }
 0x22c   :  { %8410 = vst [vmem:[#allocation23_spill] sm:$0xff] %v5989_v40  ;;  %v674_v32 = vsel %vm660_vm8, %v671_v18, %v673_v22  ;;  %v5995_v56 = vmul.u32.u64.low %v675_v15, %v670_v11  ;;  %v5996_v4 = vmul.u32.u64.high %v675_v15, %v670_v11, %v5995_v56  ;;  %v734_v28 = vshrl.u32 %v733_v0, 23  ;;  %8417 = vst [vmem:[#allocation30_spill] sm:$0xff] %v6026_v14 }
 0x22d   :  { %v6001_v8 = vmul.u32.u64.low %v675_v15, %v674_v32  ;;  %v6002_v42 = vmul.u32.u64.high %v675_v15, %v674_v32, %v6001_v8  ;;  %v6006_v33 = vmul.f32 %v5857_v10, %v5857_v10  ;;  %v6010_v59 = vmul.f32 %v5862_v2, %v5862_v2 }
 0x22e   :  { %v6014_v53 = vmul.f32 %v5882_v46, %v5882_v46  ;;  %v6018_v43 = vmul.f32 %v5898_v3, %v5898_v3  ;;  %v6022_v0 = vmul.f32 %v5921_v57, %v5921_v57  ;;  %v394_v29 = vsub.s32 4294967266, %v5958_v39  ;;  %v200_v57 = vpop.permute.xlu0 %199 }
 0x22f   :  { %8412 = vst [vmem:[#allocation25_spill] sm:$0xff] %v6006_v33  ;;  %8413 = vst [vmem:[#allocation26_spill] sm:$0xff] %v6010_v59  ;;  %v489_v9 = vclz %v5961_v37  ;;  %v4154_v18 = vadd.s32 4294967169, %v734_v28  ;;  %v587_v41 = vshll.u32 %v5989_v40, 30  ;;  %v666_v11 = vsel %vm660_vm8, %v663_v5, %v665_v27 }
 0x230   :  { %8414 = vst [vmem:[#allocation27_spill] sm:$0xff] %v6014_v53  ;;  %8415 = vst [vmem:[#allocation28_spill] sm:$0xff] %v6018_v43  ;;  %v685_v22 = vadd.s32 1, %v5996_v4  ;;  %v6034_v8 = vmul.f32 %v5939_v21, %v5939_v21  ;;  %vm684_vm14 = vc.u32 %v6002_v42, %v5995_v56  ;;  %v6038_v37 = vmul.f32 6.2831855, %v291_v55 }
 0x231   :  { %8416 = vst [vmem:[#allocation29_spill] sm:$0xff] %v6022_v0  ;;  %v740_v60 = vadd.s32 1, %v4154_v18  ;;  %v6042_v28 = vmul.f32 %v5956_v7, %v5956_v7  ;;  %v6046_v26 = vmul.f32 %v5965_v1, %v5965_v1  ;;  %v6050_v5 = vmul.f32 %v5980_v63, %v5980_v63 }
 0x232   :  { %8418 = vst [vmem:[#allocation31_spill] sm:$0xff] %v6034_v8  ;;  %8419 = vst [vmem:[#allocation32_spill] sm:$0xff] %v6038_v37  ;;  %v686_v27 = vsel %vm684_vm14, %v685_v22, %v5996_v4  ;;  %v6055_v32 = vmul.f32 %v5985_v20, %v5985_v20  ;;  %v390_v55 = vsub.s32 32, %v5958_v39  ;;  %v6058_v18 = vadd.s32 127, %v394_v29  ;;  %v6060_v8 = vpop.f32.mrf.mxu0  ;;  %v136_v4 = vpop.permute.xlu1 %135 }
 0x233   :  { %8420 = vst [vmem:[#allocation33_spill] sm:$0xff] %v6042_v28  ;;  %8421 = vst [vmem:[#allocation34_spill] sm:$0xff] %v6046_v26  ;;  %v682_v28 = vmul.u32 %v675_v15, %v666_v11  ;;  %v4144_v7 = vadd.s32 4294967294, %v489_v9  ;;  %v6063_v26 = vsub.s32 %v5967_v12, %v587_v41  ;;  %v8425_v63 = vand.u32 2147483647, %v5963_v51 }
 0x234   :  { %8422 = vst [vmem:[#allocation35_spill] sm:$0xff] %v6050_v5  ;;  %8423 = vst [vmem:[#allocation36_spill] sm:$0xff] %v6055_v32  ;;  %vm741_vm0 = vcmp.gt.s32.totalorder %v740_v60, 0  ;;  %v374_v22 = vadd.s32 %v5787_v48, %v5784_v47  ;;  %v836_v29 = vand.u32 2139095040, %v6038_v37  ;;  %v6074_v15 = vmul.f32 %v5999_v58, %v5999_v58 }
 0x235   :  { %8424 = vst [vmem:[#allocation37_spill] sm:$0xff] %v6060_v8  ;;  %v737_v5 = vand.u32 8388607, %v8425_v63  ;;  %v6069_v32 = vadd.s32 %v686_v27, %v682_v28  ;;  %v742_v20 = vsel %vm741_vm0, %v740_v60, 0  ;;  %v6078_v12 = vmul.f32 %v6026_v14, %v6026_v14 }
 0x236   :  { %8426 = vst [vmem:[#allocation38_spill] sm:$0xff] %v6074_v15  ;;  %v6082_v63 = vmul.f32 %v6060_v8, %v6060_v8  ;;  %v744_v9 = vand.u32 31, %v742_v20  ;;  %v6086_v48 = vshrl.u32 %v374_v22, %v390_v55  ;;  %v170_v41 = vsel %vm67_vm9, %v88_v50, %v136_v4 }
 0x237   :  { %8427 = vst [vmem:[#allocation39_spill] sm:$0xff] %v6078_v12  ;;  %vm4145_vm1 = vcmp.lt.s32.totalorder %v4144_v7, 0  ;;  %v590_v11 = vsub.s32 0, %v6063_v26  ;;  %v738_v28 = vor.u32 8388608, %v737_v5  ;;  %v688_v12 = vadd.s32 536870912, %v6069_v32 }
 0x238   :  { %8428 = vst [vmem:[#allocation40_spill] sm:$0xff] %v6082_v63  ;;  %v745_v27 = vsub.s32 32, %v744_v9  ;;  %v8429_v8 = vmov 683565275   ;;  %v8430_v14 = vmov 2475754826  }
 0x239   :  { %v747_v63 = vshll.u32 %v8429_v8, %v744_v9  ;;  %v750_v15 = vshll.u32 %v8430_v14, %v744_v9  ;;  %v837_v58 = vshrl.u32 %v836_v29, 23  ;;  %v8431_v22 = vmov 2131351028  }
 0x23a   :  { %v748_v55 = vshrl.u32 %v8430_v14, %v745_v27  ;;  %v751_v47 = vshrl.u32 %v8431_v22, %v745_v27  ;;  %v753_v60 = vshll.u32 %v8431_v22, %v744_v9  ;;  %v8432_v1 = vmov 2102212464  }
 0x23b   :  { %v754_v50 = vshrl.u32 %v8432_v1, %v745_v27  ;;  %v743_v4 = vshrl.u32 %v742_v20, 5  ;;  %v756_v21 = vshll.u32 %v8432_v1, %v744_v9  ;;  %v8433_v5 = vmov 920167782  }
 0x23c   :  { %v757_v0 = vshrl.u32 %v8433_v5, %v745_v27  ;;  %v759_v43 = vshll.u32 %v8433_v5, %v744_v9  ;;  %v749_v3 = vor.u32 %v748_v55, %v747_v63  ;;  %v752_v40 = vor.u32 %v751_v47, %v750_v15 }
 0x23d   :  { %v755_v53 = vor.u32 %v754_v50, %v753_v60  ;;  %v8434_v29 = vmov 1326507024   ;;  %v6104_v46 = vsel %vm4145_vm1, 0, %v4144_v7  ;;  %v6107_v2 = vmin.u32 %v590_v11, %v6063_v26 }
 0x23e   :  { %v760_v59 = vshrl.u32 %v8434_v29, %v745_v27  ;;  %v6109_v33 = vshrl.u32 %v688_v12, 30  ;;  %v758_v20 = vor.u32 %v757_v0, %v756_v21  ;;  %v778_v51 = vshll.u32 %v738_v28, 8 }
 0x23f   :  { %v4158_v13 = vadd.s32 4294967169, %v837_v58  ;;  %v234_v9 = vsel %vm66_vm3, %v200_v57, %v170_v41  ;;  %v746_v15 = vshrl.u32 %v8429_v8, %v745_v27  ;;  %vm762_vm2 = vcmp.lt.s32.totalorder %v743_v4, 1  ;;  %v6117_v41 = vpop.f32.mrf.mxu0 }
 0x240   :  { %8435 = vst [vmem:[#allocation41_spill] sm:$0xff] %v6109_v33  ;;  %v761_v61 = vor.u32 %v760_v59, %v759_v43  ;;  %vm765_vm4 = vcmp.lt.s32.totalorder %v743_v4, 4  ;;  %v8323_v63 = vand.u32 2147483647, %v6038_v37  ;;  %vm764_vm5 = vcmp.lt.s32.totalorder %v743_v4, 3  ;;  %8436 = vst [vmem:[#allocation42_spill] sm:$0xff] %v6117_v41 }
 0x241   :  { %v767_v7 = vsel %vm765_vm4, %v755_v53, 2102212464  ;;  %v770_v47 = vsel %vm762_vm2, %v749_v3, %v752_v40  ;;  %v771_v60 = vsel %vm765_vm4, %v758_v20, 920167782  ;;  %v690_v12 = vshll.u32 %v6109_v33, 30 }
 0x242   :  { %vm763_vm6 = vcmp.lt.s32.totalorder %v743_v4, 2  ;;  %v772_v21 = vsel %vm764_vm5, %v755_v53, %v771_v60  ;;  %v774_v59 = vsel %vm762_vm2, %v752_v40, %v755_v53  ;;  %v766_v43 = vsel %vm762_vm2, %v746_v15, %v749_v3 }
 0x243   :  { %v773_v58 = vsel %vm763_vm6, %v770_v47, %v772_v21  ;;  %v775_v0 = vsel %vm765_vm4, %v761_v61, 1326507024  ;;  %v843_v57 = vadd.s32 1, %v4158_v13  ;;  %v768_v11 = vsel %vm764_vm5, %v752_v40, %v767_v7 }
 0x244   :  { %v776_v28 = vsel %vm764_vm5, %v758_v20, %v775_v0  ;;  %v6119_v27 = vmul.u32.u64.low %v778_v51, %v773_v58  ;;  %v6120_v55 = vmul.u32.u64.high %v778_v51, %v773_v58, %v6119_v27  ;;  %v840_v33 = vand.u32 8388607, %v8323_v63 }
 0x245   :  { %v777_v50 = vsel %vm763_vm6, %v774_v59, %v776_v28  ;;  %vm844_vm15 = vcmp.gt.s32.totalorder %v843_v57, 0  ;;  %v250_v53 = vcvt.s32.f32 %v234_v9  ;;  %v6127_v3 = vsub.s32 %v6069_v32, %v690_v12 }
 0x246   :  { %v6129_v61 = vmul.u32.u64.low %v778_v51, %v777_v50  ;;  %v6130_v13 = vmul.u32.u64.high %v778_v51, %v777_v50, %v6129_v61  ;;  %v845_v15 = vsel %vm844_vm15, %v843_v57, 0  ;;  %v477_v40 = vadd.s32 %v5831_v49, %v5827_v52 }
 0x247   :  { %v6136_v20 = vmul.f32 %v6117_v41, %v6117_v41  ;;  %v769_v7 = vsel %vm763_vm6, %v766_v43, %v768_v11  ;;  %v847_v47 = vand.u32 31, %v845_v15  ;;  %v8438_v9 = vshll.u32 %v5848_v30, %v5958_v39  ;;  %v91_v11 = vpop.permute.xlu1 %90 }
 0x248   :  { %v8439_v60 = vshll.u32 %v6058_v18, 23  ;;  %v497_v21 = vsub.s32 4294967266, %v6104_v46  ;;  %v788_v52 = vadd.s32 1, %v6120_v55  ;;  %v592_v49 = vclz %v6107_v2 }
 0x249   :  { %8437 = vst [vmem:[#allocation43_spill] sm:$0xff] %v6136_v20  ;;  %v6143_v32 = vor.u32 %v6086_v48, %v8438_v9  ;;  %v841_v59 = vor.u32 8388608, %v840_v33  ;;  %v848_v4 = vsub.s32 32, %v847_v47  ;;  %v271_v43 = vmul.f32 %v5723_v31, %v250_v53 }
 0x24a   :  { %v6147_v12 = vor.u32 4788187, %v8439_v60  ;;  %v693_v58 = vsub.s32 0, %v6127_v3  ;;  %v785_v30 = vmul.u32 %v778_v51, %v769_v7  ;;  %vm787_vm11 = vc.u32 %v6130_v13, %v6119_v27 }
 0x24b   :  { %v850_v39 = vshll.u32 %v8429_v8, %v847_v47  ;;  %v789_v18 = vsel %vm787_vm11, %v788_v52, %v6120_v55  ;;  %v851_v48 = vshrl.u32 %v8430_v14, %v848_v4  ;;  %v853_v0 = vshll.u32 %v8430_v14, %v847_v47 }
 0x24c   :  { %v854_v2 = vshrl.u32 %v8431_v22, %v848_v4  ;;  %v6161_v33 = vadd.s32 %v789_v18, %v785_v30  ;;  %v6163_v57 = vshrl.u32 %v845_v15, 5  ;;  %v856_v31 = vshll.u32 %v8431_v22, %v847_v47 }
 0x24d   :  { %v857_v51 = vshrl.u32 %v8432_v1, %v848_v4  ;;  %v852_v28 = vor.u32 %v851_v48, %v850_v39  ;;  %v859_v53 = vshll.u32 %v8432_v1, %v847_v47  ;;  %v860_v55 = vshrl.u32 %v8433_v5, %v848_v4 }
 0x24e   :  { %v855_v50 = vor.u32 %v854_v2, %v853_v0  ;;  %v493_v7 = vsub.s32 32, %v6104_v46  ;;  %v791_v9 = vadd.s32 536870912, %v6161_v33  ;;  %v292_v15 = vadd.f32 %v5733_v34, %v271_v43 }
 0x24f   :  { %v858_v60 = vor.u32 %v857_v51, %v856_v31  ;;  %v861_v52 = vor.u32 %v860_v55, %v859_v53  ;;  %v862_v30 = vshll.u32 %v8433_v5, %v847_v47  ;;  %v863_v18 = vshrl.u32 %v8434_v29, %v848_v4 }
 0x250   :  { %v498_v39 = vadd.s32 127, %v497_v21  ;;  %v4148_v48 = vadd.s32 4294967294, %v592_v49  ;;  %v4151_v0 = vmin.u32 %v693_v58, %v6127_v3  ;;  %vm865_vm7 = vcmp.lt.s32.totalorder %v6163_v57, 1  ;;  %v203_v21 = vpop.permute.xlu1 %202 }
 0x251   :  { %v864_v2 = vor.u32 %v863_v18, %v862_v30  ;;  %vm868_vm10 = vcmp.lt.s32.totalorder %v6163_v57, 4  ;;  %v873_v63 = vsel %vm865_vm7, %v852_v28, %v855_v50  ;;  %v881_v61 = vshll.u32 %v841_v59, 8 }
 0x252   :  { %v6180_v34 = vshrl.u32 %v791_v9, 30  ;;  %vm867_vm12 = vcmp.lt.s32.totalorder %v6163_v57, 3  ;;  %v874_v47 = vsel %vm868_vm10, %v861_v52, 920167782  ;;  %v6183_v43 = vmul.f32 6.2831855, %v292_v15 }
 0x253   :  { %vm866_vm8 = vcmp.lt.s32.totalorder %v6163_v57, 2  ;;  %v875_v49 = vsel %vm867_vm12, %v858_v60, %v874_v47  ;;  %v877_v58 = vsel %vm865_vm7, %v855_v50, %v858_v60  ;;  %v878_v31 = vsel %vm868_vm10, %v864_v2, 1326507024 }
 0x254   :  { %8440 = vst [vmem:[#allocation44_spill] sm:$0xff] %v6180_v34  ;;  %8441 = vst [vmem:[#allocation45_spill] sm:$0xff] %v6183_v43  ;;  %v695_v51 = vclz %v4151_v0  ;;  %v849_v59 = vshrl.u32 %v8429_v8, %v848_v4  ;;  %v870_v53 = vsel %vm868_vm10, %v858_v60, 2102212464  ;;  %v876_v55 = vsel %vm866_vm8, %v873_v63, %v875_v49  ;;  %v6204_v60 = vpop.f32.mrf.mxu0  ;;  %v94_v49 = vpop.permute.xlu1 %93 }
 0x255   :  { %v499_v9 = vshll.u32 %v498_v39, 23  ;;  %v879_v15 = vsel %vm867_vm12, %v861_v52, %v878_v31  ;;  %v6195_v30 = vmul.u32.u64.low %v881_v61, %v876_v55  ;;  %v6196_v18 = vmul.u32.u64.high %v881_v61, %v876_v55, %v6195_v30  ;;  %8442 = vst [vmem:[#allocation46_spill] sm:$0xff] %v6204_v60 }
 0x256   :  { %v495_v47 = vshrl.u32 %v477_v40, %v493_v7  ;;  %v793_v20 = vshll.u32 %v6180_v34, 30  ;;  %v869_v0 = vsel %vm865_vm7, %v849_v59, %v852_v28  ;;  %v880_v4 = vsel %vm866_vm8, %v877_v58, %v879_v15 }
 0x257   :  { %v871_v63 = vsel %vm867_vm12, %v855_v50, %v870_v53  ;;  %v6208_v39 = vmul.u32.u64.low %v881_v61, %v880_v4  ;;  %v6209_v52 = vmul.u32.u64.high %v881_v61, %v880_v4, %v6208_v39  ;;  %v939_v2 = vand.u32 2139095040, %v6183_v43 }
 0x258   :  { %v494_v40 = vshll.u32 %v5928_v6, %v6104_v46  ;;  %vm4149_vm13 = vcmp.lt.s32.totalorder %v4148_v48, 0  ;;  %v4152_v7 = vadd.s32 4294967294, %v695_v51  ;;  %v171_v28 = vsel %vm67_vm9, %v91_v11, %v5804_v19  ;;  %v206_v39 = vpop.permute.xlu1 %205 }
 0x259   :  { %v500_v58 = vor.u32 4788187, %v499_v9  ;;  %v891_v31 = vadd.s32 1, %v6196_v18  ;;  %v940_v59 = vshrl.u32 %v939_v2, 23  ;;  %v235_v50 = vsel %vm66_vm3, %v203_v21, %v171_v28 }
 0x25a   :  { %v400_v53 = vcvt.s32.f32 %v6143_v32  ;;  %v496_v55 = vor.u32 %v495_v47, %v494_v40  ;;  %v6223_v46 = vmul.f32 %v6204_v60, %v6204_v60  ;;  %v872_v6 = vsel %vm866_vm8, %v869_v0, %v871_v63 }
 0x25b   :  { %v6227_v51 = vsel %vm4149_vm13, 0, %v4148_v48  ;;  %v6230_v19 = vsub.s32 %v6161_v33, %v793_v20  ;;  %vm890_vm14 = vc.u32 %v6209_v52, %v6195_v30  ;;  %v4162_v11 = vadd.s32 4294967169, %v940_v59 }
 0x25c   :  { %8443 = vst [vmem:[#allocation47_spill] sm:$0xff] %v6223_v46  ;;  %vm4153_vm0 = vcmp.lt.s32.totalorder %v4152_v7, 0  ;;  %v892_v32 = vsel %vm890_vm14, %v891_v31, %v6196_v18  ;;  %v8324_v21 = vand.u32 2147483647, %v6183_v43  ;;  %v251_v9 = vcvt.s32.f32 %v235_v50  ;;  %v145_v43 = vpop.permute.xlu1 %144 }
 0x25d   :  { %v8444_v15 = vand.u32 2147483647, %v6147_v12  ;;  %v501_v57 = vand.u32 2147483647, %v500_v58  ;;  %v888_v48 = vmul.u32 %v881_v61, %v872_v6  ;;  %v946_v0 = vadd.s32 1, %v4162_v11 }
 0x25e   :  { %v503_v4 = vcvt.s32.f32 %v496_v55  ;;  %v580_v20 = vadd.s32 %v5917_v45, %v5925_v16  ;;  %v596_v33 = vsub.s32 32, %v6227_v51  ;;  %v600_v63 = vsub.s32 4294967266, %v6227_v51  ;;  %v6254_v45 = vld [vmem:[%s8270_s1] ss:$0 sm:$0xff] }
 0x25f   :  { %v6238_v47 = vmul.f32 %v400_v53, %v8444_v15  ;;  %v6244_v18 = vsel %vm4153_vm0, 0, %v4152_v7  ;;  %v796_v2 = vsub.s32 0, %v6230_v19  ;;  %v6247_v40 = vadd.s32 %v892_v32, %v888_v48 }
 0x260   :  { %vm947_vm1 = vcmp.gt.s32.totalorder %v946_v0, 0  ;;  %v943_v12 = vand.u32 8388607, %v8324_v21  ;;  %v272_v16 = vmul.f32 %v6254_v45, %v251_v9  ;;  %v172_v7 = vsel %vm67_vm9, %v94_v49, %v5819_v38 }
 0x261   :  { %v948_v61 = vsel %vm947_vm1, %v946_v0, 0  ;;  %v6261_v58 = vmul.f32 %v503_v4, %v501_v57  ;;  %v236_v59 = vsel %vm66_vm3, %v206_v39, %v172_v7  ;;  %v6265_v50 = vshrl.u32 %v580_v20, %v596_v33  ;;  %v6280_v57 = vld [vmem:[%s8270_s1 + $0x1] ss:$0 sm:$0xff] }
 0x262   :  { %v950_v31 = vand.u32 31, %v948_v61  ;;  %v6267_v53 = vadd.s32 127, %v600_v63  ;;  %v6271_v55 = vadd.s32 %v5995_v56, %v6002_v42  ;;  %v703_v38 = vsub.s32 4294967266, %v6244_v18 }
 0x263   :  { %v4155_v49 = vmin.u32 %v796_v2, %v6230_v19  ;;  %v894_v11 = vadd.s32 536870912, %v6247_v40  ;;  %v944_v9 = vor.u32 8388608, %v943_v12  ;;  %v949_v15 = vshrl.u32 %v948_v61, 5 }
 0x264   :  { %v951_v32 = vsub.s32 32, %v950_v31  ;;  %v293_v48 = vadd.f32 %v6280_v57, %v272_v16  ;;  %v252_v56 = vcvt.s32.f32 %v236_v59  ;;  %v953_v42 = vshll.u32 %v8429_v8, %v950_v31 }
 0x265   :  { %v956_v4 = vshll.u32 %v8430_v14, %v950_v31  ;;  %v959_v33 = vshll.u32 %v8431_v22, %v950_v31  ;;  %v962_v39 = vshll.u32 %v8432_v1, %v950_v31  ;;  %v704_v12 = vadd.s32 127, %v703_v38 }
 0x266   :  { %v954_v0 = vshrl.u32 %v8430_v14, %v951_v32  ;;  %v957_v20 = vshrl.u32 %v8431_v22, %v951_v32  ;;  %v960_v63 = vshrl.u32 %v8432_v1, %v951_v32  ;;  %v963_v2 = vshrl.u32 %v8433_v5, %v951_v32 }
 0x267   :  { %v6291_v61 = vshrl.u32 %v894_v11, 30  ;;  %v965_v28 = vshll.u32 %v8433_v5, %v950_v31  ;;  %v966_v6 = vshrl.u32 %v8434_v29, %v951_v32  ;;  %v798_v46 = vclz %v4155_v49 }
 0x268   :  { %v955_v16 = vor.u32 %v954_v0, %v953_v42  ;;  %v958_v7 = vor.u32 %v957_v20, %v956_v4  ;;  %v961_v59 = vor.u32 %v960_v63, %v959_v33  ;;  %v964_v21 = vor.u32 %v963_v2, %v962_v39 }
 0x269   :  { %8445 = vst [vmem:[#allocation48_spill] sm:$0xff] %v6291_v61  ;;  %v984_v60 = vshll.u32 %v944_v9, 8  ;;  %v6295_v41 = vmul.f32 6.2831855, %v293_v48  ;;  %v273_v34 = vmul.f32 %v6254_v45, %v252_v56  ;;  %v952_v37 = vshrl.u32 %v8429_v8, %v951_v32 }
 0x26a   :  { %v967_v38 = vor.u32 %v966_v6, %v965_v28  ;;  %vm968_vm2 = vcmp.lt.s32.totalorder %v949_v15, 1  ;;  %vm971_vm4 = vcmp.lt.s32.totalorder %v949_v15, 4  ;;  %vm970_vm5 = vcmp.lt.s32.totalorder %v949_v15, 3 }
 0x26b   :  { %8446 = vst [vmem:[#allocation49_spill] sm:$0xff] %v6295_v41  ;;  %v973_v11 = vsel %vm971_vm4, %v961_v59, 2102212464  ;;  %v976_v42 = vsel %vm968_vm2, %v955_v16, %v958_v7  ;;  %v977_v0 = vsel %vm971_vm4, %v964_v21, 920167782  ;;  %v896_v31 = vshll.u32 %v6291_v61, 30 }
 0x26c   :  { %vm969_vm6 = vcmp.lt.s32.totalorder %v949_v15, 2  ;;  %v978_v4 = vsel %vm970_vm5, %v961_v59, %v977_v0  ;;  %v980_v49 = vsel %vm968_vm2, %v958_v7, %v961_v59  ;;  %v972_v9 = vsel %vm968_vm2, %v952_v37, %v955_v16  ;;  %v209_v16 = vpop.permute.xlu1 %208 }
 0x26d   :  { %v979_v48 = vsel %vm969_vm6, %v976_v42, %v978_v4  ;;  %v981_v20 = vsel %vm971_vm4, %v967_v38, 1326507024  ;;  %v294_v56 = vadd.f32 %v6280_v57, %v273_v34  ;;  %vm320_vm15 = vcmp.lt.s32.totalorder %v5738_v17, 0 }
 0x26e   :  { %v974_v28 = vsel %vm970_vm5, %v958_v7, %v973_v11  ;;  %v982_v6 = vsel %vm970_vm5, %v964_v21, %v981_v20  ;;  %v6303_v32 = vmul.u32.u64.low %v984_v60, %v979_v48  ;;  %v6304_v33 = vmul.u32.u64.high %v984_v60, %v979_v48, %v6303_v32 }
 0x26f   :  { %v597_v63 = vshll.u32 %v6063_v26, %v6227_v51  ;;  %v602_v39 = vshll.u32 %v6267_v53, 23  ;;  %v705_v2 = vshll.u32 %v704_v12, 23  ;;  %v983_v37 = vsel %vm969_vm6, %v980_v49, %v982_v6 }
 0x270   :  { %v4156_v59 = vadd.s32 4294967294, %v798_v46  ;;  %v6312_v34 = vsub.s32 %v6247_v40, %v896_v31  ;;  %v6314_v38 = vmul.u32.u64.low %v984_v60, %v983_v37  ;;  %v6315_v7 = vmul.u32.u64.high %v984_v60, %v983_v37, %v6314_v38 }
 0x271   :  { %vm423_vm11 = vcmp.lt.s32.totalorder %v5754_v54, 0  ;;  %v599_v21 = vor.u32 %v6265_v50, %v597_v63  ;;  %v975_v11 = vsel %vm969_vm6, %v972_v9, %v974_v28  ;;  %v1042_v26 = vand.u32 2139095040, %v6295_v41 }
 0x272   :  { %v173_v51 = vsel %vm67_vm9, %v5873_v44, %v145_v43  ;;  %v8447_v46 = vsub.s32 32, %v6244_v18  ;;  %v994_v53 = vadd.s32 1, %v6304_v33  ;;  %v6328_v12 = vmul.f32 6.2831855, %v294_v56 }
 0x273   :  { %v237_v42 = vsel %vm66_vm3, %v209_v16, %v173_v51  ;;  %v603_v50 = vor.u32 4788187, %v602_v39  ;;  %v700_v15 = vshll.u32 %v6127_v3, %v6244_v18  ;;  %v706_v0 = vor.u32 4788187, %v705_v2  ;;  %v148_v51 = vpop.permute.xlu1 %147 }
 0x274   :  { %v701_v40 = vshrl.u32 %v6271_v55, %v8447_v46  ;;  %8448 = vst [vmem:[#allocation50_spill] sm:$0xff] %v6328_v12  ;;  %v1043_v31 = vshrl.u32 %v1042_v26, 23  ;;  %vm4157_vm7 = vcmp.lt.s32.totalorder %v4156_v59, 0  ;;  %v899_v44 = vsub.s32 0, %v6312_v34  ;;  %v6337_v55 = vpop.f32.mrf.mxu0 }
 0x275   :  { %v991_v43 = vmul.u32 %v984_v60, %v975_v11  ;;  %vm993_vm10 = vc.u32 %v6315_v7, %v6303_v32  ;;  %8449 = vst [vmem:[#allocation51_spill] sm:$0xff] %v6337_v55  ;;  %v8335_v49 = vand.u32 2147483647, %v6295_v41  ;;  %v253_v48 = vcvt.s32.f32 %v237_v42 }
 0x276   :  { %v995_v4 = vsel %vm993_vm10, %v994_v53, %v6304_v33  ;;  %v4166_v9 = vadd.s32 4294967169, %v1043_v31  ;;  %v505_v20 = vxor.u32 2147483648, %v6261_v58  ;;  %v702_v3 = vor.u32 %v701_v40, %v700_v15  ;;  %v6357_v38 = vpop.f32.mrf.mxu0 }
 0x277   :  { %v6342_v18 = vadd.s32 %v995_v4, %v991_v43  ;;  %v1145_v56 = vand.u32 2139095040, %v6328_v12  ;;  %v8450_v60 = vxor.u32 2147483648, %v6238_v47  ;;  %v604_v6 = vand.u32 2147483647, %v603_v50  ;;  %8451 = vst [vmem:[#allocation52_spill] sm:$0xff] %v6357_v38 }
 0x278   :  { %v1049_v33 = vadd.s32 1, %v4166_v9  ;;  %v606_v39 = vcvt.s32.f32 %v599_v21  ;;  %v707_v2 = vand.u32 2147483647, %v706_v0  ;;  %v6354_v37 = vsel %vm4157_vm7, 0, %v4156_v59 }
 0x279   :  { %v6350_v28 = vsel %vm320_vm15, %v8450_v60, %v6238_v47  ;;  %v4159_v16 = vmin.u32 %v899_v44, %v6312_v34  ;;  %v1046_v11 = vand.u32 8388607, %v8335_v49  ;;  %v1146_v26 = vshrl.u32 %v1145_v56, 23 }
 0x27a   :  { %vm1050_vm12 = vcmp.gt.s32.totalorder %v1049_v33, 0  ;;  %v274_v47 = vmul.f32 %v6254_v45, %v253_v48  ;;  %v6365_v21 = vsel %vm423_vm11, %v505_v20, %v6261_v58  ;;  %v709_v46 = vcvt.s32.f32 %v702_v3 }
 0x27b   :  { %v997_v59 = vadd.s32 536870912, %v6342_v18  ;;  %v1051_v40 = vsel %vm1050_vm12, %v1049_v33, 0  ;;  %v6368_v53 = vmul.f32 %v606_v39, %v604_v6  ;;  %v6372_v42 = vmul.f32 %v6337_v55, %v6337_v55 }
 0x27c   :  { %v6376_v50 = vmul.f32 %v6357_v38, %v6357_v38  ;;  %v1053_v15 = vand.u32 31, %v1051_v40  ;;  %v6378_v0 = vmul.f32 %v709_v46, %v707_v2  ;;  %v806_v58 = vsub.s32 4294967266, %v6354_v37 }
 0x27d   :  { %8452 = vst [vmem:[#allocation53_spill] sm:$0xff] %v6372_v42  ;;  %v901_v31 = vclz %v4159_v16  ;;  %v174_v44 = vsel %vm67_vm9, %v5896_v62, %v148_v51  ;;  %v1047_v43 = vor.u32 8388608, %v1046_v11  ;;  %v4170_v9 = vadd.s32 4294967169, %v1146_v26 }
 0x27e   :  { %8453 = vst [vmem:[#allocation54_spill] sm:$0xff] %v6376_v50  ;;  %v1054_v4 = vsub.s32 32, %v1053_v15  ;;  %v295_v48 = vadd.f32 %v6280_v57, %v274_v47  ;;  %v6385_v20 = vshrl.u32 %v997_v59, 30  ;;  %v1052_v3 = vshrl.u32 %v1051_v40, 5 }
 0x27f   :  { %v1056_v56 = vshll.u32 %v8429_v8, %v1053_v15  ;;  %v1059_v60 = vshll.u32 %v8430_v14, %v1053_v15  ;;  %v1062_v39 = vshll.u32 %v8431_v22, %v1053_v15  ;;  %v1065_v62 = vshll.u32 %v8432_v1, %v1053_v15 }
 0x280   :  { %8454 = vst [vmem:[#allocation55_spill] sm:$0xff] %v6385_v20  ;;  %v1057_v6 = vshrl.u32 %v8430_v14, %v1054_v4  ;;  %v1060_v33 = vshrl.u32 %v8431_v22, %v1054_v4  ;;  %v1063_v2 = vshrl.u32 %v8432_v1, %v1054_v4  ;;  %v1066_v16 = vshrl.u32 %v8433_v5, %v1054_v4 }
 0x281   :  { %v1068_v11 = vshll.u32 %v8433_v5, %v1053_v15  ;;  %v1069_v26 = vshrl.u32 %v8434_v29, %v1054_v4  ;;  %v1087_v46 = vshll.u32 %v1047_v43, 8  ;;  %v1152_v59 = vadd.s32 1, %v4170_v9 }
 0x282   :  { %v1058_v47 = vor.u32 %v1057_v6, %v1056_v56  ;;  %v1061_v51 = vor.u32 %v1060_v33, %v1059_v60  ;;  %v1064_v40 = vor.u32 %v1063_v2, %v1062_v39  ;;  %v1067_v49 = vor.u32 %v1066_v16, %v1065_v62  ;;  %v212_v2 = vpop.permute.xlu0 %211 }
 0x283   :  { %v1070_v63 = vor.u32 %v1069_v26, %v1068_v11  ;;  %vm1071_vm8 = vcmp.lt.s32.totalorder %v1052_v3, 1  ;;  %v999_v50 = vshll.u32 %v6385_v20, 30  ;;  %v1055_v42 = vshrl.u32 %v8429_v8, %v1054_v4 }
 0x284   :  { %vm1074_vm13 = vcmp.lt.s32.totalorder %v1052_v3, 4  ;;  %v1079_v38 = vsel %vm1071_vm8, %v1058_v47, %v1061_v51  ;;  %vm1073_vm14 = vcmp.lt.s32.totalorder %v1052_v3, 3  ;;  %v1083_v15 = vsel %vm1071_vm8, %v1061_v51, %v1064_v40 }
 0x285   :  { %v1076_v55 = vsel %vm1074_vm13, %v1064_v40, 2102212464  ;;  %v1080_v61 = vsel %vm1074_vm13, %v1067_v49, 920167782  ;;  %vm1072_vm0 = vcmp.lt.s32.totalorder %v1052_v3, 2  ;;  %vm1153_vm1 = vcmp.gt.s32.totalorder %v1152_v59, 0 }
 0x286   :  { %v1081_v41 = vsel %vm1073_vm14, %v1064_v40, %v1080_v61  ;;  %v1084_v56 = vsel %vm1074_vm13, %v1070_v63, 1326507024  ;;  %v1075_v43 = vsel %vm1071_vm8, %v1055_v42, %v1058_v47  ;;  %v1077_v9 = vsel %vm1073_vm14, %v1061_v51, %v1076_v55 }
 0x287   :  { %v1082_v60 = vsel %vm1072_vm0, %v1079_v38, %v1081_v41  ;;  %v1085_v6 = vsel %vm1073_vm14, %v1067_v49, %v1084_v56  ;;  %v4160_v33 = vadd.s32 4294967294, %v901_v31  ;;  %v8344_v61 = vand.u32 2147483647, %v6328_v12 }
 0x288   :  { %v1086_v39 = vsel %vm1072_vm0, %v1083_v15, %v1085_v6  ;;  %v6401_v62 = vmul.u32.u64.low %v1087_v46, %v1082_v60  ;;  %v6402_v4 = vmul.u32.u64.high %v1087_v46, %v1082_v60, %v6401_v62  ;;  %v1154_v63 = vsel %vm1153_vm1, %v1152_v59, 0 }
 0x289   :  { %v6405_v16 = vmul.u32.u64.low %v1087_v46, %v1086_v39  ;;  %v6406_v11 = vmul.u32.u64.high %v1087_v46, %v1086_v39, %v6405_v16  ;;  %v6412_v41 = vadd.s32 %v6119_v27, %v6130_v13  ;;  %v1078_v55 = vsel %vm1072_vm0, %v1075_v43, %v1077_v9 }
 0x28a   :  { %v1156_v49 = vand.u32 31, %v1154_v63  ;;  %v6417_v31 = vsub.s32 %v6342_v18, %v999_v50  ;;  %v6419_v26 = vmul.f32 6.2831855, %v295_v48  ;;  %v6423_v47 = vsel %vm66_vm3, %v212_v2, %v174_v44 }
 0x28b   :  { %v6426_v59 = vadd.s32 127, %v806_v58  ;;  %v1097_v27 = vadd.s32 1, %v6402_v4  ;;  %vm4161_vm2 = vcmp.lt.s32.totalorder %v4160_v33, 0  ;;  %v1094_v3 = vmul.u32 %v1087_v46, %v1078_v55 }
 0x28c   :  { %8455 = vst [vmem:[#allocation56_spill] sm:$0xff] %v6419_v26  ;;  %v1157_v13 = vsub.s32 32, %v1156_v49  ;;  %vm1096_vm4 = vc.u32 %v6406_v11, %v6401_v62  ;;  %v1149_v18 = vand.u32 8388607, %v8344_v61  ;;  %v1159_v44 = vshll.u32 %v8429_v8, %v1156_v49 }
 0x28d   :  { %v1098_v50 = vsel %vm1096_vm4, %v1097_v27, %v6402_v4  ;;  %v1002_v40 = vsub.s32 0, %v6417_v31  ;;  %v1162_v56 = vshll.u32 %v8430_v14, %v1156_v49  ;;  %v1248_v46 = vand.u32 2139095040, %v6419_v26 }
 0x28e   :  { %v1160_v48 = vshrl.u32 %v8430_v14, %v1157_v13  ;;  %v1163_v58 = vshrl.u32 %v8431_v22, %v1157_v13  ;;  %v1099_v15 = vadd.s32 %v1098_v50, %v1094_v3  ;;  %v1155_v43 = vshrl.u32 %v1154_v63, 5 }
 0x28f   :  { %v1165_v60 = vshll.u32 %v8431_v22, %v1156_v49  ;;  %v1166_v6 = vshrl.u32 %v8432_v1, %v1157_v13  ;;  %v1168_v2 = vshll.u32 %v8432_v1, %v1156_v49  ;;  %v1169_v16 = vshrl.u32 %v8433_v5, %v1157_v13 }
 0x290   :  { %v1161_v9 = vor.u32 %v1160_v48, %v1159_v44  ;;  %v1100_v39 = vadd.s32 536870912, %v1099_v15  ;;  %v1164_v4 = vor.u32 %v1163_v58, %v1162_v56  ;;  %vm526_vm5 = vcmp.lt.s32.totalorder %v5817_v35, 0 }
 0x291   :  { %v6446_v55 = vsel %vm4161_vm2, 0, %v4160_v33  ;;  %v1167_v27 = vor.u32 %v1166_v6, %v1165_v60  ;;  %v1171_v3 = vshll.u32 %v8433_v5, %v1156_v49  ;;  %v1172_v63 = vshrl.u32 %v8434_v29, %v1157_v13 }
 0x292   :  { %vm629_vm6 = vcmp.lt.s32.totalorder %v5855_v24, 0  ;;  %v4163_v50 = vmin.u32 %v1002_v40, %v6417_v31  ;;  %v6452_v44 = vshrl.u32 %v1100_v39, 30  ;;  %v1150_v48 = vor.u32 8388608, %v1149_v18 }
 0x293   :  { %v1170_v58 = vor.u32 %v1169_v16, %v1168_v2  ;;  %v1173_v56 = vor.u32 %v1172_v63, %v1171_v3  ;;  %vm1174_vm7 = vcmp.lt.s32.totalorder %v1155_v43, 1  ;;  %v1249_v51 = vshrl.u32 %v1248_v46, 23 }
 0x294   :  { %8456 = vst [vmem:[#allocation57_spill] sm:$0xff] %v6452_v44  ;;  %v1102_v33 = vshll.u32 %v6452_v44, 30  ;;  %vm1176_vm10 = vcmp.lt.s32.totalorder %v1155_v43, 3  ;;  %vm1177_vm12 = vcmp.lt.s32.totalorder %v1155_v43, 4  ;;  %v1182_v49 = vsel %vm1174_vm7, %v1161_v9, %v1164_v4 }
 0x295   :  { %v1179_v60 = vsel %vm1177_vm12, %v1167_v27, 2102212464  ;;  %v1183_v6 = vsel %vm1177_vm12, %v1170_v58, 920167782  ;;  %v1186_v38 = vsel %vm1174_vm7, %v1164_v4, %v1167_v27  ;;  %v1187_v40 = vsel %vm1177_vm12, %v1173_v56, 1326507024 }
 0x296   :  { %v1004_v39 = vclz %v4163_v50  ;;  %v1158_v18 = vshrl.u32 %v8429_v8, %v1157_v13  ;;  %vm1175_vm8 = vcmp.lt.s32.totalorder %v1155_v43, 2  ;;  %v1184_v2 = vsel %vm1176_vm10, %v1167_v27, %v1183_v6  ;;  %v6497_v6 = vpop.f32.mrf.mxu0 }
 0x297   :  { %v1185_v16 = vsel %vm1175_vm8, %v1182_v49, %v1184_v2  ;;  %v1188_v46 = vsel %vm1176_vm10, %v1170_v58, %v1187_v40  ;;  %v1190_v3 = vshll.u32 %v1150_v48, 8  ;;  %v4174_v63 = vadd.s32 4294967169, %v1249_v51  ;;  %8461 = vst [vmem:[#allocation59_spill] sm:$0xff] %v6497_v6 }
 0x298   :  { %v6462_v61 = vsub.s32 %v1099_v15, %v1102_v33  ;;  %v1178_v42 = vsel %vm1174_vm7, %v1158_v18, %v1161_v9  ;;  %v1180_v44 = vsel %vm1176_vm10, %v1164_v4, %v1179_v60  ;;  %v1189_v56 = vsel %vm1175_vm8, %v1186_v38, %v1188_v46 }
 0x299   :  { %v6467_v50 = vmul.u32.u64.low %v1190_v3, %v1189_v56  ;;  %v6468_v20 = vmul.u32.u64.high %v1190_v3, %v1189_v56, %v6467_v50  ;;  %v6470_v13 = vmul.u32.u64.low %v1190_v3, %v1185_v16  ;;  %v6471_v12 = vmul.u32.u64.high %v1190_v3, %v1185_v16, %v6470_v13 }
 0x29a   :  { %v8457_v27 = vxor.u32 2147483648, %v6368_v53  ;;  %v4164_v15 = vadd.s32 4294967294, %v1004_v39  ;;  %v1255_v9 = vadd.s32 1, %v4174_v63  ;;  %v254_v4 = vcvt.s32.f32 %v6423_v47 }
 0x29b   :  { %v8458_v38 = vxor.u32 2147483648, %v6378_v0  ;;  %v803_v58 = vshll.u32 %v6230_v19, %v6354_v37  ;;  %v8460_v33 = vsub.s32 32, %v6354_v37  ;;  %v808_v60 = vshll.u32 %v6426_v59, 23 }
 0x29c   :  { %v6479_v51 = vsel %vm526_vm5, %v8457_v27, %v6368_v53  ;;  %v1181_v53 = vsel %vm1175_vm8, %v1178_v42, %v1180_v44  ;;  %v909_v47 = vsub.s32 4294967266, %v6446_v55  ;;  %v8462_v40 = vand.u32 2147483647, %v6419_v26 }
 0x29d   :  { %v6487_v48 = vsel %vm629_vm6, %v8458_v38, %v6378_v0  ;;  %v804_v49 = vshrl.u32 %v6412_v41, %v8460_v33  ;;  %vm1256_vm13 = vcmp.gt.s32.totalorder %v1255_v9, 0  ;;  %v1105_v0 = vsub.s32 0, %v6462_v61 }
 0x29e   :  { %8459 = vst [vmem:[#allocation58_spill] sm:$0xff] %v6487_v48  ;;  %v1252_v39 = vand.u32 8388607, %v8462_v40  ;;  %vm1199_vm14 = vc.u32 %v6468_v20, %v6470_v13  ;;  %v1200_v19 = vadd.s32 1, %v6471_v12  ;;  %v1257_v37 = vsel %vm1256_vm13, %v1255_v9, 0 }
 0x29f   :  { %vm4165_vm0 = vcmp.lt.s32.totalorder %v4164_v15, 0  ;;  %v1197_v42 = vmul.u32 %v1190_v3, %v1181_v53  ;;  %v1259_v41 = vand.u32 31, %v1257_v37  ;;  %v275_v59 = vmul.f32 %v6254_v45, %v254_v4 }
 0x2a0   :  { %v6506_v43 = vor.u32 %v804_v49, %v803_v58  ;;  %v889_v44 = vadd.s32 %v6195_v30, %v6209_v52  ;;  %v1201_v18 = vsel %vm1199_vm14, %v1200_v19, %v6471_v12  ;;  %v6513_v2 = vmul.f32 %v6497_v6, %v6497_v6 }
 0x2a1   :  { %v6515_v16 = vor.u32 4788187, %v808_v60  ;;  %v905_v46 = vsub.s32 32, %v6446_v55  ;;  %v1202_v63 = vadd.s32 %v1201_v18, %v1197_v42  ;;  %v1260_v3 = vsub.s32 32, %v1259_v41 }
 0x2a2   :  { %8463 = vst [vmem:[#allocation60_spill] sm:$0xff] %v6513_v2  ;;  %v910_v56 = vadd.s32 127, %v909_v47  ;;  %v6518_v50 = vsel %vm4165_vm0, 0, %v4164_v15  ;;  %v4167_v27 = vmin.u32 %v1105_v0, %v6462_v61  ;;  %v1253_v9 = vor.u32 8388608, %v1252_v39 }
 0x2a3   :  { %v1203_v4 = vadd.s32 536870912, %v1202_v63  ;;  %v1262_v30 = vshll.u32 %v8429_v8, %v1259_v41  ;;  %v1265_v52 = vshll.u32 %v8430_v14, %v1259_v41  ;;  %v296_v12 = vadd.f32 %v6280_v57, %v275_v59 }
 0x2a4   :  { %v1263_v38 = vshrl.u32 %v8430_v14, %v1260_v3  ;;  %v1266_v58 = vshrl.u32 %v8431_v22, %v1260_v3  ;;  %v1268_v33 = vshll.u32 %v8431_v22, %v1259_v41  ;;  %v1269_v49 = vshrl.u32 %v8432_v1, %v1260_v3 }
 0x2a5   :  { %v6528_v15 = vshrl.u32 %v1203_v4, 30  ;;  %v1258_v53 = vshrl.u32 %v1257_v37, 5  ;;  %v1271_v60 = vshll.u32 %v8432_v1, %v1259_v41  ;;  %v1272_v47 = vshrl.u32 %v8433_v5, %v1260_v3 }
 0x2a6   :  { %v906_v40 = vshll.u32 %v6312_v34, %v6446_v55  ;;  %v1264_v39 = vor.u32 %v1263_v38, %v1262_v30  ;;  %v1267_v0 = vor.u32 %v1266_v58, %v1265_v52  ;;  %v1270_v19 = vor.u32 %v1269_v49, %v1268_v33 }
 0x2a7   :  { %8464 = vst [vmem:[#allocation61_spill] sm:$0xff] %v6528_v15  ;;  %v8465_v42 = vand.u32 2147483647, %v5738_v17  ;;  %v907_v18 = vshrl.u32 %v889_v44, %v905_v46  ;;  %v1205_v4 = vshll.u32 %v6528_v15, 30  ;;  %v1273_v37 = vor.u32 %v1272_v47, %v1271_v60 }
 0x2a8   :  { %v6541_v2 = vmul.f32 6.2831855, %v296_v12  ;;  %v911_v6 = vshll.u32 %v910_v56, 23  ;;  %v1012_v26 = vsub.s32 4294967266, %v6518_v50  ;;  %v1274_v34 = vshll.u32 %v8433_v5, %v1259_v41 }
 0x2a9   :  { %vm6536_vm1 = vcmp.le.f32.partialorder %v8465_v42, 0.7853982  ;;  %v1275_v55 = vshrl.u32 %v8434_v29, %v1260_v3  ;;  %v1107_v30 = vclz %v4167_v27  ;;  %vm1277_vm2 = vcmp.lt.s32.totalorder %v1258_v53, 1 }
 0x2aa   :  { %vm1280_vm4 = vcmp.lt.s32.totalorder %v1258_v53, 4  ;;  %v1293_v52 = vshll.u32 %v1253_v9, 8  ;;  %v6546_v38 = vsub.s32 %v1202_v63, %v1205_v4  ;;  %v1285_v46 = vsel %vm1277_vm2, %v1264_v39, %v1267_v0 }
 0x2ab   :  { %v1276_v58 = vor.u32 %v1275_v55, %v1274_v34  ;;  %v1282_v44 = vsel %vm1280_vm4, %v1270_v19, 2102212464  ;;  %v1261_v33 = vshrl.u32 %v8429_v8, %v1260_v3  ;;  %vm1279_vm7 = vcmp.lt.s32.totalorder %v1258_v53, 3 }
 0x2ac   :  { %v1286_v12 = vsel %vm1280_vm4, %v1273_v37, 920167782  ;;  %v1351_v56 = vand.u32 2139095040, %v6541_v2  ;;  %vm1278_vm10 = vcmp.lt.s32.totalorder %v1258_v53, 2  ;;  %v1289_v41 = vsel %vm1277_vm2, %v1267_v0, %v1270_v19 }
 0x2ad   :  { %v1287_v49 = vsel %vm1279_vm7, %v1270_v19, %v1286_v12  ;;  %v1290_v60 = vsel %vm1280_vm4, %v1276_v58, 1326507024  ;;  %v1281_v47 = vsel %vm1277_vm2, %v1261_v33, %v1264_v39  ;;  %v1283_v27 = vsel %vm1279_vm7, %v1267_v0, %v1282_v44 }
 0x2ae   :  { %v1288_v42 = vsel %vm1278_vm10, %v1285_v46, %v1287_v49  ;;  %v1291_v9 = vsel %vm1279_vm7, %v1273_v37, %v1290_v60  ;;  %v1208_v63 = vsub.s32 0, %v6546_v38  ;;  %v912_v3 = vor.u32 4788187, %v911_v6 }
 0x2af   :  { %v1292_v4 = vsel %vm1278_vm10, %v1289_v41, %v1291_v9  ;;  %v6553_v34 = vmul.u32.u64.low %v1293_v52, %v1288_v42  ;;  %v6554_v55 = vmul.u32.u64.high %v1293_v52, %v1288_v42, %v6553_v34  ;;  %v406_v39 = vsel %vm6536_vm1, %v5738_v17, %v6350_v28 }
 0x2b0   :  { %v6557_v15 = vmul.u32.u64.low %v1293_v52, %v1292_v4  ;;  %v6558_v48 = vmul.u32.u64.high %v1293_v52, %v1292_v4, %v6557_v15  ;;  %v812_v0 = vcvt.s32.f32 %v6506_v43  ;;  %v4168_v19 = vadd.s32 4294967294, %v1107_v30 }
 0x2b1   :  { %v1284_v37 = vsel %vm1278_vm10, %v1281_v47, %v1283_v27  ;;  %v1352_v58 = vshrl.u32 %v1351_v56, 23  ;;  %v810_v44 = vand.u32 2147483647, %v6515_v16  ;;  %v908_v46 = vor.u32 %v907_v18, %v906_v40 }
 0x2b2   :  { %v1013_v33 = vadd.s32 127, %v1012_v26  ;;  %v8357_v6 = vand.u32 2147483647, %v6541_v2  ;;  %v4171_v12 = vmin.u32 %v1208_v63, %v6546_v38  ;;  %v1303_v15 = vadd.s32 1, %v6554_v55  ;;  %v103_v26 = vpop.permute.xlu1 %102 }
 0x2b3   :  { %v4178_v49 = vadd.s32 4294967169, %v1352_v58  ;;  %4707 = vsinq.f32 %v406_v39  ;;  %v913_v41 = vand.u32 2147483647, %v912_v3  ;;  %v1008_v28 = vsub.s32 32, %v6518_v50 }
 0x2b4   :  { %v1300_v43 = vmul.u32 %v1293_v52, %v1284_v37  ;;  %vm1302_vm12 = vc.u32 %v6558_v48, %v6553_v34  ;;  %vm4169_vm8 = vcmp.lt.s32.totalorder %v4168_v19, 0  ;;  %v8468_v40 = vsub.s32 4, %v5829_v23 }
 0x2b5   :  { %v1304_v16 = vsel %vm1302_vm12, %v1303_v15, %v6554_v55  ;;  %v1358_v53 = vadd.s32 1, %v4178_v49  ;;  %v1014_v30 = vshll.u32 %v1013_v33, 23  ;;  %v1355_v60 = vand.u32 8388607, %v8357_v6 }
 0x2b6   :  { %v405_v18 = vsel %vm320_vm15, %v8468_v40, %v5829_v23  ;;  %v1305_v56 = vadd.s32 %v1304_v16, %v1300_v43  ;;  %4709 = vcosq.f32 %v406_v39  ;;  %v915_v52 = vcvt.s32.f32 %v908_v46 }
 0x2b7   :  { %v992_v47 = vadd.s32 %v6303_v32, %v6315_v7  ;;  %v1210_v27 = vclz %v4171_v12  ;;  %vm1359_vm13 = vcmp.gt.s32.totalorder %v1358_v53, 0  ;;  %v6583_v42 = vsel %vm4169_vm8, 0, %v4168_v19 }
 0x2b8   :  { %v1306_v9 = vadd.s32 536870912, %v1305_v56  ;;  %v1360_v63 = vsel %vm1359_vm13, %v1358_v53, 0  ;;  %v407_v4 = vsel %vm6536_vm1, 0, %v405_v18  ;;  %v6587_v23 = vmul.f32 %v812_v0, %v810_v44  ;;  %v151_v44 = vpop.permute.xlu1 %150 }
 0x2b9   :  { %v6589_v55 = vmul.f32 %v915_v52, %v913_v41  ;;  %v1009_v3 = vshll.u32 %v6417_v31, %v6518_v50  ;;  %v1362_v39 = vand.u32 31, %v1360_v63  ;;  %v6593_v37 = vshrl.u32 %v992_v47, %v1008_v28 }
 0x2ba   :  { %v6595_v32 = vor.u32 4788187, %v1014_v30  ;;  %v6597_v7 = vshrl.u32 %v1306_v9, 30  ;;  %v1356_v19 = vor.u32 8388608, %v1355_v60  ;;  %v6600_v46 = vadd.s32 4294967294, %v1210_v27  ;;  %v215_v9 = vpop.permute.xlu0 %214 }
 0x2bb   :  { %v1363_v59 = vsub.s32 32, %v1362_v39  ;;  %v6602_v0 = vand.u32 3, %v407_v4  ;;  %v1361_v12 = vshrl.u32 %v1360_v63, 5  ;;  %v1374_v15 = vshll.u32 %v8432_v1, %v1362_v39 }
 0x2bc   :  { %8469 = vst [vmem:[#allocation62_spill] sm:$0xff] %v6597_v7  ;;  %v1308_v33 = vshll.u32 %v6597_v7, 30  ;;  %v1377_v49 = vshll.u32 %v8433_v5, %v1362_v39  ;;  %v1365_v43 = vshll.u32 %v8429_v8, %v1362_v39  ;;  %v1368_v53 = vshll.u32 %v8430_v14, %v1362_v39  ;;  %v106_v31 = vpop.permute.xlu1 %105 }
 0x2bd   :  { %v1375_v41 = vshrl.u32 %v8433_v5, %v1363_v59  ;;  %v1378_v28 = vshrl.u32 %v8434_v29, %v1363_v59  ;;  %v1366_v16 = vshrl.u32 %v8430_v14, %v1363_v59  ;;  %v1369_v40 = vshrl.u32 %v8431_v22, %v1363_v59 }
 0x2be   :  { %v6613_v18 = vshll.u32 %v1356_v19, 8  ;;  %v175_v30 = vsel %vm67_vm9, %v103_v26, %v151_v44  ;;  %vm413_vm15 = vcmp.eq.s32.totalorder %v6602_v0, 0  ;;  %vm1383_vm14 = vcmp.lt.s32.totalorder %v1361_v12, 4 }
 0x2bf   :  { %v1376_v60 = vor.u32 %v1375_v41, %v1374_v15  ;;  %v1379_v52 = vor.u32 %v1378_v28, %v1377_v49  ;;  %v1367_v47 = vor.u32 %v1366_v16, %v1365_v43  ;;  %v1370_v63 = vor.u32 %v1369_v40, %v1368_v53 }
 0x2c0   :  { %v4708_v27 = vpop.eup %4707  ;;  %v1371_v4 = vshll.u32 %v8431_v22, %v1362_v39  ;;  %v1372_v6 = vshrl.u32 %v8432_v1, %v1363_v59  ;;  %vm1966_vm0 = vcmp.lt.s32.totalorder %v5155_v36, 96  ;;  %v6621_v19 = vsub.s32 %v1305_v56, %v1308_v33 }
 0x2c1   :  { %v1389_v58 = vsel %vm1383_vm14, %v1376_v60, 920167782  ;;  %v1393_v26 = vsel %vm1383_vm14, %v1379_v52, 1326507024  ;;  %v239_v44 = vsel %vm66_vm3, %v215_v9, %v175_v30  ;;  %vm1380_vm1 = vcmp.lt.s32.totalorder %v1361_v12, 1 }
 0x2c2   :  { %v1373_v15 = vor.u32 %v1372_v6, %v1371_v4  ;;  %vm1382_vm2 = vcmp.lt.s32.totalorder %v1361_v12, 3  ;;  %vm416_vm4 = vcmp.eq.s32.totalorder %v6602_v0, 2  ;;  %v1364_v39 = vshrl.u32 %v8429_v8, %v1363_v59 }
 0x2c3   :  { %v4710_v49 = vpop.eup %4709  ;;  %v1388_v41 = vsel %vm1380_vm1, %v1367_v47, %v1370_v63  ;;  %v1394_v28 = vsel %vm1382_vm2, %v1376_v60, %v1393_v26  ;;  %v414_v43 = vxor.u32 2147483648, %v4708_v27  ;;  %vm1381_vm7 = vcmp.lt.s32.totalorder %v1361_v12, 2 }
 0x2c4   :  { %v1385_v56 = vsel %vm1383_vm14, %v1373_v15, 2102212464  ;;  %v1390_v33 = vsel %vm1382_vm2, %v1373_v15, %v1389_v58  ;;  %v255_v16 = vcvt.s32.f32 %v239_v44  ;;  %v1311_v53 = vsub.s32 0, %v6621_v19 }
 0x2c5   :  { %v1384_v40 = vsel %vm1380_vm1, %v1364_v39, %v1367_v47  ;;  %v1391_v6 = vsel %vm1381_vm7, %v1388_v41, %v1390_v33  ;;  %v1392_v30 = vsel %vm1380_vm1, %v1370_v63, %v1373_v15  ;;  %v1386_v52 = vsel %vm1382_vm2, %v1370_v63, %v1385_v56 }
 0x2c6   :  { %v1395_v9 = vsel %vm1381_vm7, %v1392_v30, %v1394_v28  ;;  %v415_v59 = vsel %vm413_vm15, %v4710_v49, %v414_v43  ;;  %v417_v4 = vxor.u32 2147483648, %v4710_v49  ;;  %v1095_v47 = vadd.s32 %v6401_v62, %v6406_v11 }
 0x2c7   :  { %v6636_v60 = vmul.u32.u64.low %v6613_v18, %v1395_v9  ;;  %v6637_v26 = vmul.u32.u64.high %v6613_v18, %v1395_v9, %v6636_v60  ;;  %v6640_v58 = vmul.u32.u64.low %v6613_v18, %v1391_v6  ;;  %v6641_v44 = vmul.u32.u64.high %v6613_v18, %v1391_v6, %v6640_v58 }
 0x2c8   :  { %vm412_vm10 = vcmp.lt.s32.totalorder %v6602_v0, 2  ;;  %v418_v63 = vsel %vm416_vm4, %v417_v4, %v4708_v27  ;;  %v276_v15 = vmul.f32 %v6254_v45, %v255_v16  ;;  %v4175_v49 = vmin.u32 %v1311_v53, %v6621_v19 }
 0x2c9   :  { %v1387_v39 = vsel %vm1381_vm7, %v1384_v40, %v1386_v52  ;;  %vm410_vm12 = vweird.f32 %v5738_v17  ;;  %v419_v41 = vsel %vm412_vm10, %v415_v59, %v418_v63  ;;  %v1011_v28 = vor.u32 %v6593_v37, %v1009_v3  ;;  %v8475_v52 = vld [vmem:[#allocation17_spill] sm:$0xff]  ;;  %v8476_v59 = vld [vmem:[#allocation19_spill] sm:$0xff] }
 0x2ca   :  { %v1016_v62 = vand.u32 2147483647, %v6595_v32  ;;  %v8470_v11 = vsub.s32 4294967266, %v6583_v42  ;;  %v420_v27 = vsel %vm410_vm12, nan, %v419_v41  ;;  %vm4173_vm8 = vcmp.lt.s32.totalorder %v6600_v46, 0 }
 0x2cb   :  { %vm1405_vm13 = vc.u32 %v6637_v26, %v6640_v58  ;;  %v1406_v45 = vadd.s32 1, %v6641_v44  ;;  %v6666_v17 = vsel %vm1966_vm0, %v420_v27, 0.0  ;;  %v1403_v50 = vmul.u32 %v6613_v18, %v1387_v39  ;;  %v8478_v39 = vld [vmem:[#allocation25_spill] sm:$0xff] }
 0x2cc   :  { %v1116_v0 = vadd.s32 127, %v8470_v11  ;;  %8471 = vst [vmem:[#allocation63_spill] sm:$0xff] %v6666_v17  ;;  %v3009_v3 = vadd.f32 %v5846_v25, %v6666_v17  ;;  %v297_v37 = vadd.f32 %v6280_v57, %v276_v15  ;;  %v8472_v32 = vand.u32 2147483647, %v5754_v54  ;;  %v8479_v11 = vld [vmem:[#allocation32_spill] sm:$0xff] }
 0x2cd   :  { %v1313_v43 = vclz %v4175_v49  ;;  %v1407_v56 = vsel %vm1405_vm13, %v1406_v45, %v6641_v44  ;;  %v3089_v33 = vmul.f32 %v6666_v17, %v6666_v17  ;;  %v1111_v16 = vsub.s32 32, %v6583_v42  ;;  %v154_v44 = vpop.permute.xlu0 %153  ;;  %v8487_v17 = vld [vmem:[#allocation27_spill] sm:$0xff] }
 0x2ce   :  { %vm6674_vm15 = vcmp.le.f32.partialorder %v8472_v32, 0.7853982  ;;  %v1213_v57 = vsel %vm4173_vm8, 0, %v6600_v46  ;;  %v1408_v53 = vadd.s32 %v1407_v56, %v1403_v50  ;;  %v3010_v40 = vadd.f32 %v3009_v3, %v5857_v10 }
 0x2cf   :  { %v509_v18 = vsel %vm6674_vm15, %v5754_v54, %v6365_v21  ;;  %v1018_v6 = vcvt.s32.f32 %v1011_v28  ;;  %v6688_v30 = vmul.f32 6.2831855, %v297_v37  ;;  %v3137_v9 = vadd.f32 %v8475_v52, %v3089_v33  ;;  %v8477_v21 = vld [vmem:[#allocation13_spill] sm:$0xff]  ;;  %v218_v28 = vpop.permute.xlu1 %217 }
 0x2d0   :  { %4711 = vcosq.f32 %v509_v18  ;;  %vm732_vm14 = vcmp.lt.s32.totalorder %v8476_v59, 0  ;;  %v1117_v4 = vshll.u32 %v1116_v0, 23  ;;  %v1409_v60 = vadd.s32 536870912, %v1408_v53  ;;  %3011 = vadd.xlane.f32.xlu1 %v3010_v40  ;;  %v8480_v0 = vld [vmem:[#allocation45_spill] sm:$0xff] }
 0x2d1   :  { %v507_v63 = vsub.s32 4, %v8477_v21  ;;  %4713 = vsinq.f32 %v509_v18  ;;  %v1218_v15 = vsub.s32 4294967266, %v1213_v57  ;;  %v4176_v46 = vadd.s32 4294967294, %v1313_v43 }
 0x2d2   :  { %v1454_v49 = vand.u32 2139095040, %v6688_v30  ;;  %v3138_v41 = vadd.f32 %v3137_v9, %v8478_v39  ;;  %vm835_vm1 = vcmp.lt.s32.totalorder %v8479_v11, 0  ;;  %v1019_v27 = vmul.f32 %v1018_v6, %v1016_v62 }
 0x2d3   :  { %v1113_v45 = vshrl.u32 %v1095_v47, %v1111_v16  ;;  %v1214_v50 = vsub.s32 32, %v1213_v57  ;;  %v6696_v3 = vshrl.u32 %v1409_v60, 30  ;;  %vm938_vm2 = vcmp.lt.s32.totalorder %v8480_v0, 0 }
 0x2d4   :  { %v1112_v37 = vshll.u32 %v6462_v61, %v6583_v42  ;;  %v1198_v32 = vadd.s32 %v6470_v13, %v6468_v20  ;;  %v1455_v43 = vshrl.u32 %v1454_v49, 23  ;;  %3139 = vadd.xlane.f32.xlu0 %v3138_v41  ;;  %v176_v56 = vsel %vm67_vm9, %v106_v31, %v154_v44  ;;  %v6713_v31 = vpop.f32.mrf.mxu0 }
 0x2d5   :  { %v1118_v33 = vor.u32 4788187, %v1117_v4  ;;  %v1411_v62 = vshll.u32 %v6696_v3, 30  ;;  %v508_v47 = vsel %vm423_vm11, %v507_v63, %v8477_v21  ;;  %v240_v18 = vsel %vm66_vm3, %v218_v28, %v176_v56  ;;  %8481 = vst [vmem:[#allocation17_spill] sm:$0xff] %v6713_v31 }
 0x2d6   :  { %v814_v61 = vxor.u32 2147483648, %v6587_v23  ;;  %v1219_v42 = vadd.s32 127, %v1218_v15  ;;  %vm4177_vm4 = vcmp.lt.s32.totalorder %v4176_v46, 0  ;;  %v4182_v20 = vadd.s32 4294967169, %v1455_v43 }
 0x2d7   :  { %v917_v13 = vxor.u32 2147483648, %v6589_v55  ;;  %v1114_v16 = vor.u32 %v1113_v45, %v1112_v37  ;;  %v1216_v40 = vshrl.u32 %v1198_v32, %v1214_v50  ;;  %v6715_v6 = vsub.s32 %v1408_v53, %v1411_v62  ;;  %v6744_v45 = vld [vmem:[%s8270_s1] ss:$0 sm:$0xff] }
 0x2d8   :  { %v1020_v52 = vxor.u32 2147483648, %v1019_v27  ;;  %v1461_v9 = vadd.s32 1, %v4182_v20  ;;  %v510_v4 = vsel %vm6674_vm15, 0, %v508_v47  ;;  %v256_v60 = vcvt.s32.f32 %v240_v18 }
 0x2d9   :  { %v1119_v44 = vand.u32 2147483647, %v1118_v33  ;;  %v1215_v21 = vshll.u32 %v6546_v38, %v1213_v57  ;;  %v6720_v63 = vsel %vm4177_vm4, 0, %v4176_v46  ;;  %v1414_v15 = vsub.s32 0, %v6715_v6 }
 0x2da   :  { %v6726_v49 = vsel %vm732_vm14, %v814_v61, %v6587_v23  ;;  %v1220_v53 = vshll.u32 %v1219_v42, 23  ;;  %v6730_v39 = vmul.f32 %v6713_v31, %v6713_v31  ;;  %vm1462_vm11 = vcmp.gt.s32.totalorder %v1461_v9, 0 }
 0x2db   :  { %v1121_v12 = vcvt.s32.f32 %v1114_v16  ;;  %v6732_v41 = vor.u32 %v1216_v40, %v1215_v21  ;;  %v4179_v38 = vmin.u32 %v1414_v15, %v6715_v6  ;;  %v514_v57 = vand.u32 3, %v510_v4 }
 0x2dc   :  { %8482 = vst [vmem:[#allocation19_spill] sm:$0xff] %v6730_v39  ;;  %v6738_v46 = vsel %vm835_vm1, %v917_v13, %v6589_v55  ;;  %v1321_v23 = vsub.s32 4294967266, %v6720_v63  ;;  %v1463_v28 = vsel %vm1462_vm11, %v1461_v9, 0  ;;  %v277_v50 = vmul.f32 %v6744_v45, %v256_v60 }
 0x2dd   :  { %v4712_v37 = vpop.eup %4711  ;;  %v6749_v32 = vsel %vm938_vm2, %v1020_v52, %v1019_v27  ;;  %v6751_v43 = vmul.f32 %v1121_v12, %v1119_v44  ;;  %v6755_v55 = vadd.s32 %v6553_v34, %v6558_v48  ;;  %v1416_v56 = vclz %v4179_v38  ;;  %v6764_v48 = vld [vmem:[%s8270_s1 + $0x1] ss:$0 sm:$0xff] }
 0x2de   :  { %v4714_v33 = vpop.eup %4713  ;;  %v6757_v62 = vor.u32 4788187, %v1220_v53  ;;  %v1465_v47 = vand.u32 31, %v1463_v28  ;;  %v520_v18 = vxor.u32 2147483648, %v4712_v37  ;;  %v8358_v61 = vand.u32 2147483647, %v6688_v30 }
 0x2df   :  { %v4180_v20 = vadd.s32 4294967294, %v1416_v56  ;;  %v517_v13 = vxor.u32 2147483648, %v4714_v33  ;;  %vm519_vm7 = vcmp.eq.s32.totalorder %v514_v57, 2  ;;  %v1322_v27 = vadd.s32 127, %v1321_v23 }
 0x2e0   :  { %vm516_vm10 = vcmp.eq.s32.totalorder %v514_v57, 0  ;;  %v521_v16 = vsel %vm519_vm7, %v520_v18, %v4714_v33  ;;  %v298_v34 = vadd.f32 %v6764_v48, %v277_v50  ;;  %vm513_vm8 = vweird.f32 %v5754_v54  ;;  %v6784_v18 = vpop.permute.xlu1 %108 }
 0x2e1   :  { %vm4181_vm12 = vcmp.lt.s32.totalorder %v4180_v20, 0  ;;  %vm515_vm13 = vcmp.lt.s32.totalorder %v514_v57, 2  ;;  %v518_v40 = vsel %vm516_vm10, %v4712_v37, %v517_v13  ;;  %v1466_v9 = vsub.s32 32, %v1465_v47  ;;  %v8484_v37 = vld [vmem:[#allocation11_spill] sm:$0xff] }
 0x2e2   :  { %v1419_v52 = vsel %vm4181_vm12, 0, %v4180_v20  ;;  %v522_v4 = vsel %vm515_vm13, %v518_v40, %v521_v16  ;;  %v1458_v60 = vand.u32 8388607, %v8358_v61  ;;  %v1317_v21 = vsub.s32 32, %v6720_v63 }
 0x2e3   :  { %v1424_v15 = vsub.s32 4294967266, %v1419_v52  ;;  %v523_v53 = vsel %vm513_vm8, nan, %v522_v4  ;;  %v1323_v12 = vshll.u32 %v1322_v27, 23  ;;  %v1404_v38 = vadd.s32 %v6640_v58, %v6637_v26 }
 0x2e4   :  { %v6776_v54 = vsel %vm1966_vm0, %v523_v53, 0.0  ;;  %v6778_v57 = vmul.f32 6.2831855, %v298_v34  ;;  %v1420_v23 = vsub.s32 32, %v1419_v52  ;;  %v1459_v20 = vor.u32 8388608, %v1458_v60  ;;  %v8485_v34 = vld [vmem:[#allocation12_spill] sm:$0xff]  ;;  %v221_v31 = vpop.permute.xlu1 %220 }
 0x2e5   :  { %8483 = vst [vmem:[#allocation13_spill] sm:$0xff] %v6776_v54  ;;  %v1425_v50 = vadd.s32 127, %v1424_v15  ;;  %v3013_v56 = vadd.f32 %v8484_v37, %v6776_v54  ;;  %v3092_v33 = vmul.f32 %v6776_v54, %v6776_v54  ;;  %v1469_v13 = vshrl.u32 %v8430_v14, %v1466_v9  ;;  %v8486_v15 = vld [vmem:[#allocation26_spill] sm:$0xff] }
 0x2e6   :  { %v1472_v26 = vshrl.u32 %v8431_v22, %v1466_v9  ;;  %v1475_v58 = vshrl.u32 %v8432_v1, %v1466_v9  ;;  %v6789_v16 = vshrl.u32 %v1463_v28, 5  ;;  %v1478_v4 = vshrl.u32 %v8433_v5, %v1466_v9 }
 0x2e7   :  { %v1426_v27 = vshll.u32 %v1425_v50, 23  ;;  %v3014_v40 = vadd.f32 %v3013_v56, %v8485_v34  ;;  %v3141_v53 = vadd.f32 %v8486_v15, %v3092_v33  ;;  %v1468_v61 = vshll.u32 %v8429_v8, %v1465_v47 }
 0x2e8   :  { %v1471_v42 = vshll.u32 %v8430_v14, %v1465_v47  ;;  %v1474_v60 = vshll.u32 %v8431_v22, %v1465_v47  ;;  %v1421_v44 = vshll.u32 %v6715_v6, %v1419_v52  ;;  %v1422_v54 = vshrl.u32 %v1404_v38, %v1420_v23 }
 0x2e9   :  { %3015 = vadd.xlane.f32.xlu1 %v3014_v40  ;;  %v1557_v50 = vand.u32 2139095040, %v6778_v57  ;;  %v1477_v28 = vshll.u32 %v8432_v1, %v1465_v47  ;;  %v1427_v37 = vor.u32 4788187, %v1426_v27  ;;  %v1470_v56 = vor.u32 %v1469_v13, %v1468_v61 }
 0x2ea   :  { %v1473_v34 = vor.u32 %v1472_v26, %v1471_v42  ;;  %v1476_v10 = vor.u32 %v1475_v58, %v1474_v60  ;;  %v3142_v33 = vadd.f32 %v3141_v53, %v8487_v17  ;;  %v1480_v25 = vshll.u32 %v8433_v5, %v1465_v47  ;;  %v160_v58 = vpop.permute.xlu1 %159 }
 0x2eb   :  { %v1479_v15 = vor.u32 %v1478_v4, %v1477_v28  ;;  %v1481_v39 = vshrl.u32 %v8434_v29, %v1466_v9  ;;  %v1319_v6 = vshrl.u32 %v6755_v55, %v1317_v21  ;;  %v6804_v52 = vor.u32 4788187, %v1323_v12 }
 0x2ec   :  { %v6806_v38 = vshll.u32 %v1459_v20, 8  ;;  %v8488_v23 = vand.u32 2147483647, %v5817_v35  ;;  %v1423_v42 = vor.u32 %v1422_v54, %v1421_v44  ;;  %3143 = vadd.xlane.f32.xlu0 %v3142_v33  ;;  %vm1483_vm4 = vcmp.lt.s32.totalorder %v6789_v16, 1 }
 0x2ed   :  { %v1482_v17 = vor.u32 %v1481_v39, %v1480_v25  ;;  %v1428_v47 = vand.u32 2147483647, %v1427_v37  ;;  %v1558_v21 = vshrl.u32 %v1557_v50, 23  ;;  %vm1486_vm11 = vcmp.lt.s32.totalorder %v6789_v16, 4  ;;  %v157_v37 = vpop.permute.xlu0 %156 }
 0x2ee   :  { %vm6810_vm15 = vcmp.le.f32.partialorder %v8488_v23, 0.7853982  ;;  %v1491_v12 = vsel %vm1483_vm4, %v1470_v56, %v1473_v34  ;;  %v1467_v20 = vshrl.u32 %v8429_v8, %v1466_v9  ;;  %vm1485_vm7 = vcmp.lt.s32.totalorder %v6789_v16, 3 }
 0x2ef   :  { %v612_v55 = vsel %vm6810_vm15, %v5817_v35, %v6479_v51  ;;  %v1488_v44 = vsel %vm1486_vm11, %v1476_v10, 2102212464  ;;  %v1492_v25 = vsel %vm1486_vm11, %v1479_v15, 920167782  ;;  %vm1484_vm10 = vcmp.lt.s32.totalorder %v6789_v16, 2 }
 0x2f0   :  { %v1493_v39 = vsel %vm1485_vm7, %v1476_v10, %v1492_v25  ;;  %v1495_v54 = vsel %vm1483_vm4, %v1473_v34, %v1476_v10  ;;  %4715 = vcosq.f32 %v612_v55  ;;  %v1430_v51 = vcvt.s32.f32 %v1423_v42  ;;  %v8492_v42 = vld [vmem:[#allocation49_spill] sm:$0xff]  ;;  %v6861_v25 = vpop.f32.mrf.mxu0 }
 0x2f1   :  { %v1487_v13 = vsel %vm1483_vm4, %v1467_v20, %v1470_v56  ;;  %v1494_v26 = vsel %vm1484_vm10, %v1491_v12, %v1493_v39  ;;  %v1496_v9 = vsel %vm1486_vm11, %v1482_v17, 1326507024  ;;  %vm1350_vm12 = vcmp.lt.s32.totalorder %v6541_v2, 0  ;;  %8496 = vst [vmem:[#allocation25_spill] sm:$0xff] %v6861_v25 }
 0x2f2   :  { %v1489_v27 = vsel %vm1485_vm7, %v1473_v34, %v1488_v44  ;;  %v1497_v40 = vsel %vm1485_vm7, %v1479_v15, %v1496_v9  ;;  %v6833_v4 = vmul.u32.u64.low %v6806_v38, %v1494_v26  ;;  %v6834_v53 = vmul.u32.u64.high %v6806_v38, %v1494_v26, %v6833_v4  ;;  %v8491_v15 = vld [vmem:[#allocation23_spill] sm:$0xff] }
 0x2f3   :  { %v1318_v10 = vshll.u32 %v6621_v19, %v6720_v63  ;;  %v1431_v60 = vmul.f32 %v1430_v51, %v1428_v47  ;;  %v4186_v50 = vadd.s32 4294967169, %v1558_v21  ;;  %v1498_v28 = vsel %vm1484_vm10, %v1495_v54, %v1497_v40  ;;  %v8493_v47 = vld [vmem:[#allocation50_spill] sm:$0xff]  ;;  %v112_v51 = vpop.permute.xlu0 %111 }
 0x2f4   :  { %v177_v56 = vsel %vm67_vm9, %v6784_v18, %v157_v37  ;;  %v6845_v34 = vmul.u32.u64.low %v6806_v38, %v1498_v28  ;;  %v6846_v33 = vmul.u32.u64.high %v6806_v38, %v1498_v28, %v6845_v34  ;;  %v610_v23 = vsub.s32 4, %v8491_v15 }
 0x2f5   :  { %vm1041_vm8 = vcmp.lt.s32.totalorder %v8492_v42, 0  ;;  %v1123_v17 = vxor.u32 2147483648, %v6751_v43  ;;  %v1490_v19 = vsel %vm1484_vm10, %v1487_v13, %v1489_v27  ;;  %4717 = vsinq.f32 %v612_v55  ;;  %v6889_v34 = vpop.f32.mrf.mxu0 }
 0x2f6   :  { %v241_v63 = vsel %vm66_vm3, %v221_v31, %v177_v56  ;;  %vm1144_vm13 = vcmp.lt.s32.totalorder %v8493_v47, 0  ;;  %v8494_v18 = vand.u32 2147483647, %v6757_v62  ;;  %v8495_v21 = vcvt.s32.f32 %v6732_v41  ;;  %v224_v62 = vpop.permute.xlu1 %223 }
 0x2f7   :  { %v1320_v20 = vor.u32 %v1319_v6, %v1318_v10  ;;  %v1325_v44 = vand.u32 2147483647, %v6804_v52  ;;  %v1509_v39 = vadd.s32 1, %v6834_v53  ;;  %v1432_v16 = vxor.u32 2147483648, %v1431_v60  ;;  %v8500_v52 = vld [vmem:[#allocation58_spill] sm:$0xff] }
 0x2f8   :  { %v1225_v12 = vmul.f32 %v8495_v21, %v8494_v18  ;;  %v1564_v54 = vadd.s32 1, %v4186_v50  ;;  %v257_v55 = vcvt.s32.f32 %v241_v63  ;;  %v8497_v31 = vand.u32 2147483647, %v5855_v24 }
 0x2f9   :  { %v1506_v41 = vmul.u32 %v6806_v38, %v1490_v19  ;;  %vm1508_vm11 = vc.u32 %v6846_v33, %v6833_v4  ;;  %v611_v6 = vsel %vm526_vm5, %v610_v23, %v8491_v15  ;;  %v178_v27 = vsel %vm67_vm9, %v112_v51, %v160_v58  ;;  %v8502_v23 = vld [vmem:[#allocation41_spill] sm:$0xff] }
 0x2fa   :  { %vm6866_vm4 = vcmp.le.f32.partialorder %v8497_v31, 0.7853982  ;;  %v1510_v26 = vsel %vm1508_vm11, %v1509_v39, %v6834_v53  ;;  %v278_v9 = vmul.f32 %v6744_v45, %v257_v55  ;;  %v1226_v38 = vxor.u32 2147483648, %v1225_v12  ;;  %v8501_v53 = vld [vmem:[#allocation56_spill] sm:$0xff]  ;;  %v115_v55 = vpop.permute.xlu0 %114 }
 0x2fb   :  { %v715_v13 = vsel %vm6866_vm4, %v5855_v24, %v8500_v52  ;;  %v1511_v40 = vadd.s32 %v1510_v26, %v1506_v41  ;;  %v242_v10 = vsel %vm66_vm3, %v224_v62, %v178_v27  ;;  %v1327_v50 = vcvt.s32.f32 %v1320_v20  ;;  %v163_v62 = vpop.permute.xlu1 %162 }
 0x2fc   :  { %4719 = vcosq.f32 %v715_v13  ;;  %v1433_v28 = vsel %vm1350_vm12, %v1432_v16, %v1431_v60  ;;  %v1434_v56 = vsub.s32 4, %v6696_v3  ;;  %vm1565_vm5 = vcmp.gt.s32.totalorder %v1564_v54, 0 }
 0x2fd   :  { %4721 = vsinq.f32 %v715_v13  ;;  %vm1247_vm7 = vcmp.lt.s32.totalorder %v8501_v53, 0  ;;  %v1512_v15 = vadd.s32 536870912, %v1511_v40  ;;  %v613_v58 = vsel %vm6810_vm15, 0, %v611_v6  ;;  %v4716_v18 = vpop.eup %4715 }
 0x2fe   :  { %v713_v19 = vsub.s32 4, %v8502_v23  ;;  %v258_v63 = vcvt.s32.f32 %v242_v10  ;;  %v1328_v21 = vmul.f32 %v1327_v50, %v1325_v44  ;;  %v8503_v20 = vand.u32 2147483647, %v6541_v2 }
 0x2ff   :  { %v6903_v39 = vmul.f32 %v6861_v25, %v6861_v25  ;;  %v299_v16 = vadd.f32 %v6764_v48, %v278_v9  ;;  %v6909_v61 = vsel %vm1041_vm8, %v1123_v17, %v6751_v43  ;;  %v6916_v51 = vmul.f32 %v6889_v34, %v6889_v34 }
 0x300   :  { %vm6897_vm10 = vcmp.le.f32.partialorder %v8503_v20, 0.7853982  ;;  %v6918_v31 = vshrl.u32 %v1512_v15, 30  ;;  %v6922_v41 = vsel %vm1144_vm13, %v1226_v38, %v1225_v12  ;;  %v1435_v43 = vsel %vm1350_vm12, %v1434_v56, %v6696_v3  ;;  %v227_v3 = vpop.permute.xlu0 %226  ;;  %v6943_v56 = vpop.f32.mrf.mxu0 }
 0x301   :  { %v1436_v44 = vsel %vm6897_vm10, %v6541_v2, %v1433_v28  ;;  %8506 = vst [vmem:[#allocation32_spill] sm:$0xff] %v6916_v51  ;;  %v1566_v17 = vsel %vm1565_vm5, %v1564_v54, 0  ;;  %v617_v6 = vand.u32 3, %v613_v58  ;;  %v623_v13 = vxor.u32 2147483648, %v4716_v18 }
 0x302   :  { %v1514_v52 = vshll.u32 %v6918_v31, 30  ;;  %v714_v26 = vsel %vm629_vm6, %v713_v19, %v8502_v23  ;;  %v279_v9 = vmul.f32 %v6744_v45, %v258_v63  ;;  %v1329_v27 = vxor.u32 2147483648, %v1328_v21  ;;  %v4718_v10 = vpop.eup %4717 }
 0x303   :  { %4723 = vcosq.f32 %v1436_v44  ;;  %v6933_v12 = vmul.f32 6.2831855, %v299_v16  ;;  %v179_v38 = vsel %vm67_vm9, %v115_v55, %v163_v62  ;;  %v1437_v54 = vsel %vm6897_vm10, 0, %v1435_v43 }
 0x304   :  { %4725 = vsinq.f32 %v1436_v44  ;;  %v6939_v50 = vand.u32 31, %v1566_v17  ;;  %v6941_v28 = vsub.s32 %v1511_v40, %v1514_v52  ;;  %vm619_vm6 = vcmp.eq.s32.totalorder %v617_v6, 0 }
 0x305   :  { %8507 = vst [vmem:[#allocation45_spill] sm:$0xff] %v6933_v12  ;;  %v620_v15 = vxor.u32 2147483648, %v4718_v10  ;;  %vm622_vm15 = vcmp.eq.s32.totalorder %v617_v6, 2  ;;  %v716_v58 = vsel %vm6866_vm4, 0, %v714_v26  ;;  %v300_v63 = vadd.f32 %v6764_v48, %v279_v9 }
 0x306   :  { %v1517_v23 = vsub.s32 0, %v6941_v28  ;;  %v624_v19 = vsel %vm622_vm15, %v623_v13, %v4718_v10  ;;  %v243_v20 = vsel %vm66_vm3, %v227_v3, %v179_v38  ;;  %v6953_v40 = vsel %vm1247_vm7, %v1329_v27, %v1328_v21 }
 0x307   :  { %8508 = vst [vmem:[#allocation26_spill] sm:$0xff] %v6953_v40  ;;  %v6955_v60 = vand.u32 3, %v1437_v54  ;;  %v621_v16 = vsel %vm619_vm6, %v4716_v18, %v620_v15  ;;  %v1660_v55 = vand.u32 2139095040, %v6933_v12  ;;  %v6961_v62 = vmul.f32 %v6943_v56, %v6943_v56  ;;  %v8512_v15 = vld [vmem:[#allocation14_spill] sm:$0xff] }
 0x308   :  { %v4183_v37 = vmin.u32 %v1517_v23, %v6941_v28  ;;  %vm618_vm9 = vcmp.lt.s32.totalorder %v617_v6, 2  ;;  %v720_v43 = vand.u32 3, %v716_v58  ;;  %v6963_v13 = vshrl.u32 %v1566_v17, 5 }
 0x309   :  { %v4720_v44 = vpop.eup %4719  ;;  %8509 = vst [vmem:[#allocation27_spill] sm:$0xff] %v6961_v62  ;;  %vm616_vm3 = vweird.f32 %v5817_v35  ;;  %v625_v21 = vsel %vm618_vm9, %v621_v16, %v624_v19  ;;  %v259_v26 = vcvt.s32.f32 %v243_v20  ;;  %v6967_v18 = vsub.s32 32, %v6939_v50  ;;  %v8513_v16 = vld [vmem:[#allocation15_spill] sm:$0xff] }
 0x30a   :  { %v4722_v52 = vpop.eup %4721  ;;  %v1519_v9 = vclz %v4183_v37  ;;  %v626_v27 = vsel %vm616_vm3, nan, %v625_v21  ;;  %v6969_v38 = vmul.f32 6.2831855, %v300_v63  ;;  %v1661_v6 = vshrl.u32 %v1660_v55, 23 }
 0x30b   :  { %v6973_v3 = vsel %vm1966_vm0, %v626_v27, 0.0  ;;  %v723_v10 = vxor.u32 2147483648, %v4722_v52  ;;  %v726_v54 = vxor.u32 2147483648, %v4720_v44  ;;  %vm722_vm12 = vcmp.eq.s32.totalorder %v720_v43, 0  ;;  %v8514_v27 = vld [vmem:[#allocation28_spill] sm:$0xff] }
 0x30c   :  { %8510 = vst [vmem:[#allocation23_spill] sm:$0xff] %v6969_v38  ;;  %8511 = vst [vmem:[#allocation49_spill] sm:$0xff] %v6973_v3  ;;  %v4184_v17 = vadd.s32 4294967294, %v1519_v9  ;;  %v3017_v35 = vadd.f32 %v8512_v15, %v6973_v3  ;;  %vm725_vm4 = vcmp.eq.s32.totalorder %v720_v43, 2  ;;  %v3095_v58 = vmul.f32 %v6973_v3, %v6973_v3 }
 0x30d   :  { %v724_v23 = vsel %vm722_vm12, %v4720_v44, %v723_v10  ;;  %v727_v19 = vsel %vm725_vm4, %v726_v54, %v4722_v52  ;;  %v280_v63 = vmul.f32 %v6744_v45, %v259_v26  ;;  %v1580_v20 = vshll.u32 %v8432_v1, %v6939_v50 }
 0x30e   :  { %vm4185_vm11 = vcmp.lt.s32.totalorder %v4184_v17, 0  ;;  %v3018_v55 = vadd.f32 %v3017_v35, %v8513_v16  ;;  %v1763_v37 = vand.u32 2139095040, %v6969_v38  ;;  %vm1443_vm5 = vcmp.eq.s32.totalorder %v6955_v60, 0  ;;  %v8515_v16 = vld [vmem:[#allocation29_spill] sm:$0xff] }
 0x30f   :  { %vm1446_vm10 = vcmp.eq.s32.totalorder %v6955_v60, 2  ;;  %v1522_v21 = vsel %vm4185_vm11, 0, %v4184_v17  ;;  %v4190_v9 = vadd.s32 4294967169, %v1661_v6  ;;  %v3145_v3 = vadd.f32 %v8514_v27, %v3095_v58 }
 0x310   :  { %vm721_vm6 = vcmp.lt.s32.totalorder %v720_v43, 2  ;;  %v4724_v44 = vpop.eup %4723  ;;  %vm1453_vm15 = vcmp.lt.s32.totalorder %v6688_v30, 0  ;;  %v1507_v45 = vadd.s32 %v6833_v4, %v6846_v33  ;;  %v1523_v52 = vsub.s32 32, %v1522_v21  ;;  %3019 = vadd.xlane.f32.xlu1 %v3018_v55 }
 0x311   :  { %v1527_v26 = vsub.s32 4294967266, %v1522_v21  ;;  %v728_v10 = vsel %vm721_vm6, %v724_v23, %v727_v19  ;;  %v4726_v54 = vpop.eup %4725  ;;  %v1581_v35 = vshrl.u32 %v8433_v5, %v6967_v18  ;;  %v3146_v17 = vadd.f32 %v3145_v3, %v8515_v16 }
 0x312   :  { %vm719_vm9 = vweird.f32 %v5855_v24  ;;  %v301_v43 = vadd.f32 %v6764_v48, %v280_v63  ;;  %vm1442_vm3 = vcmp.lt.s32.totalorder %v6955_v60, 2  ;;  %v1524_v6 = vshll.u32 %v6941_v28, %v1522_v21 }
 0x313   :  { %v1525_v58 = vshrl.u32 %v1507_v45, %v1523_v52  ;;  %v1528_v4 = vadd.s32 127, %v1527_v26  ;;  %v1764_v33 = vshrl.u32 %v1763_v37, 23  ;;  %v1583_v23 = vshll.u32 %v8433_v5, %v6939_v50  ;;  %3147 = vadd.xlane.f32.xlu0 %v3146_v17 }
 0x314   :  { %v1584_v19 = vshrl.u32 %v8434_v29, %v6967_v18  ;;  %v8516_v55 = vand.u32 2147483647, %v6688_v30  ;;  %v1667_v24 = vadd.s32 1, %v4190_v9  ;;  %v729_v48 = vsel %vm719_vm9, nan, %v728_v10 }
 0x315   :  { %v1444_v63 = vxor.u32 2147483648, %v4726_v54  ;;  %v1447_v28 = vxor.u32 2147483648, %v4724_v44  ;;  %v1526_v16 = vor.u32 %v1525_v58, %v1524_v6  ;;  %v1529_v21 = vshll.u32 %v1528_v4, 23  ;;  %v8521_v6 = vld [vmem:[#allocation16_spill] sm:$0xff] }
 0x316   :  { %vm7003_vm12 = vcmp.le.f32.partialorder %v8516_v55, 0.7853982  ;;  %vm1440_vm4 = vweird.f32 %v6541_v2  ;;  %vm1589_vm11 = vcmp.lt.s32.totalorder %v6963_v13, 4  ;;  %v1537_v37 = vsub.s32 4, %v6918_v31 }
 0x317   :  { %v7012_v27 = vsel %vm1966_vm0, %v729_v48, 0.0  ;;  %v7014_v45 = vmul.f32 6.2831855, %v301_v43  ;;  %v7016_v52 = vor.u32 %v1581_v35, %v1580_v20  ;;  %v1530_v9 = vor.u32 4788187, %v1529_v21  ;;  %v8523_v48 = vld [vmem:[#allocation31_spill] sm:$0xff] }
 0x318   :  { %8519 = vst [vmem:[#allocation50_spill] sm:$0xff] %v7012_v27  ;;  %v4194_v26 = vadd.s32 4294967169, %v1764_v33  ;;  %v1585_v17 = vor.u32 %v1584_v19, %v1583_v23  ;;  %vm1668_vm6 = vcmp.gt.s32.totalorder %v1667_v24, 0  ;;  %v3021_v58 = vadd.f32 %v8521_v6, %v7012_v27  ;;  %v8522_v23 = vld [vmem:[#allocation18_spill] sm:$0xff] }
 0x319   :  { %8520 = vst [vmem:[#allocation58_spill] sm:$0xff] %v7014_v45  ;;  %v3098_v4 = vmul.f32 %v7012_v27, %v7012_v27  ;;  %v1445_v55 = vsel %vm1443_vm5, %v4724_v44, %v1444_v63  ;;  %v1448_v43 = vsel %vm1446_vm10, %v1447_v28, %v4726_v54  ;;  %v1531_v20 = vand.u32 2147483647, %v1530_v9  ;;  %v8525_v9 = vld [vmem:[#allocation33_spill] sm:$0xff] }
 0x31a   :  { %v1533_v35 = vcvt.s32.f32 %v1526_v16  ;;  %v1538_v33 = vsel %vm1453_vm15, %v1537_v37, %v6918_v31  ;;  %v3022_v19 = vadd.f32 %v3021_v58, %v8522_v23  ;;  %v1866_v10 = vand.u32 2139095040, %v7014_v45  ;;  %v7048_v58 = vpop.f32.mrf.mxu0 }
 0x31b   :  { %v3149_v21 = vadd.f32 %v8523_v48, %v3098_v4  ;;  %v1669_v27 = vsel %vm1668_vm6, %v1667_v24, 0  ;;  %v1770_v15 = vadd.s32 1, %v4194_v26  ;;  %v8524_v44 = vand.u32 2147483647, %v6778_v57  ;;  %8526 = vst [vmem:[#allocation41_spill] sm:$0xff] %v7048_v58 }
 0x31c   :  { %v1534_v6 = vmul.f32 %v1533_v35, %v1531_v20  ;;  %v1449_v54 = vsel %vm1442_vm3, %v1445_v55, %v1448_v43  ;;  %3023 = vadd.xlane.f32.xlu1 %v3022_v19  ;;  %v1572_v28 = vshrl.u32 %v8430_v14, %v6967_v18  ;;  %v1575_v31 = vshrl.u32 %v8431_v22, %v6967_v18 }
 0x31d   :  { %v1561_v63 = vand.u32 8388607, %v8524_v44  ;;  %v1578_v16 = vshrl.u32 %v8432_v1, %v6967_v18  ;;  %v1540_v24 = vsel %vm7003_vm12, 0, %v1538_v33  ;;  %v3150_v26 = vadd.f32 %v3149_v21, %v8525_v9 }
 0x31e   :  { %v1535_v37 = vxor.u32 2147483648, %v1534_v6  ;;  %v1571_v60 = vshll.u32 %v8429_v8, %v6939_v50  ;;  %v7050_v4 = vand.u32 31, %v1669_v27  ;;  %v1867_v55 = vshrl.u32 %v1866_v10, 23 }
 0x31f   :  { %v1574_v43 = vshll.u32 %v8430_v14, %v6939_v50  ;;  %v1577_v20 = vshll.u32 %v8431_v22, %v6939_v50  ;;  %v1450_v35 = vsel %vm1440_vm4, nan, %v1449_v54  ;;  %v1595_v33 = vsel %vm1589_vm11, %v7016_v52, 920167782  ;;  %3151 = vadd.xlane.f32.xlu0 %v3150_v26 }
 0x320   :  { %v1599_v19 = vsel %vm1589_vm11, %v1585_v17, 1326507024  ;;  %vm1771_vm5 = vcmp.gt.s32.totalorder %v1770_v15, 0  ;;  %v1536_v10 = vsel %vm1453_vm15, %v1535_v37, %v1534_v6  ;;  %v1573_v48 = vor.u32 %v1572_v28, %v1571_v60 }
 0x321   :  { %v1576_v21 = vor.u32 %v1575_v31, %v1574_v43  ;;  %v1579_v44 = vor.u32 %v1578_v16, %v1577_v20  ;;  %v7065_v9 = vand.u32 3, %v1540_v24  ;;  %v7069_v2 = vmul.f32 %v7048_v58, %v7048_v58 }
 0x322   :  { %v1562_v50 = vor.u32 8388608, %v1561_v63  ;;  %v1570_v54 = vshrl.u32 %v8429_v8, %v6967_v18  ;;  %v7075_v17 = vsel %vm1966_vm0, %v1450_v35, 0.0  ;;  %v7078_v26 = vsub.s32 32, %v7050_v4 }
 0x323   :  { %8527 = vst [vmem:[#allocation28_spill] sm:$0xff] %v7069_v2  ;;  %8528 = vst [vmem:[#allocation29_spill] sm:$0xff] %v7075_v17  ;;  %v7080_v6 = vsel %vm1771_vm5, %v1770_v15, 0  ;;  %v4198_v28 = vadd.s32 4294967169, %v1867_v55  ;;  %v1539_v31 = vsel %vm7003_vm12, %v6688_v30, %v1536_v10  ;;  %vm1586_vm10 = vcmp.lt.s32.totalorder %v6963_v13, 1 }
 0x324   :  { %vm1587_vm15 = vcmp.lt.s32.totalorder %v6963_v13, 2  ;;  %vm1588_vm9 = vcmp.lt.s32.totalorder %v6963_v13, 3  ;;  %v1591_v18 = vsel %vm1589_vm11, %v1579_v44, 2102212464  ;;  %v1594_v63 = vsel %vm1586_vm10, %v1573_v48, %v1576_v21 }
 0x325   :  { %v1596_v15 = vsel %vm1588_vm9, %v1579_v44, %v1595_v33  ;;  %v1598_v16 = vsel %vm1586_vm10, %v1576_v21, %v1579_v44  ;;  %v7098_v3 = vadd.f32 %v6861_v25, %v7075_v17  ;;  %v3119_v37 = vmul.f32 %v7075_v17, %v7075_v17 }
 0x326   :  { %v1597_v24 = vsel %vm1587_vm15, %v1594_v63, %v1596_v15  ;;  %v1600_v60 = vsel %vm1588_vm9, %v7016_v52, %v1599_v19  ;;  %4727 = vcosq.f32 %v1539_v31  ;;  %v1684_v55 = vshrl.u32 %v8433_v5, %v7078_v26 }
 0x327   :  { %v1601_v43 = vsel %vm1587_vm15, %v1598_v16, %v1600_v60  ;;  %v1602_v20 = vshll.u32 %v1562_v50, 8  ;;  %v7112_v35 = vand.u32 31, %v7080_v6  ;;  %v1873_v33 = vadd.s32 1, %v4198_v28 }
 0x328   :  { %v1590_v10 = vsel %vm1586_vm10, %v1570_v54, %v1573_v48  ;;  %v1592_v44 = vsel %vm1588_vm9, %v1576_v21, %v1591_v18  ;;  %v7125_v17 = vadd.f32 %v6903_v39, %v3119_v37  ;;  %v7127_v50 = vshrl.u32 %v1669_v27, 5  ;;  %v8534_v54 = vld [vmem:[#allocation44_spill] sm:$0xff] }
 0x329   :  { %8529 = vst [vmem:[#allocation31_spill] sm:$0xff] %v7112_v35  ;;  %v7118_v63 = vmul.u32.u64.low %v1602_v20, %v1601_v43  ;;  %v7119_v52 = vmul.u32.u64.high %v1602_v20, %v1601_v43, %v7118_v63  ;;  %v7121_v19 = vmul.u32.u64.low %v1602_v20, %v1597_v24  ;;  %v7122_v15 = vmul.u32.u64.high %v1602_v20, %v1597_v24, %v7121_v19  ;;  %v8539_v43 = vld [vmem:[#allocation48_spill] sm:$0xff] }
 0x32a   :  { %8530 = vst [vmem:[#allocation33_spill] sm:$0xff] %v7125_v17  ;;  %v1683_v28 = vshll.u32 %v8432_v1, %v7050_v4  ;;  %v8531_v16 = vand.u32 2147483647, %v8476_v59  ;;  %4729 = vsinq.f32 %v1539_v31  ;;  %v1593_v21 = vsel %vm1587_vm15, %v1590_v10, %v1592_v44 }
 0x32b   :  { %v816_v18 = vsub.s32 4, %v8534_v54  ;;  %v1687_v37 = vshrl.u32 %v8434_v29, %v7078_v26  ;;  %v7149_v24 = vsub.s32 32, %v7112_v35  ;;  %vm1874_vm12 = vcmp.gt.s32.totalorder %v1873_v33, 0 }
 0x32c   :  { %vm7133_vm3 = vcmp.le.f32.partialorder %v8531_v16, 0.7853982  ;;  %v7144_v27 = vor.u32 %v1684_v55, %v1683_v28  ;;  %vm1611_vm4 = vc.u32 %v7119_v52, %v7121_v19  ;;  %v1612_v13 = vadd.s32 1, %v7122_v15 }
 0x32d   :  { %v818_v39 = vsel %vm7133_vm3, %v8476_v59, %v6726_v49  ;;  %8535 = vst [vmem:[#allocation44_spill] sm:$0xff] %v7149_v24  ;;  %v1686_v31 = vshll.u32 %v8433_v5, %v7050_v4  ;;  %v1609_v60 = vmul.u32 %v1602_v20, %v1593_v21  ;;  %v8536_v49 = vand.u32 2147483647, %v8479_v11 }
 0x32e   :  { %4731 = vcosq.f32 %v818_v39  ;;  %v919_v10 = vsub.s32 4, %v8539_v43  ;;  %vm1692_vm6 = vcmp.lt.s32.totalorder %v7127_v50, 4  ;;  %v1613_v44 = vsel %vm1611_vm4, %v1612_v13, %v7122_v15 }
 0x32f   :  { %4733 = vsinq.f32 %v818_v39  ;;  %vm7157_vm11 = vcmp.le.f32.partialorder %v8536_v49, 0.7853982  ;;  %v817_v63 = vsel %vm732_vm14, %v816_v18, %v8534_v54  ;;  %v1688_v28 = vor.u32 %v1687_v37, %v1686_v31  ;;  %v8540_v54 = vld [vmem:[#allocation55_spill] sm:$0xff] }
 0x330   :  { %v921_v20 = vsel %vm7157_vm11, %v8479_v11, %v6738_v46  ;;  %v7171_v16 = vsel %vm1874_vm12, %v1873_v33, 0  ;;  %v1614_v21 = vadd.s32 %v1613_v44, %v1609_v60  ;;  %v7176_v39 = vsel %vm1692_vm6, %v7144_v27, 920167782 }
 0x331   :  { %4735 = vcosq.f32 %v921_v20  ;;  %v1787_v15 = vshrl.u32 %v8433_v5, %v7149_v24  ;;  %v1022_v18 = vsub.s32 4, %v8540_v54  ;;  %vm1549_vm14 = vcmp.eq.s32.totalorder %v7065_v9, 2 }
 0x332   :  { %4737 = vsinq.f32 %v921_v20  ;;  %v1615_v13 = vadd.s32 536870912, %v1614_v21  ;;  %v819_v46 = vsel %vm7133_vm3, 0, %v817_v63  ;;  %v920_v33 = vsel %vm835_vm1, %v919_v10, %v8539_v43 }
 0x333   :  { %v8541_v37 = vand.u32 2147483647, %v8480_v0  ;;  %v7195_v60 = vshrl.u32 %v8434_v29, %v7149_v24  ;;  %v7198_v49 = vand.u32 31, %v7171_v16  ;;  %v1023_v48 = vsel %vm938_vm2, %v1022_v18, %v8540_v54  ;;  %v7207_v10 = vpop.eup %4727 }
 0x334   :  { %v7211_v44 = vsel %vm1692_vm6, %v1688_v28, 1326507024  ;;  %v1786_v63 = vshll.u32 %v8432_v1, %v7112_v35  ;;  %v7215_v20 = vshrl.u32 %v1615_v13, 30  ;;  %v7219_v54 = vshll.u32 %v8433_v5, %v7112_v35  ;;  %v8547_v35 = vld [vmem:[#allocation21_spill] sm:$0xff] }
 0x335   :  { %vm7189_vm5 = vcmp.le.f32.partialorder %v8541_v37, 0.7853982  ;;  %v823_v18 = vand.u32 3, %v819_v46  ;;  %v7224_v37 = vshrl.u32 %v7080_v6, 5  ;;  %v1550_v23 = vxor.u32 2147483648, %v7207_v10 }
 0x336   :  { %v1024_v43 = vsel %vm7189_vm5, %v8480_v0, %v6749_v32  ;;  %v922_v32 = vsel %vm7157_vm11, 0, %v920_v33  ;;  %v1617_v28 = vshll.u32 %v7215_v20, 30  ;;  %v1025_v25 = vsel %vm7189_vm5, 0, %v1023_v48 }
 0x337   :  { %4739 = vcosq.f32 %v1024_v43  ;;  %v7231_v2 = vor.u32 %v1787_v15, %v1786_v63  ;;  %v7236_v55 = vsub.s32 32, %v7198_v49  ;;  %v7238_v33 = vpop.eup %4729  ;;  %v7241_v6 = vadd.s32 %v7121_v19, %v7119_v52 }
 0x338   :  { %4741 = vsinq.f32 %v1024_v43  ;;  %v7243_v43 = vsub.s32 %v1614_v21, %v1617_v28  ;;  %vm822_vm1 = vweird.f32 %v8476_v59  ;;  %v926_v31 = vand.u32 3, %v922_v32 }
 0x339   :  { %vm824_vm2 = vcmp.lt.s32.totalorder %v823_v18, 2  ;;  %vm825_vm10 = vcmp.eq.s32.totalorder %v823_v18, 0  ;;  %vm828_vm15 = vcmp.eq.s32.totalorder %v823_v18, 2  ;;  %v7246_v15 = vand.u32 3, %v1025_v25  ;;  %v8546_v18 = vld [vmem:[#allocation20_spill] sm:$0xff] }
 0x33a   :  { %v1620_v46 = vsub.s32 0, %v7243_v43  ;;  %vm925_vm9 = vweird.f32 %v8479_v11  ;;  %v8544_v52 = vand.u32 2147483647, %v6933_v12  ;;  %v7258_v32 = vsel %vm1549_vm14, %v1550_v23, %v7238_v33 }
 0x33b   :  { %v4732_v48 = vpop.eup %4731  ;;  %v1675_v25 = vshrl.u32 %v8430_v14, %v7078_v26  ;;  %vm927_vm3 = vcmp.lt.s32.totalorder %v926_v31, 2  ;;  %vm928_vm12 = vcmp.eq.s32.totalorder %v926_v31, 0  ;;  %vm931_vm4 = vcmp.eq.s32.totalorder %v926_v31, 2 }
 0x33c   :  { %v4734_v63 = vpop.eup %4733  ;;  %v829_v13 = vxor.u32 2147483648, %v4732_v48  ;;  %v7252_v19 = vand.u32 8388607, %v8544_v52  ;;  %v4187_v58 = vmin.u32 %v1620_v46, %v7243_v43  ;;  %vm1034_vm11 = vcmp.eq.s32.totalorder %v7246_v15, 2 }
 0x33d   :  { %v826_v28 = vxor.u32 2147483648, %v4734_v63  ;;  %v1674_v23 = vshll.u32 %v8429_v8, %v7050_v4  ;;  %vm1031_vm14 = vcmp.eq.s32.totalorder %v7246_v15, 0  ;;  %vm1030_vm5 = vcmp.lt.s32.totalorder %v7246_v15, 2 }
 0x33e   :  { %v4736_v17 = vpop.eup %4735  ;;  %v830_v51 = vsel %vm828_vm15, %v829_v13, %v4734_v63  ;;  %v1622_v45 = vclz %v4187_v58  ;;  %v1677_v63 = vshll.u32 %v8430_v14, %v7050_v4  ;;  %v1681_v59 = vshrl.u32 %v8432_v1, %v7078_v26 }
 0x33f   :  { %v827_v52 = vsel %vm825_vm10, %v4732_v48, %v826_v28  ;;  %v4738_v21 = vpop.eup %4737  ;;  %v932_v7 = vxor.u32 2147483648, %v4736_v17  ;;  %v7274_v13 = vor.u32 %v1675_v25, %v1674_v23  ;;  %v1680_v46 = vshll.u32 %v8431_v22, %v7050_v4 }
 0x340   :  { %v831_v40 = vsel %vm824_vm2, %v827_v52, %v830_v51  ;;  %v929_v48 = vxor.u32 2147483648, %v4738_v21  ;;  %v4188_v28 = vadd.s32 4294967294, %v1622_v45  ;;  %vm1028_vm2 = vweird.f32 %v8480_v0 }
 0x341   :  { %v832_v53 = vsel %vm822_vm1, nan, %v831_v40  ;;  %v933_v58 = vsel %vm931_vm4, %v932_v7, %v4738_v21  ;;  %vm1546_vm1 = vcmp.eq.s32.totalorder %v7065_v9, 0  ;;  %v1682_v31 = vor.u32 %v1681_v59, %v1680_v46  ;;  %v8553_v59 = vld [vmem:[#allocation36_spill] sm:$0xff] }
 0x342   :  { %v7280_v51 = vsel %vm1966_vm0, %v832_v53, 0.0  ;;  %v930_v52 = vsel %vm928_vm12, %v4736_v17, %v929_v48  ;;  %v1678_v53 = vshrl.u32 %v8431_v22, %v7078_v26  ;;  %vm4189_vm10 = vcmp.lt.s32.totalorder %v4188_v28, 0  ;;  %v3407_v22 = vld [vmem:[#allocation5 + $0xf0] sm:$0xff] }
 0x343   :  { %8545 = vst [vmem:[#allocation48_spill] sm:$0xff] %v7280_v51  ;;  %v3025_v25 = vadd.f32 %v8546_v18, %v7280_v51  ;;  %v3101_v45 = vmul.f32 %v7280_v51, %v7280_v51  ;;  %v934_v21 = vsel %vm927_vm3, %v930_v52, %v933_v58  ;;  %v1625_v12 = vsel %vm4189_vm10, 0, %v4188_v28  ;;  %v8548_v18 = vld [vmem:[#allocation34_spill] sm:$0xff]  ;;  %v8550_v58 = vld [vmem:[#allocation35_spill] sm:$0xff] }
 0x344   :  { %v4740_v40 = vpop.eup %4739  ;;  %v935_v51 = vsel %vm925_vm9, nan, %v934_v21  ;;  %v1626_v17 = vsub.s32 32, %v1625_v12  ;;  %v1630_v48 = vsub.s32 4294967266, %v1625_v12  ;;  %vm1545_vm15 = vcmp.lt.s32.totalorder %v7065_v9, 2  ;;  %v8551_v28 = vld [vmem:[#allocation22_spill] sm:$0xff] }
 0x345   :  { %v4742_v7 = vpop.eup %4741  ;;  %v1035_v23 = vxor.u32 2147483648, %v4740_v40  ;;  %v3026_v14 = vadd.f32 %v3025_v25, %v8547_v35  ;;  %v3153_v24 = vadd.f32 %v8548_v18, %v3101_v45  ;;  %v7303_v38 = vsel %vm1966_vm0, %v935_v51, 0.0  ;;  %v8552_v51 = vld [vmem:[#allocation24_spill] sm:$0xff] }
 0x346   :  { %8549 = vst [vmem:[#allocation55_spill] sm:$0xff] %v7303_v38  ;;  %v3029_v25 = vadd.f32 %v8551_v28, %v7303_v38  ;;  %v3104_v18 = vmul.f32 %v7303_v38, %v7303_v38  ;;  %v1032_v11 = vxor.u32 2147483648, %v4742_v7  ;;  %v1627_v45 = vshll.u32 %v7243_v43, %v1625_v12  ;;  %v3408_v35 = vld [vmem:[#allocation5 + $0xf8] sm:$0xff]  ;;  %v8554_v43 = vld [vmem:[#allocation38_spill] sm:$0xff] }
 0x347   :  { %3027 = vadd.xlane.f32.xlu1 %v3026_v14  ;;  %v3154_v4 = vadd.f32 %v3153_v24, %v8550_v58  ;;  %v1628_v52 = vshrl.u32 %v7241_v6, %v1626_v17  ;;  %v1631_v21 = vadd.s32 127, %v1630_v48  ;;  %v1036_v46 = vsel %vm1034_vm11, %v1035_v23, %v4742_v7  ;;  %v3392_v38 = vld [vmem:[#allocation5 + $0x78] sm:$0xff]  ;;  %4267 = vmatprep.subr.mxu1 %v3408_v35  ;;  %v3406_v17 = vld [vmem:[#allocation5 + $0xe8] sm:$0xff] }
 0x348   :  { %v3030_v14 = vadd.f32 %v3029_v25, %v8552_v51  ;;  %v3157_v24 = vadd.f32 %v8553_v59, %v3104_v18  ;;  %v1033_v58 = vsel %vm1031_vm14, %v4740_v40, %v1032_v11  ;;  %v1679_v28 = vor.u32 %v1678_v53, %v1677_v63  ;;  %4268 = vmatpush3.msra.mxu1 %v3392_v38  ;;  %v3391_v63 = vld [vmem:[#allocation5 + $0x70] sm:$0xff]  ;;  %v8556_v38 = vld [vmem:[#allocation30_spill] sm:$0xff] }
 0x349   :  { %3155 = vadd.xlane.f32.xlu0 %v3154_v4  ;;  %v1629_v62 = vor.u32 %v1628_v52, %v1627_v45  ;;  %v1632_v12 = vshll.u32 %v1631_v21, 23  ;;  %v1037_v6 = vsel %vm1030_vm5, %v1033_v58, %v1036_v46  ;;  %vm1689_vm9 = vcmp.lt.s32.totalorder %v7127_v50, 1  ;;  %4269 = vmatprep.subr.mxu1 %v3407_v22  ;;  %v3390_v25 = vld [vmem:[#allocation5 + $0x68] sm:$0xff]  ;;  %v3405_v45 = vld [vmem:[#allocation5 + $0xe0] sm:$0xff]  ;;  %v8558_v46 = vld [vmem:[#allocation39_spill] sm:$0xff] }
 0x34a   :  { %vm1543_vm3 = vweird.f32 %v6688_v30  ;;  %v3158_v7 = vadd.f32 %v3157_v24, %v8554_v43  ;;  %v1038_v40 = vsel %vm1028_vm2, nan, %v1037_v6  ;;  %vm1690_vm12 = vcmp.lt.s32.totalorder %v7127_v50, 2  ;;  %4270 = vmatpush3.msra.mxu1 %v3391_v63  ;;  %v8557_v52 = vld [vmem:[#allocation37_spill] sm:$0xff]  ;;  %v3404_v6 = vld [vmem:[#allocation5 + $0xd8] sm:$0xff] }
 0x34b   :  { %3031 = vadd.xlane.f32.xlu1 %v3030_v14  ;;  %vm1691_vm4 = vcmp.lt.s32.totalorder %v7127_v50, 3  ;;  %v8555_v15 = vxor.u32 2147483648, %v7238_v33  ;;  %v1633_v53 = vor.u32 4788187, %v1632_v12  ;;  %v7335_v23 = vsel %vm1966_vm0, %v1038_v40, 0.0  ;;  %4271 = vmatprep.subr.mxu1 %v3406_v17  ;;  %v8560_v43 = vld [vmem:[#allocation40_spill] sm:$0xff] }
 0x34c   :  { %v1694_v0 = vsel %vm1692_vm6, %v1682_v31, 2102212464  ;;  %v1636_v48 = vcvt.s32.f32 %v1629_v62  ;;  %v3033_v4 = vadd.f32 %v8556_v38, %v7335_v23  ;;  %v3107_v33 = vmul.f32 %v7335_v23, %v7335_v23  ;;  %4272 = vmatpush3.msra.mxu1 %v3390_v25  ;;  %v3388_v40 = vld [vmem:[#allocation5 + $0x58] sm:$0xff] }
 0x34d   :  { %v1548_v35 = vsel %vm1546_vm1, %v7207_v10, %v8555_v15  ;;  %3159 = vadd.xlane.f32.xlu0 %v3158_v7  ;;  %v1697_v10 = vsel %vm1689_vm9, %v7274_v13, %v1679_v28  ;;  %v1634_v18 = vand.u32 2147483647, %v1633_v53  ;;  %v1699_v11 = vsel %vm1691_vm4, %v1682_v31, %v7176_v39  ;;  %4273 = vmatprep.subr.mxu1 %v3405_v45 }
 0x34e   :  { %v1701_v22 = vsel %vm1689_vm9, %v1679_v28, %v1682_v31  ;;  %v1703_v62 = vsel %vm1691_vm4, %v7144_v27, %v7211_v44  ;;  %vm1556_vm6 = vcmp.lt.s32.totalorder %v6778_v57, 0  ;;  %v3034_v21 = vadd.f32 %v3033_v4, %v8557_v52  ;;  %v3389_v31 = vld [vmem:[#allocation5 + $0x60] sm:$0xff] }
 0x34f   :  { %v3161_v14 = vadd.f32 %v8558_v46, %v3107_v33  ;;  %v1673_v59 = vshrl.u32 %v8429_v8, %v7078_v26  ;;  %v1704_v39 = vsel %vm1690_vm12, %v1701_v22, %v1703_v62  ;;  %v1552_v27 = vsel %vm1545_vm15, %v1548_v35, %v7258_v32  ;;  %4274 = vmatpush3.msra.mxu1 %v3389_v31  ;;  %v3402_v22 = vld [vmem:[#allocation5 + $0xc8] sm:$0xff]  ;;  %v8568_v46 = vld [vmem:[#allocation61_spill] sm:$0xff] }
 0x350   :  { %v1637_v44 = vmul.f32 %v1636_v48, %v1634_v18  ;;  %v1700_v24 = vsel %vm1690_vm12, %v1697_v10, %v1699_v11  ;;  %v8559_v58 = vor.u32 8388608, %v7252_v19  ;;  %v7372_v26 = vshrl.u32 %v7171_v16, 5  ;;  %3035 = vadd.xlane.f32.xlu1 %v3034_v21  ;;  %4275 = vmatprep.subr.mxu1 %v3404_v6  ;;  %v3387_v10 = vld [vmem:[#allocation5 + $0x50] sm:$0xff]  ;;  %v3386_v21 = vld [vmem:[#allocation5 + $0x48] sm:$0xff] }
 0x351   :  { %v3162_v7 = vadd.f32 %v3161_v14, %v8560_v43  ;;  %v1693_v9 = vsel %vm1689_vm9, %v1673_v59, %v7274_v13  ;;  %v1695_v32 = vsel %vm1691_vm4, %v1679_v28, %v1694_v0  ;;  %vm1795_vm11 = vcmp.lt.s32.totalorder %v7224_v37, 4  ;;  %v8567_v28 = vld [vmem:[#allocation57_spill] sm:$0xff]  ;;  %v3403_v0 = vld [vmem:[#allocation5 + $0xd0] sm:$0xff]  ;;  %4276 = vmatpush3.msra.mxu1 %v3388_v40 }
 0x352   :  { %v7369_v12 = vshll.u32 %v8559_v58, 8  ;;  %v8561_v19 = vand.u32 2147483647, %v6778_v57  ;;  %v8564_v35 = vand.u32 2147483647, %v8492_v42  ;;  %v1125_v53 = vsub.s32 4, %v8567_v28  ;;  %4277 = vmatprep.subr.mxu1 %v3403_v0 }
 0x353   :  { %v1890_v17 = vshrl.u32 %v8433_v5, %v7236_v55  ;;  %3163 = vadd.xlane.f32.xlu0 %v3162_v7  ;;  %v1553_v25 = vsel %vm1543_vm3, nan, %v1552_v27  ;;  %v1893_v18 = vshrl.u32 %v8434_v29, %v7236_v55  ;;  %v1638_v11 = vxor.u32 2147483648, %v1637_v44  ;;  %4278 = vmatpush3.msra.mxu1 %v3387_v10  ;;  %v3401_v59 = vld [vmem:[#allocation5 + $0xc0] sm:$0xff]  ;;  %v8575_v27 = vld [vmem:[#allocation44_spill] sm:$0xff] }
 0x354   :  { %vm7383_vm14 = vcmp.le.f32.partialorder %v8561_v19, 0.7853982  ;;  %v7388_v16 = vmul.u32.u64.low %v7369_v12, %v1704_v39  ;;  %v7389_v15 = vmul.u32.u64.high %v7369_v12, %v1704_v39, %v7388_v16  ;;  %vm7393_vm5 = vcmp.le.f32.partialorder %v8564_v35, 0.7853982  ;;  %4279 = vmatprep.subr.mxu1 %v3402_v22 }
 0x355   :  { %v7401_v48 = vmul.u32.u64.low %v7369_v12, %v1700_v24  ;;  %v7402_v4 = vmul.u32.u64.high %v7369_v12, %v1700_v24, %v7401_v48  ;;  %v1127_v33 = vsel %vm7393_vm5, %v8492_v42, %v6909_v61  ;;  %v1889_v62 = vshll.u32 %v8432_v1, %v7198_v49  ;;  %v3385_v24 = vld [vmem:[#allocation5 + $0x40] sm:$0xff]  ;;  %4280 = vmatpush3.msra.mxu1 %v3386_v21 }
 0x356   :  { %4743 = vcosq.f32 %v1127_v33  ;;  %v1640_v45 = vsub.s32 4, %v7215_v20  ;;  %v1696_v61 = vsel %vm1690_vm12, %v1693_v9, %v1695_v32  ;;  %v1892_v30 = vshll.u32 %v8433_v5, %v7198_v49  ;;  %v3400_v9 = vld [vmem:[#allocation5 + $0xb8] sm:$0xff]  ;;  %4281 = vmatprep.subr.mxu1 %v3401_v59  ;;  %v3397_v21 = vld [vmem:[#allocation5 + $0xa0] sm:$0xff] }
 0x357   :  { %4745 = vsinq.f32 %v1127_v33  ;;  %vm1714_vm2 = vc.u32 %v7389_v15, %v7401_v48  ;;  %v1126_v29 = vsel %vm1041_vm8, %v1125_v53, %v8567_v28  ;;  %v1228_v14 = vsub.s32 4, %v8568_v46  ;;  %4282 = vmatpush3.msra.mxu1 %v3385_v24 }
 0x358   :  { %v7428_v50 = vsel %vm1966_vm0, %v1553_v25, 0.0  ;;  %v7430_v39 = vor.u32 %v1890_v17, %v1889_v62  ;;  %v1715_v31 = vadd.s32 1, %v7402_v4  ;;  %v8569_v5 = vand.u32 2147483647, %v8493_v47  ;;  %4283 = vmatprep.subr.mxu1 %v3400_v9  ;;  %v3383_v17 = vld [vmem:[#allocation5 + $0x30] sm:$0xff] }
 0x359   :  { %v1894_v58 = vor.u32 %v1893_v18, %v1892_v30  ;;  %v1639_v6 = vsel %vm1556_vm6, %v1638_v11, %v1637_v44  ;;  %v1712_v43 = vmul.u32 %v7369_v12, %v1696_v61  ;;  %v1641_v32 = vsel %vm1556_vm6, %v1640_v45, %v7215_v20  ;;  %v3384_v12 = vld [vmem:[#allocation5 + $0x38] sm:$0xff]  ;;  %v3399_v20 = vld [vmem:[#allocation5 + $0xb0] sm:$0xff]  ;;  %v3382_v18 = vld [vmem:[#allocation5 + $0x28] sm:$0xff] }
 0x35a   :  { %vm7435_vm1 = vcmp.le.f32.partialorder %v8569_v5, 0.7853982  ;;  %v1716_v40 = vsel %vm1714_vm2, %v1715_v31, %v7402_v4  ;;  %v1128_v44 = vsel %vm7393_vm5, 0, %v1126_v29  ;;  %v1229_v16 = vsel %vm1144_vm13, %v1228_v14, %v8568_v46  ;;  %4284 = vmatpush3.msra.mxu1 %v3384_v12  ;;  %v8573_v11 = vld [vmem:[#allocation27_spill] sm:$0xff]  ;;  %v3381_v46 = vld [vmem:[#allocation5 + $0x20] sm:$0xff]  ;;  %v3396_v31 = vld [vmem:[#allocation5 + $0x98] sm:$0xff] }
 0x35b   :  { %v1230_v7 = vsel %vm7435_vm1, %v8493_v47, %v6922_v41  ;;  %v3122_v41 = vmul.f32 %v7428_v50, %v7428_v50  ;;  %v1717_v19 = vadd.s32 %v1716_v40, %v1712_v43  ;;  %v7462_v35 = vadd.f32 %v7098_v3, %v6889_v34  ;;  %4285 = vmatprep.subr.mxu1 %v3399_v20  ;;  %v8574_v45 = vld [vmem:[#allocation23_spill] sm:$0xff]  ;;  %v3380_v43 = vld [vmem:[#allocation5 + $0x18] sm:$0xff] }
 0x35c   :  { %4747 = vcosq.f32 %v1230_v7  ;;  %v7467_v13 = vsel %vm1795_vm11, %v7231_v2, 920167782  ;;  %v8572_v28 = vor.u32 %v7195_v60, %v7219_v54  ;;  %v1642_v0 = vsel %vm7383_vm14, %v6778_v57, %v1639_v6  ;;  %v3398_v60 = vld [vmem:[#allocation5 + $0xa8] sm:$0xff]  ;;  %4286 = vmatpush3.msra.mxu1 %v3383_v17  ;;  %v3395_v12 = vld [vmem:[#allocation5 + $0x90] sm:$0xff] }
 0x35d   :  { %4749 = vsinq.f32 %v1230_v7  ;;  %vm1898_vm8 = vcmp.lt.s32.totalorder %v7372_v26, 4  ;;  %v1643_v3 = vsel %vm7383_vm14, 0, %v1641_v32  ;;  %v1718_v4 = vadd.s32 536870912, %v1717_v19  ;;  %4287 = vmatprep.subr.mxu1 %v3398_v60 }
 0x35e   :  { %v7474_v53 = vsel %vm1795_vm11, %v8572_v28, 1326507024  ;;  %v7482_v33 = vand.u32 3, %v1128_v44  ;;  %v7486_v54 = vadd.f32 %v6943_v56, %v7428_v50  ;;  %v7491_v10 = vsel %vm1898_vm8, %v7430_v39, 920167782  ;;  %4288 = vmatpush3.msra.mxu1 %v3382_v18 }
 0x35f   :  { %v7495_v25 = vsel %vm1898_vm8, %v1894_v58, 1326507024  ;;  %v1231_v63 = vsel %vm7435_vm1, 0, %v1229_v16  ;;  %v7500_v22 = vadd.f32 %v8573_v11, %v3122_v41  ;;  %4751 = vcosq.f32 %v1642_v0  ;;  %4289 = vmatprep.subr.mxu1 %v3397_v21  ;;  %v8578_v16 = vld [vmem:[#allocation31_spill] sm:$0xff]  ;;  %v3378_v21 = vld [vmem:[#allocation5 + $0x8] sm:$0xff] }
 0x360   :  { %v7502_v62 = vshrl.u32 %v1718_v4, 30  ;;  %v1760_v61 = vand.u32 2147483647, %v8574_v45  ;;  %4753 = vsinq.f32 %v1642_v0  ;;  %v7505_v30 = vand.u32 3, %v1643_v3  ;;  %4290 = vmatpush3.msra.mxu1 %v3381_v46  ;;  %v3379_v0 = vld [vmem:[#allocation5 + $0x10] sm:$0xff]  ;;  %v3394_v4 = vld [vmem:[#allocation5 + $0x88] sm:$0xff] }
 0x361   :  { %v7509_v29 = vadd.s32 %v7401_v48, %v7389_v15  ;;  %vm1131_vm13 = vweird.f32 %v8492_v42  ;;  %vm1133_vm10 = vcmp.lt.s32.totalorder %v7482_v33, 2  ;;  %vm1134_vm15 = vcmp.eq.s32.totalorder %v7482_v33, 0  ;;  %4291 = vmatprep.subr.mxu1 %v3396_v31 }
 0x362   :  { %v1720_v14 = vshll.u32 %v7502_v62, 30  ;;  %v7515_v59 = vand.u32 3, %v1231_v63  ;;  %vm1137_vm9 = vcmp.eq.s32.totalorder %v7482_v33, 2  ;;  %v8576_v15 = vmov 2475754826   ;;  %4292 = vmatpush3.msra.mxu1 %v3380_v43 }
 0x363   :  { %v4744_v5 = vpop.eup %4743  ;;  %v1778_v48 = vshrl.u32 %v8576_v15, %v8575_v27  ;;  %v8577_v24 = vmov 2131351028   ;;  %v1784_v6 = vshrl.u32 %v8432_v1, %v8575_v27  ;;  %v7528_v40 = vand.u32 8388607, %v1760_v61  ;;  %4293 = vmatprep.subr.mxu1 %v3395_v12 }
 0x364   :  { %v1781_v58 = vshrl.u32 %v8577_v24, %v8575_v27  ;;  %v4746_v7 = vpop.eup %4745  ;;  %v7524_v9 = vsub.s32 %v1717_v19, %v1720_v14  ;;  %v1138_v32 = vxor.u32 2147483648, %v4744_v5  ;;  %v1776_v44 = vshrl.u32 %v8429_v8, %v8575_v27  ;;  %4294 = vmatpush3.msra.mxu1 %v3379_v0  ;;  %v3393_v27 = vld [vmem:[#allocation5 + $0x80] sm:$0xff] }
 0x365   :  { %v1135_v41 = vxor.u32 2147483648, %v4746_v7  ;;  %v1777_v20 = vshll.u32 %v8429_v8, %v8578_v16  ;;  %v1780_v28 = vshll.u32 %v8576_v15, %v8578_v16  ;;  %v1783_v19 = vshll.u32 %v8577_v24, %v8578_v16  ;;  %4295 = vmatprep.subr.mxu1 %v3394_v4 }
 0x366   :  { %v1723_v17 = vsub.s32 0, %v7524_v9  ;;  %v1139_v3 = vsel %vm1137_vm9, %v1138_v32, %v4746_v7  ;;  %vm1234_vm3 = vweird.f32 %v8493_v47  ;;  %vm1236_vm12 = vcmp.lt.s32.totalorder %v7515_v59, 2  ;;  %4296 = vmatpush3.msra.mxu1 %v3378_v21 }
 0x367   :  { %vm1237_vm4 = vcmp.eq.s32.totalorder %v7515_v59, 0  ;;  %v1136_v60 = vsel %vm1134_vm15, %v4744_v5, %v1135_v41  ;;  %v1779_v63 = vor.u32 %v1778_v48, %v1777_v20  ;;  %v1782_v18 = vor.u32 %v1781_v58, %v1780_v28  ;;  %v3377_v58 = vld [vmem:[#allocation5] sm:$0xff]  ;;  %4297 = vmatprep.subr.mxu1 %v3393_v27  ;;  %v8579_v20 = vld [vmem:[#allocation42_spill] sm:$0xff] }
 0x368   :  { %v1785_v11 = vor.u32 %v1784_v6, %v1783_v19  ;;  %v4191_v14 = vmin.u32 %v1723_v17, %v7524_v9  ;;  %vm1240_vm6 = vcmp.eq.s32.totalorder %v7515_v59, 2  ;;  %v1768_v31 = vor.u32 8388608, %v7528_v40  ;;  %4298 = vmatpush3.msra.mxu1 %v3377_v58  ;;  %v8582_v58 = vld [vmem:[#allocation47_spill] sm:$0xff] }
 0x369   :  { %v4748_v46 = vpop.eup %4747  ;;  %vm1792_vm14 = vcmp.lt.s32.totalorder %v7224_v37, 1  ;;  %v1140_v5 = vsel %vm1133_vm10, %v1136_v60, %v1139_v3  ;;  %vm1793_vm5 = vcmp.lt.s32.totalorder %v7224_v37, 2  ;;  %vm1794_vm2 = vcmp.lt.s32.totalorder %v7224_v37, 3  ;;  %v8580_v60 = vld [vmem:[#allocation46_spill] sm:$0xff]  ;;  %v8590_v37 = vld [vmem:[#allocation56_spill] sm:$0xff] }
 0x36a   :  { %v4750_v43 = vpop.eup %4749  ;;  %v1241_v48 = vxor.u32 2147483648, %v4748_v46  ;;  %v1725_v6 = vclz %v4191_v14  ;;  %v1141_v7 = vsel %vm1131_vm13, nan, %v1140_v5  ;;  %v1806_v40 = vsel %vm1794_vm2, %v7231_v2, %v7474_v53  ;;  %v8581_v14 = vld [vmem:[#allocation43_spill] sm:$0xff] }
 0x36b   :  { %v1238_v32 = vxor.u32 2147483648, %v4750_v43  ;;  %v7562_v33 = vsel %vm1966_vm0, %v1141_v7, 0.0  ;;  %v1796_v41 = vsel %vm1792_vm14, %v1776_v44, %v1779_v63  ;;  %v1804_v42 = vsel %vm1792_vm14, %v1782_v18, %v1785_v11 }
 0x36c   :  { %v1242_v12 = vsel %vm1240_vm6, %v1241_v48, %v4750_v43  ;;  %v4192_v16 = vadd.s32 4294967294, %v1725_v6  ;;  %v3037_v28 = vadd.f32 %v8579_v20, %v7562_v33  ;;  %v3110_v2 = vmul.f32 %v7562_v33, %v7562_v33  ;;  %v7576_v19 = vpop.eup %4751 }
 0x36d   :  { %v1797_v53 = vsel %vm1795_vm11, %v1785_v11, 2102212464  ;;  %v1239_v44 = vsel %vm1237_vm4, %v4748_v46, %v1238_v32  ;;  %v1800_v0 = vsel %vm1792_vm14, %v1779_v63, %v1782_v18  ;;  %v1802_v17 = vsel %vm1794_vm2, %v1785_v11, %v7467_v13  ;;  %v4754_v4 = vpop.eup %4753 }
 0x36e   :  { %v1807_v3 = vsel %vm1793_vm5, %v1804_v42, %v1806_v40  ;;  %vm4193_vm1 = vcmp.lt.s32.totalorder %v4192_v16, 0  ;;  %v3038_v21 = vadd.f32 %v3037_v28, %v8580_v60  ;;  %v3165_v27 = vadd.f32 %v8581_v14, %v3110_v2 }
 0x36f   :  { %v1243_v43 = vsel %vm1236_vm12, %v1239_v44, %v1242_v12  ;;  %v1728_v46 = vsel %vm4193_vm1, 0, %v4192_v16  ;;  %v1798_v5 = vsel %vm1794_vm2, %v1782_v18, %v1797_v53  ;;  %v1808_v13 = vshll.u32 %v1768_v31, 8  ;;  %v8583_v12 = vld [vmem:[#allocation51_spill] sm:$0xff] }
 0x370   :  { %v1244_v63 = vsel %vm1234_vm3, nan, %v1243_v43  ;;  %v1729_v11 = vsub.s32 32, %v1728_v46  ;;  %v1733_v48 = vsub.s32 4294967266, %v1728_v46  ;;  %3039 = vadd.xlane.f32.xlu1 %v3038_v21  ;;  %v3166_v6 = vadd.f32 %v3165_v27, %v8582_v58  ;;  %v8586_v43 = vld [vmem:[#allocation45_spill] sm:$0xff] }
 0x371   :  { %v1803_v7 = vsel %vm1793_vm5, %v1800_v0, %v1802_v17  ;;  %v1730_v32 = vshll.u32 %v7524_v9, %v1728_v46  ;;  %v7601_v59 = vsel %vm1966_vm0, %v1244_v63, 0.0  ;;  %v1743_v28 = vsub.s32 4, %v7502_v62 }
 0x372   :  { %v7603_v47 = vmul.u32.u64.low %v1808_v13, %v1807_v3  ;;  %v7604_v40 = vmul.u32.u64.high %v1808_v13, %v1807_v3, %v7603_v47  ;;  %v1731_v18 = vshrl.u32 %v7509_v29, %v1729_v11  ;;  %v1734_v31 = vadd.s32 127, %v1733_v48  ;;  %3167 = vadd.xlane.f32.xlu0 %v3166_v6  ;;  %v8584_v29 = vld [vmem:[#allocation52_spill] sm:$0xff]  ;;  %v8585_v3 = vld [vmem:[#allocation53_spill] sm:$0xff]  ;;  %v8594_v11 = vld [vmem:[#allocation62_spill] sm:$0xff] }
 0x373   :  { %v3041_v42 = vadd.f32 %v8583_v12, %v7601_v59  ;;  %v3113_v16 = vmul.f32 %v7601_v59, %v7601_v59  ;;  %v1799_v9 = vsel %vm1793_vm5, %v1796_v41, %v1798_v5  ;;  %v1650_v14 = vxor.u32 2147483648, %v4754_v4  ;;  %v8595_v6 = vld [vmem:[#allocation54_spill] sm:$0xff] }
 0x374   :  { %v7614_v2 = vmul.u32.u64.low %v1808_v13, %v1803_v7  ;;  %v7615_v53 = vmul.u32.u64.high %v1808_v13, %v1803_v7, %v7614_v2  ;;  %v1732_v44 = vor.u32 %v1731_v18, %v1730_v32  ;;  %v1735_v0 = vshll.u32 %v1734_v31, 23  ;;  %v8596_v32 = vld [vmem:[#allocation26_spill] sm:$0xff] }
 0x375   :  { %v3042_v17 = vadd.f32 %v3041_v42, %v8584_v29  ;;  %v3169_v21 = vadd.f32 %v8585_v3, %v3113_v16  ;;  %v1653_v27 = vxor.u32 2147483648, %v7576_v19  ;;  %v8587_v46 = vand.u32 2147483647, %v8586_v43 }
 0x376   :  { %v8591_v41 = vand.u32 2147483647, %v8590_v37  ;;  %v1331_v48 = vsub.s32 4, %v8594_v11  ;;  %v1736_v58 = vor.u32 4788187, %v1735_v0  ;;  %vm1817_vm10 = vc.u32 %v7604_v40, %v7614_v2 }
 0x377   :  { %vm7623_vm11 = vcmp.le.f32.partialorder %v8587_v46, 0.7853982  ;;  %3043 = vadd.xlane.f32.xlu1 %v3042_v17  ;;  %v3170_v7 = vadd.f32 %v3169_v21, %v8595_v6  ;;  %v1739_v18 = vcvt.s32.f32 %v1732_v44  ;;  %v1815_v31 = vmul.u32 %v1808_v13, %v1799_v9  ;;  %v8597_v17 = vld [vmem:[#allocation58_spill] sm:$0xff] }
 0x378   :  { %vm7629_vm13 = vcmp.le.f32.partialorder %v8591_v41, 0.7853982  ;;  %v1818_v42 = vadd.s32 1, %v7615_v53  ;;  %v1737_v16 = vand.u32 2147483647, %v1736_v58  ;;  %v1332_v0 = vsel %vm1247_vm7, %v1331_v48, %v8594_v11 }
 0x379   :  { %v1333_v47 = vsel %vm7629_vm13, %v8590_v37, %v8596_v32  ;;  %3171 = vadd.xlane.f32.xlu0 %v3170_v7  ;;  %v1863_v3 = vand.u32 2147483647, %v8597_v17  ;;  %vm1648_vm15 = vcmp.lt.s32.totalorder %v7505_v30, 2  ;;  %vm1649_vm9 = vcmp.eq.s32.totalorder %v7505_v30, 0 }
 0x37a   :  { %4755 = vcosq.f32 %v1333_v47  ;;  %vm1659_vm3 = vcmp.lt.s32.totalorder %v8586_v43, 0  ;;  %v1819_v13 = vsel %vm1817_vm10, %v1818_v42, %v7615_v53  ;;  %vm1646_vm12 = vweird.f32 %v6778_v57 }
 0x37b   :  { %4757 = vsinq.f32 %v1333_v47  ;;  %vm1652_vm4 = vcmp.eq.s32.totalorder %v7505_v30, 2  ;;  %v1740_v9 = vmul.f32 %v1739_v18, %v1737_v16  ;;  %v1744_v44 = vsel %vm1659_vm3, %v1743_v28, %v7502_v62 }
 0x37c   :  { %v1820_v21 = vadd.s32 %v1819_v13, %v1815_v31  ;;  %v1651_v46 = vsel %vm1649_vm9, %v7576_v19, %v1650_v14  ;;  %v1654_v41 = vsel %vm1652_vm4, %v1653_v27, %v4754_v4  ;;  %v1334_v11 = vsel %vm7629_vm13, 0, %v1332_v0 }
 0x37d   :  { %v1870_v48 = vand.u32 8388607, %v1863_v3  ;;  %v1741_v53 = vxor.u32 2147483648, %v1740_v9  ;;  %v1880_v6 = vshll.u32 %v8429_v8, %v7198_v49  ;;  %v1881_v7 = vshrl.u32 %v8576_v15, %v7236_v55 }
 0x37e   :  { %v1821_v58 = vadd.s32 536870912, %v1820_v21  ;;  %v1883_v62 = vshll.u32 %v8576_v15, %v7198_v49  ;;  %v1884_v19 = vshrl.u32 %v8577_v24, %v7236_v55  ;;  %v1886_v4 = vshll.u32 %v8577_v24, %v7198_v49 }
 0x37f   :  { %v1887_v28 = vshrl.u32 %v8432_v1, %v7236_v55  ;;  %v1742_v14 = vsel %vm1659_vm3, %v1741_v53, %v1740_v9  ;;  %v1746_v27 = vsel %vm7623_vm11, 0, %v1744_v44  ;;  %v1882_v32 = vor.u32 %v1881_v7, %v1880_v6  ;;  %v3012_v7 = vpop.xlane.xlu1 %3011 }
 0x380   :  { %v7676_v5 = vshrl.u32 %v1821_v58, 30  ;;  %v1655_v15 = vsel %vm1648_vm15, %v1651_v46, %v1654_v41  ;;  %v1745_v47 = vsel %vm7623_vm11, %v8586_v43, %v1742_v14  ;;  %v1885_v49 = vor.u32 %v1884_v19, %v1883_v62 }
 0x381   :  { %v1888_v24 = vor.u32 %v1887_v28, %v1886_v4  ;;  %4759 = vcosq.f32 %v1745_v47  ;;  %v1338_v18 = vand.u32 3, %v1334_v11  ;;  %v1871_v31 = vor.u32 8388608, %v1870_v48 }
 0x382   :  { %v1823_v1 = vshll.u32 %v7676_v5, 30  ;;  %4761 = vsinq.f32 %v1745_v47  ;;  %vm1895_vm7 = vcmp.lt.s32.totalorder %v7372_v26, 1  ;;  %vm1897_vm6 = vcmp.lt.s32.totalorder %v7372_v26, 3 }
 0x383   :  { %v1900_v30 = vsel %vm1898_vm8, %v1888_v24, 2102212464  ;;  %v1879_v63 = vshrl.u32 %v8429_v8, %v7236_v55  ;;  %v1903_v16 = vsel %vm1895_vm7, %v1882_v32, %v1885_v49  ;;  %v1905_v0 = vsel %vm1897_vm6, %v1888_v24, %v7491_v10 }
 0x384   :  { %v7688_v42 = vsub.s32 %v1820_v21, %v1823_v1  ;;  %v1656_v13 = vsel %vm1646_vm12, nan, %v1655_v15  ;;  %v7695_v9 = vand.u32 3, %v1746_v27  ;;  %vm1896_vm14 = vcmp.lt.s32.totalorder %v7372_v26, 2 }
 0x385   :  { %v1907_v44 = vsel %vm1895_vm7, %v1885_v49, %v1888_v24  ;;  %v1899_v11 = vsel %vm1895_vm7, %v1879_v63, %v1882_v32  ;;  %v1901_v21 = vsel %vm1897_vm6, %v1885_v49, %v1900_v30  ;;  %v1909_v48 = vsel %vm1897_vm6, %v7430_v39, %v7495_v25  ;;  %v3140_v32 = vpop.xlane.xlu0 %3139 }
 0x386   :  { %v1826_v41 = vsub.s32 0, %v7688_v42  ;;  %v1906_v10 = vsel %vm1896_vm14, %v1903_v16, %v1905_v0  ;;  %v1910_v57 = vsel %vm1896_vm14, %v1907_v44, %v1909_v48  ;;  %v1911_v53 = vshll.u32 %v1871_v31, 8  ;;  %v3016_v31 = vpop.xlane.xlu1 %3015 }
 0x387   :  { %v4756_v46 = vpop.eup %4755  ;;  %v7707_v58 = vsel %vm1966_vm0, %v1656_v13, 0.0  ;;  %vm1340_vm8 = vcmp.eq.s32.totalorder %v1338_v18, 0  ;;  %vm1343_vm5 = vcmp.eq.s32.totalorder %v1338_v18, 2  ;;  %vm1755_vm2 = vcmp.eq.s32.totalorder %v7695_v9, 2  ;;  %v8598_v13 = vld [vmem:[#allocation59_spill] sm:$0xff] }
 0x388   :  { %v4758_v8 = vpop.eup %4757  ;;  %v1344_v55 = vxor.u32 2147483648, %v4756_v46  ;;  %v4195_v6 = vmin.u32 %v1826_v41, %v7688_v42  ;;  %v7711_v62 = vmul.u32.u64.low %v1911_v53, %v1910_v57  ;;  %v7712_v19 = vmul.u32.u64.high %v1911_v53, %v1910_v57, %v7711_v62  ;;  %v8599_v57 = vld [vmem:[#allocation17_spill] sm:$0xff] }
 0x389   :  { %v1341_v39 = vxor.u32 2147483648, %v4758_v8  ;;  %vm1752_vm1 = vcmp.eq.s32.totalorder %v7695_v9, 0  ;;  %v1902_v28 = vsel %vm1896_vm14, %v1899_v11, %v1901_v21  ;;  %v7723_v15 = vmul.f32 %v7707_v58, %v7707_v58 }
 0x38a   :  { %v1345_v25 = vsel %vm1343_vm5, %v1344_v55, %v4758_v8  ;;  %v1828_v4 = vclz %v4195_v6  ;;  %v7717_v14 = vmul.u32.u64.low %v1911_v53, %v1906_v10  ;;  %v7718_v27 = vmul.u32.u64.high %v1911_v53, %v1906_v10, %v7717_v14  ;;  %v8600_v6 = vld [vmem:[#allocation60_spill] sm:$0xff] }
 0x38b   :  { %vm1751_vm11 = vcmp.lt.s32.totalorder %v7695_v9, 2  ;;  %v1816_v47 = vadd.s32 %v7614_v2, %v7604_v40  ;;  %vm1339_vm13 = vcmp.lt.s32.totalorder %v1338_v18, 2  ;;  %v1342_v49 = vsel %vm1340_vm8, %v4756_v46, %v1341_v39 }
 0x38c   :  { %vm1749_vm10 = vweird.f32 %v8586_v43  ;;  %v4196_v26 = vadd.s32 4294967294, %v1828_v4  ;;  %vm1337_vm15 = vweird.f32 %v8590_v37  ;;  %v1346_v24 = vsel %vm1339_vm13, %v1342_v49, %v1345_v25  ;;  %v7755_v25 = vpop.f32.mrf.mxu0  ;;  %v8604_v43 = vld [vmem:[#allocation41_spill] sm:$0xff] }
 0x38d   :  { %v7731_v1 = vmul.f32 0.0034722222, %v3012_v7  ;;  %v1347_v30 = vsel %vm1337_vm15, nan, %v1346_v24  ;;  %v1918_v63 = vmul.u32 %v1911_v53, %v1902_v28  ;;  %vm1920_vm9 = vc.u32 %v7712_v19, %v7717_v14 }
 0x38e   :  { %v3201_v16 = vmul.f32 0.0034722222, %v3140_v32  ;;  %vm4197_vm3 = vcmp.lt.s32.totalorder %v4196_v26, 0  ;;  %v7737_v40 = vsel %vm1966_vm0, %v1347_v30, 0.0  ;;  %v1921_v2 = vadd.s32 1, %v7718_v27  ;;  %v4760_v18 = vpop.eup %4759  ;;  %v8603_v30 = vld [vmem:[#allocation33_spill] sm:$0xff] }
 0x38f   :  { %v3217_v37 = vmul.f32 %v7731_v1, %v7731_v1  ;;  %v1831_v0 = vsel %vm4197_vm3, 0, %v4196_v26  ;;  %v3045_v44 = vadd.f32 %v8598_v13, %v7737_v40  ;;  %v3116_v46 = vmul.f32 %v7737_v40, %v7737_v40  ;;  %v4762_v11 = vpop.eup %4761  ;;  %v8601_v26 = vld [vmem:[#allocation19_spill] sm:$0xff] }
 0x390   :  { %v7746_v41 = vmul.f32 0.0034722222, %v3016_v31  ;;  %v1756_v21 = vxor.u32 2147483648, %v4760_v18  ;;  %v1832_v48 = vsub.s32 32, %v1831_v0  ;;  %v1833_v8 = vshll.u32 %v7688_v42, %v1831_v0  ;;  %v3144_v42 = vpop.xlane.xlu0 %3143  ;;  %v8602_v31 = vld [vmem:[#allocation32_spill] sm:$0xff] }
 0x391   :  { %v1836_v55 = vsub.s32 4294967266, %v1831_v0  ;;  %v1753_v10 = vxor.u32 2147483648, %v4762_v11  ;;  %v3046_v53 = vadd.f32 %v3045_v44, %v8599_v57  ;;  %v3173_v7 = vadd.f32 %v8600_v6, %v3116_v46 }
 0x392   :  { %v1922_v39 = vsel %vm1920_vm9, %v1921_v2, %v7718_v27  ;;  %v1757_v62 = vsel %vm1755_vm2, %v1756_v21, %v4762_v11  ;;  %v1834_v4 = vshrl.u32 %v1816_v47, %v1832_v48  ;;  %v3178_v0 = vadd.f32 %v8603_v30, %v8602_v31 }
 0x393   :  { %v1837_v28 = vadd.s32 127, %v1836_v55  ;;  %v1923_v32 = vadd.s32 %v1922_v39, %v1918_v63  ;;  %v1754_v49 = vsel %vm1752_vm1, %v4760_v18, %v1753_v10  ;;  %3047 = vadd.xlane.f32.xlu1 %v3046_v53  ;;  %v3174_v24 = vadd.f32 %v3173_v7, %v8601_v26  ;;  %v7772_v55 = vpop.f32.mrf.mxu0 }
 0x394   :  { %v3233_v44 = vsub.f32 %v3201_v16, %v3217_v37  ;;  %v1758_v27 = vsel %vm1751_vm11, %v1754_v49, %v1757_v62  ;;  %v1835_v2 = vor.u32 %v1834_v4, %v1833_v8  ;;  %v3218_v18 = vmul.f32 %v7746_v41, %v7746_v41 }
 0x395   :  { %v1838_v46 = vshll.u32 %v1837_v28, 23  ;;  %v1924_v11 = vadd.s32 536870912, %v1923_v32  ;;  %v1759_v47 = vsel %vm1749_vm10, nan, %v1758_v27  ;;  %3175 = vadd.xlane.f32.xlu0 %v3174_v24  ;;  %v3202_v21 = vmul.f32 0.0034722222, %v3144_v42  ;;  %v7785_v6 = vpop.f32.mrf.mxu0 }
 0x396   :  { %v3297_v63 = vadd.f32 1e-05, %v3233_v44  ;;  %v3126_v48 = vmul.f32 %v7755_v25, %v7755_v25  ;;  %v7776_v9 = vsel %vm1966_vm0, %v1759_v47, 0.0  ;;  %v3054_v8 = vadd.f32 %v7486_v54, %v8604_v43  ;;  %v8605_v54 = vld [vmem:[#allocation28_spill] sm:$0xff] }
 0x397   :  { %v1839_v16 = vor.u32 4788187, %v1838_v46  ;;  %v7778_v37 = vshrl.u32 %v1924_v11, 30  ;;  %v3057_v10 = vadd.f32 %v7755_v25, %v7707_v58  ;;  %3051 = vadd.xlane.f32.xlu1 %v7462_v35  ;;  %v3234_v53 = vsub.f32 %v3202_v21, %v3218_v18 }
 0x398   :  { %4763 = vrsqrt.f32 %v3297_v63  ;;  %v1842_v39 = vcvt.s32.f32 %v1835_v2  ;;  %v3185_v4 = vadd.f32 %v3126_v48, %v7723_v15  ;;  %v3128_v28 = vmul.f32 %v7776_v9, %v7776_v9 }
 0x399   :  { %v1840_v7 = vand.u32 2147483647, %v1839_v16  ;;  %v1926_v62 = vshll.u32 %v7778_v37, 30  ;;  %3179 = vadd.xlane.f32.xlu0 %v3178_v0  ;;  %v3182_v42 = vadd.f32 %v7500_v22, %v8605_v54  ;;  %v3298_v49 = vadd.f32 1e-05, %v3234_v53  ;;  %v7802_v0 = vpop.f32.mrf.mxu0  ;;  %v3020_v16 = vpop.xlane.xlu1 %3019  ;;  %v8608_v53 = vld [vmem:[#allocation9_spill] sm:$0xff] }
 0x39a   :  { %v3127_v35 = vmul.f32 %v7772_v55, %v7772_v55  ;;  %v3058_v31 = vadd.f32 %v3057_v10, %v7772_v55  ;;  %v3061_v30 = vadd.f32 %v7785_v6, %v7776_v9  ;;  %v3129_v15 = vmul.f32 %v7785_v6, %v7785_v6 }
 0x39b   :  { %v1843_v26 = vmul.f32 %v1842_v39, %v1840_v7  ;;  %v7795_v24 = vsub.s32 %v1923_v32, %v1926_v62  ;;  %3055 = vadd.xlane.f32.xlu1 %v3054_v8  ;;  %4765 = vrsqrt.f32 %v3298_v49  ;;  %vm1762_vm12 = vcmp.lt.s32.totalorder %v8574_v45, 0  ;;  %v8609_v39 = vld [vmem:[#allocation63_spill] sm:$0xff]  ;;  %v8610_v49 = vld [vmem:[#allocation10_spill] sm:$0xff] }
 0x39c   :  { %v3189_v27 = vadd.f32 %v3129_v15, %v3128_v28  ;;  %v3186_v32 = vadd.f32 %v3185_v4, %v3127_v35  ;;  %vm7808_vm4 = vcmp.le.f32.partialorder %v1760_v61, 0.7853982  ;;  %v3062_v47 = vadd.f32 %v3061_v30, %v7802_v0 }
 0x39d   :  { %v1844_v22 = vxor.u32 2147483648, %v1843_v26  ;;  %v1929_v44 = vsub.s32 0, %v7795_v24  ;;  %3183 = vadd.xlane.f32.xlu0 %v3182_v42  ;;  %v3130_v63 = vmul.f32 %v7802_v0, %v7802_v0  ;;  %v1846_v61 = vsub.s32 4, %v7676_v5  ;;  %v3148_v42 = vpop.xlane.xlu0 %3147 }
 0x39e   :  { %v7822_v10 = vmul.f32 0.0034722222, %v3020_v16  ;;  %v3250_v7 = vsub.f32 %v8608_v53, %v7731_v1  ;;  %v3249_v62 = vsub.f32 %v8609_v39, %v7731_v1  ;;  %v3251_v35 = vsub.f32 %v8610_v49, %v7731_v1  ;;  %v3422_v49 = vld [vmem:[#allocation5 + $0x168] sm:$0xff] }
 0x39f   :  { %v1845_v46 = vsel %vm1762_vm12, %v1844_v22, %v1843_v26  ;;  %v4199_v11 = vmin.u32 %v1929_v44, %v7795_v24  ;;  %3059 = vadd.xlane.f32.xlu1 %v3058_v31  ;;  %v3190_v48 = vadd.f32 %v3189_v27, %v3130_v63  ;;  %v1847_v28 = vsel %vm1762_vm12, %v1846_v61, %v7676_v5  ;;  %v8611_v5 = vld [vmem:[#allocation12_spill] sm:$0xff]  ;;  %v8613_v63 = vld [vmem:[#allocation13_spill] sm:$0xff] }
 0x3a0   :  { %v1848_v18 = vsel %vm7808_vm4, %v8574_v45, %v1845_v46  ;;  %v3219_v54 = vmul.f32 %v7822_v10, %v7822_v10  ;;  %v3203_v31 = vmul.f32 0.0034722222, %v3148_v42  ;;  %v1919_v22 = vadd.s32 %v7717_v14, %v7712_v19  ;;  %v3423_v42 = vld [vmem:[#allocation5 + $0x170] sm:$0xff] }
 0x3a1   :  { %4767 = vcosq.f32 %v1848_v18  ;;  %v1931_v21 = vclz %v4199_v11  ;;  %3187 = vadd.xlane.f32.xlu0 %v3186_v32  ;;  %v3254_v46 = vsub.f32 %v8611_v5, %v7746_v41  ;;  %vm1852_vm5 = vweird.f32 %v8574_v45 }
 0x3a2   :  { %4769 = vsinq.f32 %v1848_v18  ;;  %v3235_v11 = vsub.f32 %v3203_v31, %v3219_v54  ;;  %v3252_v18 = vsub.f32 %v8613_v63, %v7746_v41  ;;  %v7852_v31 = vpop.f32.mrf.mxu0  ;;  %vm1865_vm2 = vcmp.lt.s32.totalorder %v8597_v17, 0 }
 0x3a3   :  { %v4200_v8 = vadd.s32 4294967294, %v1931_v21  ;;  %3063 = vadd.xlane.f32.xlu1 %v3062_v47  ;;  %v8612_v47 = vld [vmem:[#allocation11_spill] sm:$0xff]  ;;  %v1849_v21 = vsel %vm7808_vm4, 0, %v1847_v28  ;;  %vm7868_vm1 = vcmp.le.f32.partialorder %v1863_v3, 0.7853982  ;;  %vm1955_vm15 = vweird.f32 %v8597_v17 }
 0x3a4   :  { %v3253_v1 = vsub.f32 %v8612_v47, %v7746_v41  ;;  %v3299_v16 = vadd.f32 1e-05, %v3235_v11  ;;  %v1853_v54 = vand.u32 3, %v1849_v21  ;;  %v7857_v63 = vpop.f32.mrf.mxu0 }
 0x3a5   :  { %v4764_v4 = vpop.eup %4763  ;;  %vm4201_vm7 = vcmp.lt.s32.totalorder %v4200_v8, 0  ;;  %3191 = vadd.xlane.f32.xlu0 %v3190_v48  ;;  %v3024_v2 = vpop.xlane.xlu1 %3023 }
 0x3a6   :  { %v1934_v26 = vsel %vm4201_vm7, 0, %v4200_v8  ;;  %v3330_v30 = vmul.f32 %v4764_v4, %v3250_v7  ;;  %v3329_v15 = vmul.f32 %v4764_v4, %v3249_v62  ;;  %v7837_v32 = vmul.f32 %v4764_v4, %v3251_v35  ;;  %v3424_v7 = vld [vmem:[#allocation5 + $0x178] sm:$0xff] }
 0x3a7   :  { %v1935_v44 = vsub.s32 32, %v1934_v26  ;;  %v1939_v27 = vsub.s32 4294967266, %v1934_v26  ;;  %v1936_v19 = vshll.u32 %v7795_v24, %v1934_v26  ;;  %4403 = vmatprep.subr.mxu1 %v3424_v7  ;;  %4771 = vrsqrt.f32 %v3299_v16 }
 0x3a8   :  { %3494 = vmatprep.mubr.f32.mxu1 %v3330_v30  ;;  %v4766_v61 = vpop.eup %4765  ;;  %v7850_v28 = vmul.f32 0.0034722222, %v3024_v2  ;;  %vm1858_vm6 = vcmp.eq.s32.totalorder %v1853_v54, 2  ;;  %vm1855_vm14 = vcmp.eq.s32.totalorder %v1853_v54, 0  ;;  %vm1854_vm8 = vcmp.lt.s32.totalorder %v1853_v54, 2 }
 0x3a9   :  { %v1937_v14 = vshrl.u32 %v1919_v22, %v1935_v44  ;;  %v1940_v48 = vadd.s32 127, %v1939_v27  ;;  %3495 = vmatmul.mubr.f32.vlgmr.msra.gmra.mxu1 %v3329_v15  ;;  %v3333_v8 = vmul.f32 %v4766_v61, %v3253_v1  ;;  %v3332_v53 = vmul.f32 %v4766_v61, %v3252_v18  ;;  %v3152_v27 = vpop.xlane.xlu0 %3151 }
 0x3aa   :  { %v7848_v39 = vmul.f32 %v4766_v61, %v3254_v46  ;;  %4404 = vmatpush3.msra.mxu1 %v3424_v7  ;;  %v3220_v44 = vmul.f32 %v7850_v28, %v7850_v28  ;;  %v3204_v11 = vmul.f32 0.0034722222, %v3152_v27  ;;  %v3133_v7 = vmul.f32 %v7857_v63, %v7857_v63 }
 0x3ab   :  { %v1938_v62 = vor.u32 %v1937_v14, %v1936_v19  ;;  %v1941_v4 = vshll.u32 %v1940_v48, 23  ;;  %3499 = vmatprep.mubr.f32.mxu1 %v3333_v8  ;;  %4405 = vmatprep.subr.mxu1 %v3423_v42  ;;  %v3132_v19 = vmul.f32 %v7852_v31, %v7852_v31  ;;  %v8621_v48 = vld [vmem:[#allocation18_spill] sm:$0xff] }
 0x3ac   :  { %4406 = vmatpush3.msra.mxu1 %v3423_v42  ;;  %v3236_v61 = vsub.f32 %v3204_v11, %v3220_v44  ;;  %v3419_v11 = vld [vmem:[#allocation5 + $0x150] sm:$0xff] }
 0x3ad   :  { %v1942_v41 = vor.u32 4788187, %v1941_v4  ;;  %3500 = vmatmul.mubr.f32.gmra.mxu1 %v3332_v53  ;;  %v1945_v15 = vcvt.s32.f32 %v1938_v62  ;;  %4407 = vmatprep.subr.mxu1 %v3422_v49  ;;  %v1949_v62 = vsub.s32 4, %v7778_v37  ;;  %v8616_v4 = vld [vmem:[#allocation14_spill] sm:$0xff] }
 0x3ae   :  { %v4768_v24 = vpop.eup %4767  ;;  %4408 = vmatpush3.msra.mxu1 %v3422_v49  ;;  %v3300_v16 = vadd.f32 1e-05, %v3236_v61  ;;  %v3256_v54 = vsub.f32 %v8616_v4, %v7822_v10  ;;  %v7904_v4 = vpop.f32.mrf.mxu0 }
 0x3af   :  { %v4770_v35 = vpop.eup %4769  ;;  %v1859_v26 = vxor.u32 2147483648, %v4768_v24  ;;  %v1943_v30 = vand.u32 2147483647, %v1942_v41  ;;  %v8617_v41 = vld [vmem:[#allocation49_spill] sm:$0xff] }
 0x3b0   :  { %v1856_v22 = vxor.u32 2147483648, %v4770_v35  ;;  %v3255_v2 = vsub.f32 %v8617_v41, %v7822_v10 }
 0x3b1   :  { %v1860_v5 = vsel %vm1858_vm6, %v1859_v26, %v4770_v35  ;;  %v1946_v46 = vmul.f32 %v1945_v15, %v1943_v30  ;;  %v8618_v35 = vld [vmem:[#allocation15_spill] sm:$0xff] }
 0x3b2   :  { %v1857_v47 = vsel %vm1855_vm14, %v4768_v24, %v1856_v22  ;;  %v3421_v24 = vld [vmem:[#allocation5 + $0x160] sm:$0xff]  ;;  %v3257_v26 = vsub.f32 %v8618_v35, %v7822_v10  ;;  %v3418_v10 = vld [vmem:[#allocation5 + $0x148] sm:$0xff]  ;;  %v7913_v35 = vpop.f32.mrf.mxu0 }
 0x3b3   :  { %v1861_v1 = vsel %vm1854_vm8, %v1857_v47, %v1860_v5  ;;  %v1947_v18 = vxor.u32 2147483648, %v1946_v46  ;;  %4409 = vmatprep.subr.mxu1 %v3421_v24  ;;  %v3420_v5 = vld [vmem:[#allocation5 + $0x158] sm:$0xff]  ;;  %v3136_v36 = vmul.f32 %v7913_v35, %v7913_v35 }
 0x3b4   :  { %v1862_v21 = vsel %vm1852_vm5, nan, %v1861_v1  ;;  %v4772_v30 = vpop.eup %4771  ;;  %4410 = vmatpush3.msra.mxu1 %v3421_v24  ;;  %v3417_v1 = vld [vmem:[#allocation5 + $0x140] sm:$0xff] }
 0x3b5   :  { %v7864_v14 = vsel %vm1966_vm0, %v1862_v21, 0.0  ;;  %v1948_v45 = vsel %vm1865_vm2, %v1947_v18, %v1946_v46  ;;  %v3336_v22 = vmul.f32 %v4772_v30, %v3256_v54  ;;  %v3335_v44 = vmul.f32 %v4772_v30, %v3255_v2  ;;  %4411 = vmatprep.subr.mxu1 %v3420_v5 }
 0x3b6   :  { %v3065_v8 = vadd.f32 %v7852_v31, %v7864_v14  ;;  %v3131_v53 = vmul.f32 %v7864_v14, %v7864_v14  ;;  %v1951_v3 = vsel %vm7868_vm1, %v8597_v17, %v1948_v45  ;;  %v7891_v27 = vmul.f32 %v4772_v30, %v3257_v26  ;;  %4412 = vmatpush3.msra.mxu1 %v3420_v5  ;;  %v3416_v17 = vld [vmem:[#allocation5 + $0x138] sm:$0xff] }
 0x3b7   :  { %4773 = vcosq.f32 %v1951_v3  ;;  %v1950_v46 = vsel %vm1865_vm2, %v1949_v62, %v7778_v37  ;;  %3504 = vmatprep.mubr.f32.mxu1 %v3336_v22  ;;  %4413 = vmatprep.subr.mxu1 %v3419_v11 }
 0x3b8   :  { %v3193_v42 = vadd.f32 %v3132_v19, %v3131_v53  ;;  %v3066_v49 = vadd.f32 %v3065_v8, %v7857_v63  ;;  %4775 = vsinq.f32 %v1951_v3  ;;  %3505 = vmatmul.mubr.f32.gmra.mxu1 %v3335_v44  ;;  %v1952_v47 = vsel %vm7868_vm1, 0, %v1950_v46  ;;  %v8619_v19 = vld [vmem:[#allocation16_spill] sm:$0xff] }
 0x3b9   :  { %4777 = vrsqrt.f32 %v3300_v16  ;;  %4414 = vmatpush3.msra.mxu1 %v3419_v11  ;;  %v1956_v18 = vand.u32 3, %v1952_v47  ;;  %v3259_v45 = vsub.f32 %v8619_v19, %v7850_v28  ;;  %v8620_v16 = vld [vmem:[#allocation50_spill] sm:$0xff]  ;;  %v3260_v53 = vsub.f32 %v8621_v48, %v7850_v28 }
 0x3ba   :  { %3067 = vadd.xlane.f32.xlu1 %v3066_v49  ;;  %v3194_v15 = vadd.f32 %v3193_v42, %v3133_v7  ;;  %4415 = vmatprep.subr.mxu1 %v3418_v10  ;;  %v3258_v8 = vsub.f32 %v8620_v16, %v7850_v28 }
 0x3bb   :  { %4416 = vmatpush3.msra.mxu1 %v3418_v10  ;;  %vm1958_vm11 = vcmp.eq.s32.totalorder %v1956_v18, 0  ;;  %vm1961_vm13 = vcmp.eq.s32.totalorder %v1956_v18, 2  ;;  %vm1957_vm10 = vcmp.lt.s32.totalorder %v1956_v18, 2 }
 0x3bc   :  { %3195 = vadd.xlane.f32.xlu0 %v3194_v15  ;;  %4417 = vmatprep.subr.mxu1 %v3417_v1  ;;  %v3135_v15 = vmul.f32 %v7904_v4, %v7904_v4 }
 0x3bd   :  { %4418 = vmatpush3.msra.mxu1 %v3417_v1 }
 0x3be   :  { %4419 = vmatprep.subr.mxu1 %v3416_v17 }
 0x3bf   :  { %4420 = vmatpush3.msra.mxu1 %v3416_v17  ;;  %v3410_v17 = vld [vmem:[#allocation5 + $0x108] sm:$0xff] }
 0x3c4   :  { %v4774_v61 = vpop.eup %4773 }
 0x3c5   :  { %v4776_v37 = vpop.eup %4775  ;;  %v1962_v21 = vxor.u32 2147483648, %v4774_v61 }
 0x3c6   :  { %v4778_v7 = vpop.eup %4777  ;;  %v1959_v3 = vxor.u32 2147483648, %v4776_v37 }
 0x3c7   :  { %v1963_v62 = vsel %vm1961_vm13, %v1962_v21, %v4776_v37  ;;  %v3339_v54 = vmul.f32 %v4778_v7, %v3259_v45  ;;  %v3338_v41 = vmul.f32 %v4778_v7, %v3258_v8  ;;  %v7906_v2 = vmul.f32 %v4778_v7, %v3260_v53  ;;  %v3415_v21 = vld [vmem:[#allocation5 + $0x130] sm:$0xff] }
 0x3c8   :  { %v1960_v24 = vsel %vm1958_vm11, %v4774_v61, %v1959_v3  ;;  %4421 = vmatprep.subr.mxu1 %v3415_v21 }
 0x3c9   :  { %v1964_v42 = vsel %vm1957_vm10, %v1960_v24, %v1963_v62  ;;  %3509 = vmatprep.mubr.f32.mxu1 %v3339_v54  ;;  %4422 = vmatpush3.msra.mxu1 %v3415_v21  ;;  %v3414_v24 = vld [vmem:[#allocation5 + $0x128] sm:$0xff] }
 0x3ca   :  { %v1965_v49 = vsel %vm1955_vm15, nan, %v1964_v42  ;;  %3510 = vmatmul.mubr.f32.gmra.mxu1 %v3338_v41  ;;  %v3413_v42 = vld [vmem:[#allocation5 + $0x120] sm:$0xff]  ;;  %4423 = vmatprep.subr.mxu1 %v3414_v24  ;;  %v8625_v21 = vld [vmem:[#allocation22_spill] sm:$0xff] }
 0x3cb   :  { %v7911_v28 = vsel %vm1966_vm0, %v1965_v49, 0.0  ;;  %4424 = vmatpush3.msra.mxu1 %v3414_v24  ;;  %vm3920_vm0 = vcmask 523264  }
 0x3cc   :  { %v3069_v26 = vadd.f32 %v7904_v4, %v7911_v28  ;;  %v3134_v30 = vmul.f32 %v7911_v28, %v7911_v28  ;;  %4425 = vmatprep.subr.mxu1 %v3413_v42 }
 0x3cd   :  { %4426 = vmatpush3.msra.mxu1 %v3413_v42 }
 0x3ce   :  { %v3197_v22 = vadd.f32 %v3135_v15, %v3134_v30  ;;  %v3070_v44 = vadd.f32 %v3069_v26, %v7913_v35  ;;  %v3412_v26 = vld [vmem:[#allocation5 + $0x118] sm:$0xff]  ;;  %v3411_v15 = vld [vmem:[#allocation5 + $0x110] sm:$0xff] }
 0x3cf   :  { %4427 = vmatprep.subr.mxu1 %v3412_v26 }
 0x3d0   :  { %3071 = vadd.xlane.f32.xlu1 %v3070_v44  ;;  %v3198_v5 = vadd.f32 %v3197_v22, %v3136_v36  ;;  %v3028_v46 = vpop.xlane.xlu1 %3027  ;;  %4428 = vmatpush3.msra.mxu1 %v3412_v26  ;;  %v8622_v22 = vld [vmem:[#allocation20_spill] sm:$0xff] }
 0x3d1   :  { %v3077_v11 = vmul.f32 0.0034722222, %v3028_v46  ;;  %4429 = vmatprep.subr.mxu1 %v3411_v15  ;;  %v8623_v36 = vld [vmem:[#allocation48_spill] sm:$0xff]  ;;  %v8624_v46 = vld [vmem:[#allocation21_spill] sm:$0xff] }
 0x3d2   :  { %3199 = vadd.xlane.f32.xlu0 %v3198_v5  ;;  %v3156_v10 = vpop.xlane.xlu0 %3155  ;;  %4430 = vmatpush3.msra.mxu1 %v3411_v15 }
 0x3d3   :  { %v3221_v47 = vmul.f32 %v3077_v11, %v3077_v11  ;;  %v3205_v1 = vmul.f32 0.0034722222, %v3156_v10  ;;  %v3262_v44 = vsub.f32 %v8622_v22, %v3077_v11  ;;  %v3261_v5 = vsub.f32 %v8623_v36, %v3077_v11  ;;  %4431 = vmatprep.subr.mxu1 %v3410_v17 }
 0x3d4   :  { %v3032_v18 = vpop.xlane.xlu1 %3031  ;;  %v3263_v10 = vsub.f32 %v8624_v46, %v3077_v11  ;;  %4432 = vmatpush3.msra.mxu1 %v3410_v17  ;;  %v3409_v11 = vld [vmem:[#allocation5 + $0x100] sm:$0xff] }
 0x3d5   :  { %v3237_v61 = vsub.f32 %v3205_v1, %v3221_v47  ;;  %v3078_v37 = vmul.f32 0.0034722222, %v3032_v18  ;;  %4433 = vmatprep.subr.mxu1 %v3409_v11 }
 0x3d6   :  { %v3160_v19 = vpop.xlane.xlu0 %3159  ;;  %4434 = vmatpush3.msra.mxu1 %v3409_v11 }
 0x3d7   :  { %v3301_v45 = vadd.f32 1e-05, %v3237_v61  ;;  %v3222_v16 = vmul.f32 %v3078_v37, %v3078_v37  ;;  %v3206_v8 = vmul.f32 0.0034722222, %v3160_v19  ;;  %v3265_v19 = vsub.f32 %v8625_v21, %v3078_v37 }
 0x3d9   :  { %4779 = vrsqrt.f32 %v3301_v45  ;;  %v3238_v48 = vsub.f32 %v3206_v8, %v3222_v16  ;;  %v3036_v53 = vpop.xlane.xlu1 %3035  ;;  %v8626_v45 = vld [vmem:[#allocation55_spill] sm:$0xff]  ;;  %v3266_v8 = vsub.f32 %v8552_v51, %v3078_v37 }
 0x3da   :  { %v3079_v3 = vmul.f32 0.0034722222, %v3036_v53  ;;  %v3264_v16 = vsub.f32 %v8626_v45, %v3078_v37 }
 0x3db   :  { %v3302_v7 = vadd.f32 1e-05, %v3238_v48 }
 0x3dc   :  { %v3164_v62 = vpop.xlane.xlu0 %3163  ;;  %v3223_v54 = vmul.f32 %v3079_v3, %v3079_v3  ;;  %v3269_v24 = vsub.f32 %v8557_v52, %v3079_v3 }
 0x3dd   :  { %4781 = vrsqrt.f32 %v3302_v7  ;;  %v3207_v41 = vmul.f32 0.0034722222, %v3164_v62 }
 0x3df   :  { %v3239_v49 = vsub.f32 %v3207_v41, %v3223_v54  ;;  %v3268_v54 = vsub.f32 %v8556_v38, %v3079_v3  ;;  %v3267_v41 = vsub.f32 %v7335_v23, %v3079_v3 }
 0x3e1   :  { %v3303_v30 = vadd.f32 1e-05, %v3239_v49 }
 0x3e3   :  { %4783 = vrsqrt.f32 %v3303_v30 }
 0x3e6   :  { %v4780_v47 = vpop.eup %4779 }
 0x3e7   :  { %v3342_v1 = vmul.f32 %v4780_v47, %v3262_v44  ;;  %v3341_v18 = vmul.f32 %v4780_v47, %v3261_v5  ;;  %v7927_v61 = vmul.f32 %v4780_v47, %v3263_v10 }
 0x3e9   :  { %3514 = vmatprep.mubr.f32.mxu1 %v3342_v1 }
 0x3ea   :  { %v4782_v48 = vpop.eup %4781  ;;  %3515 = vmatmul.mubr.f32.gmra.mxu1 %v3341_v18 }
 0x3eb   :  { %v3345_v53 = vmul.f32 %v4782_v48, %v3265_v19  ;;  %v3344_v7 = vmul.f32 %v4782_v48, %v3264_v16  ;;  %v7932_v62 = vmul.f32 %v4782_v48, %v3266_v8 }
 0x3ed   :  { %3519 = vmatprep.mubr.f32.mxu1 %v3345_v53 }
 0x3ee   :  { %3520 = vmatmul.mubr.f32.gmra.mxu1 %v3344_v7 }
 0x3f0   :  { %v4784_v42 = vpop.eup %4783 }
 0x3f1   :  { %v3348_v49 = vmul.f32 %v4784_v42, %v3268_v54  ;;  %v3347_v51 = vmul.f32 %v4784_v42, %v3267_v41  ;;  %v7937_v37 = vmul.f32 %v4784_v42, %v3269_v24 }
 0x3f3   :  { %3524 = vmatprep.mubr.f32.mxu1 %v3348_v49 }
 0x3f4   :  { %3525 = vmatmul.mubr.f32.gmra.mxu1 %v3347_v51 }
 0x3f9   :  { %v3040_v26 = vpop.xlane.xlu1 %3039 }
 0x3fa   :  { %v3080_v30 = vmul.f32 0.0034722222, %v3040_v26 }
 0x3fb   :  { %v3168_v15 = vpop.xlane.xlu0 %3167 }
 0x3fc   :  { %v3224_v17 = vmul.f32 %v3080_v30, %v3080_v30  ;;  %v3208_v22 = vmul.f32 0.0034722222, %v3168_v15  ;;  %v3271_v47 = vsub.f32 %v8579_v20, %v3080_v30  ;;  %v3270_v1 = vsub.f32 %v7562_v33, %v3080_v30 }
 0x3fd   :  { %v3272_v18 = vsub.f32 %v8580_v60, %v3080_v30 }
 0x3fe   :  { %v3240_v44 = vsub.f32 %v3208_v22, %v3224_v17 }
 0x400   :  { %v3044_v36 = vpop.xlane.xlu1 %3043  ;;  %v3304_v38 = vadd.f32 1e-05, %v3240_v44 }
 0x401   :  { %v3081_v5 = vmul.f32 0.0034722222, %v3044_v36 }
 0x402   :  { %v3172_v23 = vpop.xlane.xlu0 %3171  ;;  %4785 = vrsqrt.f32 %v3304_v38 }
 0x403   :  { %v3225_v46 = vmul.f32 %v3081_v5, %v3081_v5  ;;  %v3209_v52 = vmul.f32 0.0034722222, %v3172_v23  ;;  %v3274_v8 = vsub.f32 %v8583_v12, %v3081_v5  ;;  %v3273_v48 = vsub.f32 %v7601_v59, %v3081_v5 }
 0x404   :  { %v3275_v53 = vsub.f32 %v8584_v29, %v3081_v5 }
 0x405   :  { %v3241_v3 = vsub.f32 %v3209_v52, %v3225_v46 }
 0x407   :  { %v3305_v10 = vadd.f32 1e-05, %v3241_v3 }
 0x409   :  { %4787 = vrsqrt.f32 %v3305_v10 }
 0x40f   :  { %v4786_v21 = vpop.eup %4785 }
 0x410   :  { %v3351_v19 = vmul.f32 %v4786_v21, %v3271_v47  ;;  %v3350_v45 = vmul.f32 %v4786_v21, %v3270_v1  ;;  %v7942_v16 = vmul.f32 %v4786_v21, %v3272_v18 }
 0x412   :  { %3529 = vmatprep.mubr.f32.mxu1 %v3351_v19 }
 0x413   :  { %3530 = vmatmul.mubr.f32.gmra.mxu1 %v3350_v45 }
 0x416   :  { %v4788_v7 = vpop.eup %4787 }
 0x417   :  { %v3354_v11 = vmul.f32 %v4788_v7, %v3274_v8  ;;  %v3353_v20 = vmul.f32 %v4788_v7, %v3273_v48  ;;  %v7947_v54 = vmul.f32 %v4788_v7, %v3275_v53 }
 0x419   :  { %3534 = vmatprep.mubr.f32.mxu1 %v3354_v11 }
 0x41a   :  { %3535 = vmatmul.mubr.f32.gmra.mxu1 %v3353_v20 }
 0x41c   :  { %v3048_v33 = vpop.xlane.xlu1 %3047 }
 0x41d   :  { %v3082_v60 = vmul.f32 0.0034722222, %v3048_v33 }
 0x41e   :  { %v3176_v41 = vpop.xlane.xlu0 %3175 }
 0x41f   :  { %v3226_v24 = vmul.f32 %v3082_v60, %v3082_v60  ;;  %v3210_v42 = vmul.f32 0.0034722222, %v3176_v41  ;;  %v3277_v7 = vsub.f32 %v8598_v13, %v3082_v60  ;;  %v3276_v11 = vsub.f32 %v7737_v40, %v3082_v60 }
 0x420   :  { %v3052_v49 = vpop.xlane.xlu1 %3051  ;;  %v3278_v33 = vsub.f32 %v8599_v57, %v3082_v60 }
 0x421   :  { %v3242_v51 = vsub.f32 %v3210_v42, %v3226_v24  ;;  %v3083_v26 = vmul.f32 0.0034722222, %v3052_v49 }
 0x422   :  { %v3180_v12 = vpop.xlane.xlu0 %3179 }
 0x423   :  { %v3306_v30 = vadd.f32 1e-05, %v3242_v51  ;;  %v3227_v59 = vmul.f32 %v3083_v26, %v3083_v26  ;;  %v3211_v15 = vmul.f32 0.0034722222, %v3180_v12  ;;  %v8627_v12 = vld [vmem:[#allocation25_spill] sm:$0xff]  ;;  %v3281_v13 = vsub.f32 %v6889_v34, %v3083_v26 }
 0x424   :  { %v3056_v29 = vpop.xlane.xlu1 %3055 }
 0x425   :  { %4789 = vrsqrt.f32 %v3306_v30  ;;  %v3243_v17 = vsub.f32 %v3211_v15, %v3227_v59  ;;  %v3084_v22 = vmul.f32 0.0034722222, %v3056_v29  ;;  %v3280_v30 = vsub.f32 %v8627_v12, %v3083_v26  ;;  %v8628_v59 = vld [vmem:[#allocation29_spill] sm:$0xff] }
 0x426   :  { %v3184_v44 = vpop.xlane.xlu0 %3183  ;;  %v3279_v15 = vsub.f32 %v8628_v59, %v3083_v26 }
 0x427   :  { %v3307_v36 = vadd.f32 1e-05, %v3243_v17  ;;  %v3228_v38 = vmul.f32 %v3084_v22, %v3084_v22  ;;  %v3212_v5 = vmul.f32 0.0034722222, %v3184_v44  ;;  %v3283_v57 = vsub.f32 %v6943_v56, %v3084_v22 }
 0x428   :  { %v3060_v23 = vpop.xlane.xlu1 %3059  ;;  %v3282_v60 = vsub.f32 %v7428_v50, %v3084_v22 }
 0x429   :  { %4791 = vrsqrt.f32 %v3307_v36  ;;  %v3244_v46 = vsub.f32 %v3212_v5, %v3228_v38  ;;  %v3085_v52 = vmul.f32 0.0034722222, %v3060_v23  ;;  %v3284_v36 = vsub.f32 %v8604_v43, %v3084_v22 }
 0x42a   :  { %v3188_v3 = vpop.xlane.xlu0 %3187 }
 0x42b   :  { %v3308_v10 = vadd.f32 1e-05, %v3244_v46  ;;  %v3229_v47 = vmul.f32 %v3085_v52, %v3085_v52  ;;  %v3213_v1 = vmul.f32 0.0034722222, %v3188_v3  ;;  %v3286_v34 = vsub.f32 %v7755_v25, %v3085_v52 }
 0x42c   :  { %v3064_v18 = vpop.xlane.xlu1 %3063  ;;  %v3285_v26 = vsub.f32 %v7707_v58, %v3085_v52  ;;  %v3287_v3 = vsub.f32 %v7772_v55, %v3085_v52 }
 0x42d   :  { %4793 = vrsqrt.f32 %v3308_v10  ;;  %v3245_v21 = vsub.f32 %v3213_v1, %v3229_v47  ;;  %v3086_v19 = vmul.f32 0.0034722222, %v3064_v18 }
 0x42e   :  { %v3192_v45 = vpop.xlane.xlu0 %3191 }
 0x42f   :  { %v3309_v8 = vadd.f32 1e-05, %v3245_v21  ;;  %v3230_v48 = vmul.f32 %v3086_v19, %v3086_v19  ;;  %v3214_v53 = vmul.f32 0.0034722222, %v3192_v45  ;;  %v3289_v43 = vsub.f32 %v7785_v6, %v3086_v19 }
 0x430   :  { %v3288_v22 = vsub.f32 %v7776_v9, %v3086_v19  ;;  %v3290_v1 = vsub.f32 %v7802_v0, %v3086_v19 }
 0x431   :  { %4795 = vrsqrt.f32 %v3309_v8  ;;  %v3246_v20 = vsub.f32 %v3214_v53, %v3230_v48 }
 0x432   :  { %v4790_v41 = vpop.eup %4789 }
 0x433   :  { %v3357_v24 = vmul.f32 %v4790_v41, %v3277_v7  ;;  %v3356_v42 = vmul.f32 %v4790_v41, %v3276_v11  ;;  %v3310_v49 = vadd.f32 1e-05, %v3246_v20  ;;  %v7952_v51 = vmul.f32 %v4790_v41, %v3278_v33 }
 0x435   :  { %3539 = vmatprep.mubr.f32.mxu1 %v3357_v24  ;;  %4797 = vrsqrt.f32 %v3310_v49 }
 0x436   :  { %v4792_v29 = vpop.eup %4791  ;;  %3540 = vmatmul.mubr.f32.gmra.mxu1 %v3356_v42 }
 0x437   :  { %v3360_v40 = vmul.f32 %v4792_v29, %v3280_v30  ;;  %v3359_v17 = vmul.f32 %v4792_v29, %v3279_v15  ;;  %v7957_v44 = vmul.f32 %v4792_v29, %v3281_v13 }
 0x439   :  { %3544 = vmatprep.mubr.f32.mxu1 %v3360_v40 }
 0x43a   :  { %v4794_v38 = vpop.eup %4793  ;;  %3545 = vmatmul.mubr.f32.gmra.mxu1 %v3359_v17 }
 0x43b   :  { %v3363_v5 = vmul.f32 %v4794_v38, %v3283_v57  ;;  %v3362_v23 = vmul.f32 %v4794_v38, %v3282_v60  ;;  %v7962_v46 = vmul.f32 %v4794_v38, %v3284_v36 }
 0x43d   :  { %3549 = vmatprep.mubr.f32.mxu1 %v3363_v5 }
 0x43e   :  { %v4796_v10 = vpop.eup %4795  ;;  %3550 = vmatmul.mubr.f32.gmra.mxu1 %v3362_v23  ;;  %v3919_v23 = vld [vmem:[%s8273_s4 + $0x38] sm:$0xff] }
 0x43f   :  { %v3366_v56 = vmul.f32 %v4796_v10, %v3286_v34  ;;  %v3365_v47 = vmul.f32 %v4796_v10, %v3285_v26  ;;  %v3367_v50 = vmul.f32 %v4796_v10, %v3287_v3  ;;  %4459 = vmatprep.subr.mxu0 %v3919_v23  ;;  %4499 = vmatprep.subr.mxu1 %v3919_v23  ;;  %v3917_v34 = vld [vmem:[%s8273_s4 + $0x28] sm:$0xff]  ;;  %v3916_v26 = vld [vmem:[%s8273_s4 + $0x20] sm:$0xff]  ;;  %v3915_v3 = vld [vmem:[%s8273_s4 + $0x18] sm:$0xff] }
 0x440   :  { %4460 = vmatpush3.msra.mxu0 %v3919_v23 }
 0x441   :  { %3554 = vmatprep.mubr.f32.mxu1 %v3366_v56 }
 0x442   :  { %v4798_v18 = vpop.eup %4797  ;;  %3555 = vmatmul.mubr.f32.gmra.mxu1 %v3365_v47 }
 0x443   :  { %v3068_v21 = vpop.xlane.xlu1 %3067  ;;  %v3369_v45 = vmul.f32 %v4798_v18, %v3289_v43  ;;  %v3368_v58 = vmul.f32 %v4798_v18, %v3288_v22  ;;  %v3370_v8 = vmul.f32 %v4798_v18, %v3290_v1 }
 0x444   :  { %v3087_v25 = vmul.f32 0.0034722222, %v3068_v21 }
 0x445   :  { %v3196_v55 = vpop.xlane.xlu0 %3195  ;;  %3559 = vmatprep.mubr.f32.mxu1 %v3369_v45 }
 0x446   :  { %v3231_v52 = vmul.f32 %v3087_v25, %v3087_v25  ;;  %v3215_v48 = vmul.f32 0.0034722222, %v3196_v55  ;;  %3560 = vmatmul.mubr.f32.gmra.mxu1 %v3368_v58  ;;  %v3292_v6 = vsub.f32 %v7852_v31, %v3087_v25  ;;  %v3291_v9 = vsub.f32 %v7864_v14, %v3087_v25  ;;  %v3914_v55 = vld [vmem:[%s8273_s4 + $0x10] sm:$0xff] }
 0x447   :  { %v3293_v0 = vsub.f32 %v7857_v63, %v3087_v25 }
 0x448   :  { %v3247_v53 = vsub.f32 %v3215_v48, %v3231_v52  ;;  %v3913_v52 = vld [vmem:[%s8273_s4 + $0x8] sm:$0xff] }
 0x44a   :  { %v3311_v7 = vadd.f32 1e-05, %v3247_v53  ;;  %v3912_v53 = vld [vmem:[%s8273_s4] sm:$0xff] }
 0x44c   :  { %4799 = vrsqrt.f32 %v3311_v7 }
 0x459   :  { %v4800_v19 = vpop.eup %4799  ;;  %v3072_v11 = vpop.xlane.xlu1 %3071 }
 0x45a   :  { %v3088_v20 = vmul.f32 0.0034722222, %v3072_v11  ;;  %v3372_v33 = vmul.f32 %v4800_v19, %v3292_v6  ;;  %v3371_v41 = vmul.f32 %v4800_v19, %v3291_v9  ;;  %v3373_v24 = vmul.f32 %v4800_v19, %v3293_v0  ;;  %v8057_v0 = vld [vmem:[%s8270_s1 + $0x2] ss:$0 sm:$0xff] }
 0x45b   :  { %v3200_v42 = vpop.xlane.xlu0 %3199 }
 0x45c   :  { %v3232_v49 = vmul.f32 %v3088_v20, %v3088_v20  ;;  %v3216_v12 = vmul.f32 0.0034722222, %v3200_v42  ;;  %3564 = vmatprep.mubr.f32.mxu1 %v3372_v33  ;;  %v3295_v31 = vsub.f32 %v7904_v4, %v3088_v20  ;;  %v3294_v14 = vsub.f32 %v7911_v28, %v3088_v20 }
 0x45d   :  { %3565 = vmatmul.mubr.f32.gmra.mxu1 %v3371_v41 }
 0x45e   :  { %v3248_v30 = vsub.f32 %v3216_v12, %v3232_v49 }
 0x460   :  { %v3312_v59 = vadd.f32 1e-05, %v3248_v30 }
 0x462   :  { %4801 = vrsqrt.f32 %v3312_v59 }
 0x46f   :  { %v4802_v15 = vpop.eup %4801 }
 0x470   :  { %v3375_v63 = vmul.f32 %v4802_v15, %v3295_v31  ;;  %v3374_v13 = vmul.f32 %v4802_v15, %v3294_v14 }
 0x472   :  { %3569 = vmatprep.mubr.f32.mxu1 %v3375_v63 }
 0x473   :  { %3570 = vmatmul.mubr.f32.gmra.mxu1 %v3374_v13 }
 0x474   :  { %4435 = vmatprep.mubr.f32.mxu1 %v7837_v32  ;;  %v3296_v32 = vsub.f32 %v7913_v35, %v3088_v20 }
 0x477   :  { %4436 = vmatmul.mubr.f32.vlgmr.msra.gmra.mxu1 %v7848_v39  ;;  %v3376_v39 = vmul.f32 %v4802_v15, %v3296_v32 }
 0x478   :  { %4438 = vmatprep.mubr.f32.mxu1 %v7891_v27  ;;  %v7988_v27 = vpop.f32.mrf.mxu1  ;;  %4507 = vmatpush3.msra.mxu1 %v3919_v23 }
 0x47a   :  { %v7990_v4 = vpop.f32.mrf.mxu1 }
 0x47b   :  { %4439 = vmatmul.mubr.f32.gmra.mxu1 %v7906_v2  ;;  %v4301_v19 = vadd.f32 %v7990_v4, %v7988_v27 }
 0x47c   :  { %4441 = vmatprep.mubr.f32.mxu1 %v7927_v61  ;;  %v7992_v2 = vpop.f32.mrf.mxu1 }
 0x47d   :  { %v3497_v49 = vadd.f32 %v4301_v19, %v8057_v0 }
 0x47e   :  { %v7994_v28 = vpop.f32.mrf.mxu1 }
 0x47f   :  { %4442 = vmatmul.mubr.f32.gmra.mxu1 %v7932_v62  ;;  %v4304_v7 = vadd.f32 %v7994_v28, %v7992_v2 }
 0x480   :  { %4444 = vmatprep.mubr.f32.mxu1 %v7937_v37  ;;  %v7996_v61 = vpop.f32.mrf.mxu1 }
 0x481   :  { %v3502_v20 = vadd.f32 %v4304_v7, %v8057_v0 }
 0x482   :  { %v7998_v62 = vpop.f32.mrf.mxu1 }
 0x483   :  { %4445 = vmatmul.mubr.f32.gmra.mxu1 %v7942_v16  ;;  %v4307_v42 = vadd.f32 %v7998_v62, %v7996_v61 }
 0x484   :  { %4447 = vmatprep.mubr.f32.mxu1 %v7947_v54 }
 0x485   :  { %v3507_v15 = vadd.f32 %v4307_v42, %v8057_v0 }
 0x487   :  { %4448 = vmatmul.mubr.f32.gmra.mxu1 %v7952_v51 }
 0x488   :  { %4450 = vmatprep.mubr.f32.mxu1 %v7957_v44 }
 0x48a   :  { %v8000_v37 = vpop.f32.mrf.mxu1 }
 0x48b   :  { %4451 = vmatmul.mubr.f32.gmra.mxu1 %v7962_v46  ;;  %v3918_v46 = vld [vmem:[%s8273_s4 + $0x30] sm:$0xff]  ;;  %s4953_s4 = smov 64  }
 0x48c   :  { %4453 = vmatprep.mubr.f32.mxu1 %v3367_v50  ;;  %v8002_v16 = vpop.f32.mrf.mxu1  ;;  %4461 = vmatprep.subr.mxu0 %v3918_v46 }
 0x48d   :  { %4500 = vmatprep.subr.mxu1 %v3918_v46  ;;  %4462 = vmatpush3.msra.mxu0 %v3918_v46  ;;  %v4310_v11 = vadd.f32 %v8002_v16, %v8000_v37 }
 0x48e   :  { %4508 = vmatpush3.msra.mxu1 %v3918_v46  ;;  %4463 = vmatprep.subr.mxu0 %v3917_v34 }
 0x48f   :  { %4454 = vmatmul.mubr.f32.gmra.mxu1 %v3370_v8  ;;  %4501 = vmatprep.subr.mxu1 %v3917_v34  ;;  %v3512_v12 = vadd.f32 %v4310_v11, %v8057_v0 }
 0x490   :  { %4456 = vmatprep.mubr.f32.mxu1 %v3373_v24  ;;  %4464 = vmatpush3.msra.mxu0 %v3917_v34 }
 0x491   :  { %4509 = vmatpush3.msra.mxu1 %v3917_v34  ;;  %4465 = vmatprep.subr.mxu0 %v3916_v26 }
 0x492   :  { %4502 = vmatprep.subr.mxu1 %v3916_v26  ;;  %4466 = vmatpush3.msra.mxu0 %v3916_v26 }
 0x493   :  { %4457 = vmatmul.mubr.f32.gmra.mxu1 %v3376_v39  ;;  %4467 = vmatprep.subr.mxu0 %v3915_v3 }
 0x494   :  { %4510 = vmatpush3.msra.mxu1 %v3916_v26  ;;  %4468 = vmatpush3.msra.mxu0 %v3915_v3 }
 0x495   :  { %4503 = vmatprep.subr.mxu1 %v3915_v3  ;;  %4469 = vmatprep.subr.mxu0 %v3914_v55 }
 0x496   :  { %4511 = vmatpush3.msra.mxu1 %v3915_v3  ;;  %4470 = vmatpush3.msra.mxu0 %v3914_v55 }
 0x497   :  { %4504 = vmatprep.subr.mxu1 %v3914_v55  ;;  %4471 = vmatprep.subr.mxu0 %v3913_v52 }
 0x498   :  { %4512 = vmatpush3.msra.mxu1 %v3914_v55  ;;  %4472 = vmatpush3.msra.mxu0 %v3913_v52 }
 0x499   :  { %4505 = vmatprep.subr.mxu1 %v3913_v52  ;;  %4473 = vmatprep.subr.mxu0 %v3912_v53 }
 0x49a   :  { %4513 = vmatpush3.msra.mxu1 %v3913_v52  ;;  %4474 = vmatpush3.msra.mxu0 %v3912_v53 }
 0x49b   :  { %4506 = vmatprep.subr.mxu1 %v3912_v53 }
 0x49c   :  { %4514 = vmatpush3.msra.mxu1 %v3912_v53 }
 0x4aa   :  { %v4311_v35 = vpop.f32.mrf.mxu1 }
 0x4ac   :  { %v4312_v54 = vpop.f32.mrf.mxu1 }
 0x4ad   :  { %v8004_v51 = vadd.f32 %v4312_v54, %v4311_v35 }
 0x4ae   :  { %v4314_v29 = vpop.f32.mrf.mxu1 }
 0x4b0   :  { %v4315_v40 = vpop.f32.mrf.mxu1 }
 0x4b1   :  { %v8006_v17 = vadd.f32 %v4315_v40, %v4314_v29 }
 0x4b4   :  { %v4317_v44 = vpop.f32.mrf.mxu1 }
 0x4b6   :  { %v4318_v57 = vpop.f32.mrf.mxu1 }
 0x4b7   :  { %v8008_v60 = vadd.f32 %v4318_v57, %v4317_v44  ;;  %v3517_v57 = vadd.f32 %v8004_v51, %v8057_v0  ;;  %v3522_v51 = vadd.f32 %v8006_v17, %v8057_v0 }
 0x4d3   :  { %v4320_v36 = vpop.f32.mrf.mxu1 }
 0x4d5   :  { %v4321_v38 = vpop.f32.mrf.mxu1 }
 0x4d6   :  { %v8010_v5 = vadd.f32 %v4321_v38, %v4320_v36 }
 0x4da   :  { %v4323_v10 = vpop.f32.mrf.mxu1 }
 0x4dc   :  { %v4324_v56 = vpop.f32.mrf.mxu1 }
 0x4dd   :  { %v4325_v4 = vadd.f32 %v4324_v56, %v4323_v10 }
 0x4df   :  { %v3537_v16 = vadd.f32 %v4325_v4, %v8057_v0 }
 0x4f6   :  { %v4326_v47 = vpop.f32.mrf.mxu1 }
 0x4f8   :  { %v4327_v50 = vpop.f32.mrf.mxu1 }
 0x4f9   :  { %v4328_v39 = vadd.f32 %v4327_v50, %v4326_v47 }
 0x4fa   :  { %v4329_v43 = vpop.f32.mrf.mxu1 }
 0x4fb   :  { %v3542_v61 = vadd.f32 %v4328_v39, %v8057_v0 }
 0x4fc   :  { %v4330_v22 = vpop.f32.mrf.mxu1 }
 0x4fd   :  { %v4331_v54 = vadd.f32 %v4330_v22, %v4329_v43  ;;  %v3527_v43 = vadd.f32 %v8008_v60, %v8057_v0 }
 0x4fe   :  { %v4332_v1 = vpop.f32.mrf.mxu1 }
 0x4ff   :  { %v3547_v34 = vadd.f32 %v4331_v54, %v8057_v0 }
 0x500   :  { %v4333_v18 = vpop.f32.mrf.mxu1 }
 0x501   :  { %v4334_v28 = vadd.f32 %v4333_v18, %v4332_v1 }
 0x502   :  { %v8027_v21 = vpop.f32.mrf.mxu1 }
 0x503   :  { %v3552_v40 = vadd.f32 %v4334_v28, %v8057_v0 }
 0x504   :  { %v8029_v25 = vpop.f32.mrf.mxu1 }
 0x505   :  { %v4337_v56 = vadd.f32 %v8029_v25, %v8027_v21  ;;  %v3532_v25 = vadd.f32 %v8010_v5, %v8057_v0 }
 0x506   :  { %v8031_v45 = vpop.f32.mrf.mxu1 }
 0x507   :  { %v3557_v21 = vadd.f32 %v4337_v56, %v8057_v0 }
 0x508   :  { %v8033_v58 = vpop.f32.mrf.mxu1 }
 0x509   :  { %v4340_v23 = vadd.f32 %v8033_v58, %v8031_v45 }
 0x50b   :  { %v3562_v50 = vadd.f32 %v4340_v23, %v8057_v0 }
 0x51d   :  { %v8035_v8 = vpop.f32.mrf.mxu1 }
 0x51f   :  { %v8043_v48 = vpop.f32.mrf.mxu1 }
 0x520   :  { %v4343_v1 = vadd.f32 %v8043_v48, %v8035_v8 }
 0x522   :  { %v3567_v55 = vadd.f32 %v4343_v1, %v8057_v0 }
 0x533   :  { %v8050_v6 = vpop.f32.mrf.mxu1 }
 0x535   :  { %v8052_v9 = vpop.f32.mrf.mxu1 }
 0x536   :  { %v4346_v58 = vadd.f32 %v8052_v9, %v8050_v6 }
 0x537   :  { %v4437_v33 = vpop.f32.mrf.mxu1 }
 0x538   :  { %v8064_v41 = vadd.f32 %v4437_v33, %v3502_v20  ;;  %v3572_v5 = vadd.f32 %v4346_v58, %v8057_v0 }
 0x539   :  { %v3641_v24 = vpop.f32.mrf.mxu1 }
 0x53a   :  { %3850 = vrot.lane.b32.xlu1 %v8064_v41, %s4953_s4  ;;  %v8072_v59 = vadd.f32 %v3641_v24, %v3497_v49  ;;  %v4236_v53 = vmul.f32 -1.442695, %v8064_v41 }
 0x53b   :  { %v4440_v30 = vpop.f32.mrf.mxu1 }
 0x53c   :  { %v8074_v31 = vadd.f32 %v4440_v30, %v3512_v12  ;;  %v4235_v7 = vmul.f32 -1.442695, %v8072_v59  ;;  %4803 = vpow2.f32 %v4236_v53 }
 0x53d   :  { %v3651_v14 = vpop.f32.mrf.mxu1 }
 0x53e   :  { %3854 = vrot.lane.b32.xlu0 %v8074_v31, %s4953_s4  ;;  %3848 = vrot.lane.b32.xlu1 %v8072_v59, %s4953_s4  ;;  %v8081_v13 = vadd.f32 %v3651_v14, %v3507_v15  ;;  %4805 = vpow2.f32 %v4235_v7  ;;  %v4238_v9 = vmul.f32 -1.442695, %v8074_v31 }
 0x53f   :  { %v4443_v63 = vpop.f32.mrf.mxu1 }
 0x540   :  { %v8115_v47 = vadd.f32 %v4443_v63, %v3522_v51  ;;  %v4237_v6 = vmul.f32 -1.442695, %v8081_v13 }
 0x541   :  { %v3661_v32 = vpop.f32.mrf.mxu1 }
 0x542   :  { %3852 = vrot.lane.b32.xlu0 %v8081_v13, %s4953_s4  ;;  %v8102_v46 = vadd.f32 %v3661_v32, %v3517_v57  ;;  %4807 = vpow2.f32 %v4237_v6  ;;  %v4240_v15 = vmul.f32 -1.442695, %v8115_v47 }
 0x543   :  { %v4446_v27 = vpop.f32.mrf.mxu1  ;;  %4809 = vpow2.f32 %v4238_v9 }
 0x544   :  { %v8141_v8 = vadd.f32 %v4446_v27, %v3532_v25  ;;  %v4239_v33 = vmul.f32 -1.442695, %v8102_v46 }
 0x545   :  { %v3671_v2 = vpop.f32.mrf.mxu1 }
 0x546   :  { %v8128_v18 = vadd.f32 %v3671_v2, %v3527_v43  ;;  %v4242_v2 = vmul.f32 -1.442695, %v8141_v8 }
 0x547   :  { %v4449_v62 = vpop.f32.mrf.mxu1 }
 0x548   :  { %v8086_v37 = vadd.f32 %v4449_v62, %v3542_v61  ;;  %v4241_v39 = vmul.f32 -1.442695, %v8128_v18 }
 0x549   :  { %v3681_v35 = vpop.f32.mrf.mxu1  ;;  %v4804_v19 = vpop.eup %4803 }
 0x54a   :  { %v8089_v29 = vadd.f32 %v3681_v35, %v3537_v16  ;;  %3866 = vrot.lane.b32.xlu1 %v8086_v37, %s4953_s4  ;;  %v4244_v11 = vmul.f32 -1.442695, %v8086_v37  ;;  %v3769_v24 = vadd.f32 1.0, %v4804_v19 }
 0x54b   :  { %v4452_v44 = vpop.f32.mrf.mxu1  ;;  %v4806_v20 = vpop.eup %4805 }
 0x54c   :  { %v8096_v36 = vadd.f32 %v4452_v44, %v3552_v40  ;;  %3864 = vrot.lane.b32.xlu0 %v8089_v29, %s4953_s4  ;;  %v4243_v0 = vmul.f32 -1.442695, %v8089_v29  ;;  %v3768_v42 = vadd.f32 1.0, %v4806_v20 }
 0x54d   :  { %v3691_v38 = vpop.f32.mrf.mxu1 }
 0x54e   :  { %3870 = vrot.lane.b32.xlu1 %v8096_v36, %s4953_s4  ;;  %v8109_v3 = vadd.f32 %v3691_v38, %v3547_v34  ;;  %4811 = vpow2.f32 %v4243_v0  ;;  %v4246_v30 = vmul.f32 -1.442695, %v8096_v36 }
 0x54f   :  { %v4455_v26 = vpop.f32.mrf.mxu1  ;;  %4813 = vpow2.f32 %v4244_v11  ;;  %v4808_v12 = vpop.eup %4807 }
 0x550   :  { %3856 = vrot.lane.b32.xlu0 %v8102_v46, %s4953_s4  ;;  %v8122_v17 = vadd.f32 %v4455_v26, %v3562_v50  ;;  %v4245_v49 = vmul.f32 -1.442695, %v8109_v3  ;;  %4815 = vpow2.f32 %v4239_v33  ;;  %v4810_v14 = vpop.eup %4809  ;;  %v3770_v63 = vadd.f32 1.0, %v4808_v12 }
 0x551   :  { %v3701_v10 = vpop.f32.mrf.mxu1  ;;  %4817 = vrcp.f32 %v3769_v24  ;;  %v3771_v32 = vadd.f32 1.0, %v4810_v14 }
 0x552   :  { %3868 = vrot.lane.b32.xlu1 %v8109_v3, %s4953_s4  ;;  %v8135_v60 = vadd.f32 %v3701_v10, %v3557_v21  ;;  %4819 = vrcp.f32 %v3768_v42  ;;  %v4248_v4 = vmul.f32 -1.442695, %v8122_v17 }
 0x553   :  { %v4458_v22 = vpop.f32.mrf.mxu1  ;;  %4821 = vpow2.f32 %v4245_v49 }
 0x554   :  { %3858 = vrot.lane.b32.xlu0 %v8115_v47, %s4953_s4  ;;  %v8153_v48 = vadd.f32 %v4458_v22, %v3572_v5  ;;  %4823 = vpow2.f32 %v4246_v30  ;;  %v4247_v27 = vmul.f32 -1.442695, %v8135_v60 }
 0x555   :  { %v3711_v45 = vpop.f32.mrf.mxu1  ;;  %4825 = vpow2.f32 %v4240_v15 }
 0x556   :  { %3874 = vrot.lane.b32.xlu1 %v8122_v17, %s4953_s4  ;;  %v8146_v52 = vadd.f32 %v3711_v45, %v3567_v55  ;;  %4827 = vrcp.f32 %v3770_v63  ;;  %v4250_v57 = vmul.f32 -1.442695, %v8153_v48 }
 0x557   :  { %4829 = vrcp.f32 %v3771_v32 }
 0x558   :  { %3860 = vrot.lane.b32.xlu0 %v8128_v18, %s4953_s4  ;;  %4831 = vpow2.f32 %v4241_v39  ;;  %v4249_v62 = vmul.f32 -1.442695, %v8146_v52 }
 0x559   :  { %4833 = vpow2.f32 %v4247_v27 }
 0x55a   :  { %3872 = vrot.lane.b32.xlu1 %v8135_v60, %s4953_s4  ;;  %4835 = vpow2.f32 %v4248_v4 }
 0x55b   :  { %v4812_v28 = vpop.eup %4811  ;;  %4837 = vpow2.f32 %v4242_v2 }
 0x55c   :  { %3862 = vrot.lane.b32.xlu0 %v8141_v8, %s4953_s4  ;;  %v4814_v61 = vpop.eup %4813  ;;  %v3776_v35 = vadd.f32 1.0, %v4812_v28  ;;  %4839 = vpow2.f32 %v4249_v62 }
 0x55d   :  { %v4816_v16 = vpop.eup %4815  ;;  %v3777_v40 = vadd.f32 1.0, %v4814_v61 }
 0x55e   :  { %3876 = vrot.lane.b32.xlu1 %v8146_v52, %s4953_s4  ;;  %v4818_v54 = vpop.eup %4817  ;;  %v3772_v26 = vadd.f32 1.0, %v4816_v16  ;;  %4841 = vrcp.f32 %v3776_v35 }
 0x55f   :  { %v4820_v44 = vpop.eup %4819  ;;  %4843 = vrcp.f32 %v3777_v40  ;;  %v3817_v22 = vmul.f32 %v4818_v54, %v8064_v41 }
 0x560   :  { %v4822_v38 = vpop.eup %4821  ;;  %4845 = vpow2.f32 %v4250_v57  ;;  %v3816_v56 = vmul.f32 %v4820_v44, %v8072_v59 }
 0x561   :  { %v4824_v34 = vpop.eup %4823  ;;  %v3778_v10 = vadd.f32 1.0, %v4822_v38  ;;  %4847 = vrcp.f32 %v3772_v26 }
 0x562   :  { %3878 = vrot.lane.b32.xlu1 %v8153_v48, %s4953_s4  ;;  %v4826_v51 = vpop.eup %4825  ;;  %v3779_v43 = vadd.f32 1.0, %v4824_v34 }
 0x563   :  { %v4828_v50 = vpop.eup %4827  ;;  %v3773_v45 = vadd.f32 1.0, %v4826_v51  ;;  %4849 = vrcp.f32 %v3778_v10 }
 0x564   :  { %v4830_v25 = vpop.eup %4829  ;;  %v3818_v53 = vmul.f32 %v4828_v50, %v8081_v13  ;;  %4851 = vrcp.f32 %v3779_v43 }
 0x565   :  { %v4832_v55 = vpop.eup %4831  ;;  %v3819_v59 = vmul.f32 %v4830_v25, %v8074_v31  ;;  %4853 = vrcp.f32 %v3773_v45 }
 0x566   :  { %v4834_v7 = vpop.eup %4833  ;;  %v3774_v9 = vadd.f32 1.0, %v4832_v55 }
 0x567   :  { %v4836_v41 = vpop.eup %4835  ;;  %v3780_v20 = vadd.f32 1.0, %v4834_v7 }
 0x568   :  { %v4838_v19 = vpop.eup %4837  ;;  %v3781_v24 = vadd.f32 1.0, %v4836_v41  ;;  %4855 = vrcp.f32 %v3774_v9 }
 0x569   :  { %v4840_v33 = vpop.eup %4839  ;;  %v3775_v13 = vadd.f32 1.0, %v4838_v19  ;;  %4857 = vrcp.f32 %v3780_v20 }
 0x56a   :  { %v3782_v49 = vadd.f32 1.0, %v4840_v33  ;;  %4859 = vrcp.f32 %v3781_v24 }
 0x56b   :  { %v4842_v42 = vpop.eup %4841  ;;  %4861 = vrcp.f32 %v3775_v13 }
 0x56c   :  { %v4844_v31 = vpop.eup %4843  ;;  %v3824_v14 = vmul.f32 %v4842_v42, %v8089_v29  ;;  %4863 = vrcp.f32 %v3782_v49 }
 0x56d   :  { %v4846_v12 = vpop.eup %4845  ;;  %v3825_v63 = vmul.f32 %v4844_v31, %v8086_v37 }
 0x56e   :  { %v4848_v15 = vpop.eup %4847  ;;  %v3783_v39 = vadd.f32 1.0, %v4846_v12 }
 0x56f   :  { %v3820_v62 = vmul.f32 %v4848_v15, %v8102_v46 }
 0x570   :  { %v4850_v4 = vpop.eup %4849  ;;  %4865 = vrcp.f32 %v3783_v39 }
 0x571   :  { %v4852_v61 = vpop.eup %4851  ;;  %v3826_v37 = vmul.f32 %v4850_v4, %v8109_v3 }
 0x572   :  { %v4854_v16 = vpop.eup %4853  ;;  %v3827_v54 = vmul.f32 %v4852_v61, %v8096_v36 }
 0x573   :  { %v3821_v57 = vmul.f32 %v4854_v16, %v8115_v47 }
 0x575   :  { %v4856_v38 = vpop.eup %4855 }
 0x576   :  { %v4858_v26 = vpop.eup %4857  ;;  %v3822_v36 = vmul.f32 %v4856_v38, %v8128_v18 }
 0x577   :  { %v4860_v10 = vpop.eup %4859  ;;  %v3828_v47 = vmul.f32 %v4858_v26, %v8135_v60 }
 0x578   :  { %v4862_v3 = vpop.eup %4861 }
 0x579   :  { %v4864_v43 = vpop.eup %4863  ;;  %v3823_v25 = vmul.f32 %v4862_v3, %v8141_v8 }
 0x57a   :  { %v3830_v18 = vmul.f32 %v4864_v43, %v8146_v52 }
 0x5ac   :  { %v3851_v23 = vpop.permute.xlu1 %3850 }
 0x5ad   :  { %v3897_v5 = vmul.f32 %v3851_v23, %v3817_v22  ;;  %v3829_v22 = vmul.f32 %v4860_v10, %v8122_v17 }
 0x5b0   :  { %v3855_v1 = vpop.permute.xlu0 %3854  ;;  %v3849_v21 = vpop.permute.xlu1 %3848 }
 0x5b1   :  { %v3896_v58 = vmul.f32 %v3849_v21, %v3816_v56  ;;  %v3899_v11 = vmul.f32 %v3855_v1, %v3819_v59 }
 0x5b3   :  { %4475 = vmatprep.mubr.msk.f32.mxu0 %vm3920_vm0, %v3896_v58 }
 0x5b4   :  { %v3853_v6 = vpop.permute.xlu0 %3852  ;;  %4476 = vmatmul.mubr.msk.f32.vlgmr.msra.gmra.mxu0 %vm3920_vm0, %v3897_v5  ;;  %v4866_v5 = vpop.eup %4865 }
 0x5b5   :  { %v3898_v0 = vmul.f32 %v3853_v6, %v3818_v53  ;;  %v3831_v17 = vmul.f32 %v4866_v5, %v8153_v48 }
 0x5b7   :  { %4478 = vmatprep.mubr.msk.f32.mxu0 %vm3920_vm0, %v3898_v0 }
 0x5b8   :  { %4479 = vmatmul.mubr.msk.f32.gmra.mxu0 %vm3920_vm0, %v3899_v11 }
 0x5bc   :  { %v3867_v30 = vpop.permute.xlu1 %3866 }
 0x5bd   :  { %v3905_v2 = vmul.f32 %v3867_v30, %v3825_v63 }
 0x5be   :  { %v3865_v32 = vpop.permute.xlu0 %3864 }
 0x5bf   :  { %v3904_v27 = vmul.f32 %v3865_v32, %v3824_v14 }
 0x5c0   :  { %v3871_v28 = vpop.permute.xlu1 %3870 }
 0x5c1   :  { %4487 = vmatprep.mubr.msk.f32.mxu1 %vm3920_vm0, %v3904_v27  ;;  %v3907_v23 = vmul.f32 %v3871_v28, %v3827_v54 }
 0x5c2   :  { %v3857_v35 = vpop.permute.xlu0 %3856  ;;  %4488 = vmatmul.mubr.msk.f32.vlgmr.msra.gmra.mxu1 %vm3920_vm0, %v3905_v2 }
 0x5c3   :  { %v3900_v29 = vmul.f32 %v3857_v35, %v3820_v62 }
 0x5c4   :  { %v3869_v40 = vpop.permute.xlu1 %3868 }
 0x5c5   :  { %v3906_v44 = vmul.f32 %v3869_v40, %v3826_v37  ;;  %4481 = vmatprep.mubr.msk.f32.mxu0 %vm3920_vm0, %v3900_v29 }
 0x5c6   :  { %v3859_v34 = vpop.permute.xlu0 %3858 }
 0x5c7   :  { %v3901_v46 = vmul.f32 %v3859_v34, %v3821_v57  ;;  %4490 = vmatprep.mubr.msk.f32.mxu1 %vm3920_vm0, %v3906_v44 }
 0x5c8   :  { %4491 = vmatmul.mubr.msk.f32.gmra.mxu1 %vm3920_vm0, %v3907_v23  ;;  %v3875_v51 = vpop.permute.xlu1 %3874 }
 0x5c9   :  { %4482 = vmatmul.mubr.msk.f32.gmra.mxu0 %vm3920_vm0, %v3901_v46  ;;  %v3909_v45 = vmul.f32 %v3875_v51, %v3829_v22 }
 0x5ca   :  { %v3861_v56 = vpop.permute.xlu0 %3860 }
 0x5cb   :  { %v3902_v50 = vmul.f32 %v3861_v56, %v3822_v36 }
 0x5cc   :  { %v3873_v1 = vpop.permute.xlu1 %3872 }
 0x5cd   :  { %v3908_v21 = vmul.f32 %v3873_v1, %v3828_v47  ;;  %4484 = vmatprep.mubr.msk.f32.mxu0 %vm3920_vm0, %v3902_v50 }
 0x5ce   :  { %v3863_v58 = vpop.permute.xlu0 %3862 }
 0x5cf   :  { %v3903_v55 = vmul.f32 %v3863_v58, %v3823_v25  ;;  %4493 = vmatprep.mubr.msk.f32.mxu1 %vm3920_vm0, %v3908_v21 }
 0x5d0   :  { %4494 = vmatmul.mubr.msk.f32.gmra.mxu1 %vm3920_vm0, %v3909_v45  ;;  %v3877_v60 = vpop.permute.xlu1 %3876 }
 0x5d1   :  { %v3910_v53 = vmul.f32 %v3877_v60, %v3830_v18  ;;  %4485 = vmatmul.mubr.msk.f32.gmra.mxu0 %vm3920_vm0, %v3903_v55 }
 0x5d3   :  { %4496 = vmatprep.mubr.msk.f32.mxu1 %vm3920_vm0, %v3910_v53 }
 0x5d4   :  { %v3879_v7 = vpop.permute.xlu1 %3878 }
 0x5d5   :  { %v3911_v8 = vmul.f32 %v3879_v7, %v3831_v17 }
 0x5d7   :  { %4497 = vmatmul.mubr.msk.f32.gmra.mxu1 %vm3920_vm0, %v3911_v8 }
 0x674   :  { %v4477_v59 = vpop.f32.mrf.mxu0 }
 0x675   :  { %4115 = vst.msk [vmem:[%s8274_s5 + $0x8] sm:$0xff] %vm3920_vm0, %v4477_v59 }
 0x676   :  { %v4035_v52 = vpop.f32.mrf.mxu0 }
 0x677   :  { %4114 = vst.msk [vmem:[%s8274_s5] sm:$0xff] %vm3920_vm0, %v4035_v52 }
 0x678   :  { %v4480_v6 = vpop.f32.mrf.mxu0 }
 0x679   :  { %4117 = vst.msk [vmem:[%s8274_s5 + $0x18] sm:$0xff] %vm3920_vm0, %v4480_v6 }
 0x67a   :  { %v4045_v48 = vpop.f32.mrf.mxu0 }
 0x67b   :  { %4116 = vst.msk [vmem:[%s8274_s5 + $0x10] sm:$0xff] %vm3920_vm0, %v4045_v48 }
 0x682   :  { %v4489_v41 = vpop.f32.mrf.mxu1 }
 0x683   :  { %4123 = vst.msk [vmem:[%s8274_s5 + $0x48] sm:$0xff] %vm3920_vm0, %v4489_v41 }
 0x684   :  { %v4075_v9 = vpop.f32.mrf.mxu1 }
 0x685   :  { %4122 = vst.msk [vmem:[%s8274_s5 + $0x40] sm:$0xff] %vm3920_vm0, %v4075_v9 }
 0x688   :  { %v4492_v0 = vpop.f32.mrf.mxu1 }
 0x689   :  { %4125 = vst.msk [vmem:[%s8274_s5 + $0x58] sm:$0xff] %vm3920_vm0, %v4492_v0  ;;  %v4483_v19 = vpop.f32.mrf.mxu0 }
 0x68a   :  { %4119 = vst.msk [vmem:[%s8274_s5 + $0x28] sm:$0xff] %vm3920_vm0, %v4483_v19  ;;  %v4085_v11 = vpop.f32.mrf.mxu1 }
 0x68b   :  { %4124 = vst.msk [vmem:[%s8274_s5 + $0x50] sm:$0xff] %vm3920_vm0, %v4085_v11  ;;  %v4055_v20 = vpop.f32.mrf.mxu0 }
 0x68c   :  { %4118 = vst.msk [vmem:[%s8274_s5 + $0x20] sm:$0xff] %vm3920_vm0, %v4055_v20 }
 0x690   :  { %v4495_v33 = vpop.f32.mrf.mxu1 }
 0x691   :  { %4127 = vst.msk [vmem:[%s8274_s5 + $0x68] sm:$0xff] %vm3920_vm0, %v4495_v33  ;;  %v4486_v24 = vpop.f32.mrf.mxu0 }
 0x692   :  { %4121 = vst.msk [vmem:[%s8274_s5 + $0x38] sm:$0xff] %vm3920_vm0, %v4486_v24  ;;  %v4095_v13 = vpop.f32.mrf.mxu1 }
 0x693   :  { %4126 = vst.msk [vmem:[%s8274_s5 + $0x60] sm:$0xff] %vm3920_vm0, %v4095_v13  ;;  %v4065_v42 = vpop.f32.mrf.mxu0 }
 0x694   :  { %4120 = vst.msk [vmem:[%s8274_s5 + $0x30] sm:$0xff] %vm3920_vm0, %v4065_v42 }
 0x697   :  { %v4498_v31 = vpop.f32.mrf.mxu1 }
 0x698   :  { %4129 = vst.msk [vmem:[%s8274_s5 + $0x78] sm:$0xff] %vm3920_vm0, %v4498_v31 }
 0x699   :  { %v4105_v49 = vpop.f32.mrf.mxu1 }
 0x69a   :  { %4128 = vst.msk [vmem:[%s8274_s5 + $0x70] sm:$0xff] %vm3920_vm0, %v4105_v49 }
 0x69b   :  { %4134 = vsyncpa [#allocation4], 1 }
 0x69c   :  { %4135 = vsyncpa [#allocation6], 1 }

</bundles_post_ra>
